<compile_context>
chip_gen: v6e
topology: v6e:2x2x1
jax: 0.10.0
libtpu: 0.0.40
codegen_flags: <defaults>
</compile_context>

<pallas_src>
import functools

import jax
import jax.numpy as jnp
from jax.experimental import pallas as pl
from jax.experimental.pallas import tpu as pltpu


F_IN = 784          # flattened 28x28 image
OUT_PAD = 128       # lane-dense final layer; real logit lives in column 0


def _disc_kernel(x_ref,
                 w0_ref, b0_ref,
                 w1_ref, b1_ref,
                 w2_ref, b2_ref,
                 w3_ref, b3_ref,
                 o_ref, *, act_bf16):
    """Fused forward pass of the whole MLP for one batch tile.

    Weights are bf16; activations are cast to bf16 before each matmul so the
    MXU runs in bf16 mode; accumulation is f32.
    """
    def linear(h_bf16, w_ref, b_ref):
        return jnp.dot(h_bf16, w_ref[...],
                       preferred_element_type=jnp.float32) + b_ref[...]

    act_dt = jnp.bfloat16 if act_bf16 else jnp.float32

    def leaky_relu(z):
        h = z.astype(act_dt)                       # bf16 elementwise on v6e/v7x
        return jnp.maximum(h, jnp.asarray(0.2, act_dt) * h)

    x = x_ref[...].astype(jnp.bfloat16)                               # [TB, 784]
    h = leaky_relu(linear(x, w0_ref, b0_ref))                         # [TB,1024]
    # Dropout(0.3) -> identity at inference.
    h = leaky_relu(linear(h.astype(jnp.bfloat16), w1_ref, b1_ref))    # [TB, 512]
    h = leaky_relu(linear(h.astype(jnp.bfloat16), w2_ref, b2_ref))    # [TB, 256]
    logit = linear(h.astype(jnp.bfloat16), w3_ref, b3_ref)            # [TB, 128]

    # Numerically stable sigmoid; exp + approx reciprocal run on the EUP slot.
    e = jnp.exp(-jnp.abs(logit))
    r = pl.reciprocal(1.0 + e, approx=True)
    o_ref[...] = jnp.where(logit >= 0, r, e * r)


def prepare_params(params):
    """One-time weight prep (hoist outside the forward loop): cast weights to
    bf16 (biases stay f32); pad the final layer to 128 output lanes so the
    kernel's output block is lane-dense."""
    w0, b0 = params["h0"]
    w1, b1 = params["h1"]
    w2, b2 = params["h2"]
    w3, b3 = params["out"]

    w3p = jnp.zeros((w3.shape[0], OUT_PAD), jnp.bfloat16)
    w3p = w3p.at[:, :1].set(w3.astype(jnp.bfloat16))
    b3p = jnp.zeros((1, OUT_PAD), jnp.float32)
    b3p = b3p.at[:, :1].set(b3.astype(jnp.float32))

    return (w0.astype(jnp.bfloat16), b0.astype(jnp.float32),
            w1.astype(jnp.bfloat16), b1.astype(jnp.float32),
            w2.astype(jnp.bfloat16), b2.astype(jnp.float32),
            w3p, b3p)


def _is_v5():
    try:
        return "v5" in jax.devices()[0].device_kind.lower()
    except Exception:
        return False


def _choose_tb(B, tb_max):
    if B >= 2 * tb_max:
        return tb_max                                    # big batch: max tile
    if B >= 256:
        # mid batch: keep >= 2 grid steps so both v7x TensorCores get work
        tb = ((pl.cdiv(B, 2) + 127) // 128) * 128
        return min(tb, tb_max)
    # small batch: a single tile, rounded to the bf16 sublane pack (16 rows)
    return ((B + 15) // 16) * 16


def discriminator_forward(x, prepped):
    """x: [B, 784] float32.  prepped: output of prepare_params()."""
    B = x.shape[0]
    w0, b0, w1, b1, w2, b2, w3, b3 = prepped

    is_v5 = _is_v5()
    # v5e: per-tile MXU time already hides the ~0.35us/step grid overhead and
    # there's no bf16 VALU -> smaller tile + f32 elementwise.
    # v6e/v7x: bigger tile to amortize the grid loop, bf16 elementwise.
    tb_max = 256 if is_v5 else 512
    TB = _choose_tb(B, tb_max)
    B_pad = pl.cdiv(B, TB) * TB
    grid = (B_pad // TB,)

    # Only pad batch rows if needed (f32, no extra cast/copy of the features).
    x_p = x if B_pad == B else jnp.pad(x, ((0, B_pad - B), (0, 0)))

    # Weights/biases never change across batch tiles -> constant index_map,
    # single-buffered so they aren't duplicated in VMEM.
    def const(arr):
        return pl.BlockSpec(arr.shape, lambda i: (0, 0),
                            pipeline_mode=pl.Buffered(1))

    weight_elems = (F_IN * 1024 + 1024 * 512 + 512 * 256 + 256 * OUT_PAD)
    cost = pl.CostEstimate(
        flops=2 * B_pad * weight_elems,
        transcendentals=2 * B_pad * OUT_PAD,                 # exp + reciprocal
        bytes_accessed=(2 * weight_elems                     # bf16 weights
                        + 4 * (1024 + 512 + 256 + OUT_PAD)   # f32 biases
                        + 4 * B_pad * F_IN                   # f32 input
                        + 4 * B_pad * OUT_PAD))              # f32 output

    kernel = functools.partial(_disc_kernel, act_bf16=not is_v5)

    out_padded = pl.pallas_call(
        kernel,
        out_shape=jax.ShapeDtypeStruct((B_pad, OUT_PAD), jnp.float32),
        grid=grid,
        in_specs=[pl.BlockSpec((TB, F_IN), lambda i: (i, 0)),
                  const(w0), const(b0),
                  const(w1), const(b1),
                  const(w2), const(b2),
                  const(w3), const(b3)],
        out_specs=pl.BlockSpec((TB, OUT_PAD), lambda i: (i, 0)),
        compiler_params=pltpu.CompilerParams(
            dimension_semantics=("parallel",),
            vmem_limit_bytes=32 << 20),
        cost_estimate=cost,
    )(x_p, w0, b0, w1, b1, w2, b2, w3, b3)

    return out_padded[:B, :1]


def init_params(key):
    """Deterministic init matching PyTorch nn.Linear default:
    U(-1/sqrt(fan_in), 1/sqrt(fan_in)) for weight and bias.
    Weights returned already transposed to [fan_in, fan_out], f32."""
    dims = [("h0", 784, 1024), ("h1", 1024, 512),
            ("h2", 512, 256), ("out", 256, 1)]
    params = {}
    for name, fan_in, fan_out in dims:
        key, kw, kb = jax.random.split(key, 3)
        bound = 1.0 / (fan_in ** 0.5)
        w_t = jax.random.uniform(kw, (fan_in, fan_out), jnp.float32,
                                 minval=-bound, maxval=bound)
        b = jax.random.uniform(kb, (1, fan_out), jnp.float32,
                               minval=-bound, maxval=bound)
        params[name] = (w_t, b)
    return params


def _reference_forward(x, params, act_bf16):
    """Plain-JAX reference mirroring the kernel's bf16-input / f32-accum math."""
    act_dt = jnp.bfloat16 if act_bf16 else jnp.float32
    h = x.astype(jnp.bfloat16)
    for name in ("h0", "h1", "h2"):
        w, b = params[name]
        z = jnp.dot(h, w.astype(jnp.bfloat16),
                    preferred_element_type=jnp.float32) + b
        a = z.astype(act_dt)
        h = jnp.maximum(a, jnp.asarray(0.2, act_dt) * a).astype(jnp.bfloat16)
    w, b = params["out"]
    z = jnp.dot(h, w.astype(jnp.bfloat16),
                preferred_element_type=jnp.float32) + b
    return jax.nn.sigmoid(z)


if __name__ == "__main__":
    key = jax.random.PRNGKey(0)
    key, kx = jax.random.split(key)

    B = 8
    x = jax.random.normal(kx, (B, F_IN), jnp.float32)   # flattened 28x28 image
    params = init_params(key)

    prepped = prepare_params(params)          # one-time weight prep (hoisted)
    fwd = jax.jit(discriminator_forward)

    out = jax.block_until_ready(fwd(x, prepped))

    ref = _reference_forward(x, params, act_bf16=not _is_v5())
    assert out.shape == (B, 1), out.shape
    assert jnp.allclose(out, ref, atol=5e-3, rtol=5e-3), (out, ref)

    print("KERNEL_OK")
</pallas_src>

<mosaic_0001>
module attributes {stable_mosaic.version = 11 : i64} {
  func.func @_disc_kernel(%arg0: i32, %arg1: memref<16x784xf32, #tpu.memory_space<vmem>>, %arg2: memref<784x1024xbf16, #tpu.memory_space<vmem>>, %arg3: memref<1x1024xf32, #tpu.memory_space<vmem>>, %arg4: memref<1024x512xbf16, #tpu.memory_space<vmem>>, %arg5: memref<1x512xf32, #tpu.memory_space<vmem>>, %arg6: memref<512x256xbf16, #tpu.memory_space<vmem>>, %arg7: memref<1x256xf32, #tpu.memory_space<vmem>>, %arg8: memref<256x128xbf16, #tpu.memory_space<vmem>>, %arg9: memref<1x128xf32, #tpu.memory_space<vmem>>, %arg10: memref<16x128xf32, #tpu.memory_space<vmem>>) attributes {dimension_semantics = [#tpu.dimension_semantics<parallel>], iteration_bounds = array<i64: 1>, scalar_prefetch = 0 : i64, scratch_operands = 0 : i64, tpu.core_type = #tpu.core_type<tc>, window_params = [{transform_indices = @transform_0, window_bounds = array<i64: 16, 784>}, {pipeline_mode = #tpu.pipeline_mode<synchronous>, transform_indices = @transform_1, window_bounds = array<i64: 784, 1024>}, {pipeline_mode = #tpu.pipeline_mode<synchronous>, transform_indices = @transform_2, window_bounds = array<i64: 1, 1024>}, {pipeline_mode = #tpu.pipeline_mode<synchronous>, transform_indices = @transform_3, window_bounds = array<i64: 1024, 512>}, {pipeline_mode = #tpu.pipeline_mode<synchronous>, transform_indices = @transform_4, window_bounds = array<i64: 1, 512>}, {pipeline_mode = #tpu.pipeline_mode<synchronous>, transform_indices = @transform_5, window_bounds = array<i64: 512, 256>}, {pipeline_mode = #tpu.pipeline_mode<synchronous>, transform_indices = @transform_6, window_bounds = array<i64: 1, 256>}, {pipeline_mode = #tpu.pipeline_mode<synchronous>, transform_indices = @transform_7, window_bounds = array<i64: 256, 128>}, {pipeline_mode = #tpu.pipeline_mode<synchronous>, transform_indices = @transform_8, window_bounds = array<i64: 1, 128>}, {transform_indices = @transform_9, window_bounds = array<i64: 16, 128>}]} {
    %c0 = arith.constant 0 : index
    %c0_0 = arith.constant 0 : index
    %0 = vector.load %arg1[%c0, %c0_0] : memref<16x784xf32, #tpu.memory_space<vmem>>, vector<16x784xf32>
    %1 = arith.truncf %0 : vector<16x784xf32> to vector<16x784xbf16>
    %c0_1 = arith.constant 0 : index
    %c0_2 = arith.constant 0 : index
    %2 = vector.load %arg2[%c0_1, %c0_2] : memref<784x1024xbf16, #tpu.memory_space<vmem>>, vector<784x1024xbf16>
    %cst = arith.constant dense<0.000000e+00> : vector<16x1024xf32>
    %3 = tpu.matmul %1, %2, %cst {dimension_numbers = #tpu.dot_dimension_numbers<[1], [0], [0], [1], [0, 0, 1, 1], [], []>} : vector<16x784xbf16>, vector<784x1024xbf16>, vector<16x1024xf32> -> vector<16x1024xf32>
    %c0_3 = arith.constant 0 : index
    %c0_4 = arith.constant 0 : index
    %4 = vector.load %arg3[%c0_3, %c0_4] : memref<1x1024xf32, #tpu.memory_space<vmem>>, vector<1x1024xf32>
    %5 = vector.broadcast %4 : vector<1x1024xf32> to vector<16x1024xf32>
    %6 = arith.addf %3, %5 : vector<16x1024xf32>
    %7 = arith.truncf %6 : vector<16x1024xf32> to vector<16x1024xbf16>
    %cst_5 = arith.constant 2.001950e-01 : bf16
    %8 = vector.broadcast %cst_5 : bf16 to vector<16x1024xbf16>
    %9 = arith.mulf %8, %7 : vector<16x1024xbf16>
    %10 = arith.maximumf %7, %9 : vector<16x1024xbf16>
    %c0_6 = arith.constant 0 : index
    %c0_7 = arith.constant 0 : index
    %11 = vector.load %arg4[%c0_6, %c0_7] : memref<1024x512xbf16, #tpu.memory_space<vmem>>, vector<1024x512xbf16>
    %cst_8 = arith.constant dense<0.000000e+00> : vector<16x512xf32>
    %12 = tpu.matmul %10, %11, %cst_8 {dimension_numbers = #tpu.dot_dimension_numbers<[1], [0], [0], [1], [0, 0, 1, 1], [], []>} : vector<16x1024xbf16>, vector<1024x512xbf16>, vector<16x512xf32> -> vector<16x512xf32>
    %c0_9 = arith.constant 0 : index
    %c0_10 = arith.constant 0 : index
    %13 = vector.load %arg5[%c0_9, %c0_10] : memref<1x512xf32, #tpu.memory_space<vmem>>, vector<1x512xf32>
    %14 = vector.broadcast %13 : vector<1x512xf32> to vector<16x512xf32>
    %15 = arith.addf %12, %14 : vector<16x512xf32>
    %16 = arith.truncf %15 : vector<16x512xf32> to vector<16x512xbf16>
    %cst_11 = arith.constant 2.001950e-01 : bf16
    %17 = vector.broadcast %cst_11 : bf16 to vector<16x512xbf16>
    %18 = arith.mulf %17, %16 : vector<16x512xbf16>
    %19 = arith.maximumf %16, %18 : vector<16x512xbf16>
    %c0_12 = arith.constant 0 : index
    %c0_13 = arith.constant 0 : index
    %20 = vector.load %arg6[%c0_12, %c0_13] : memref<512x256xbf16, #tpu.memory_space<vmem>>, vector<512x256xbf16>
    %cst_14 = arith.constant dense<0.000000e+00> : vector<16x256xf32>
    %21 = tpu.matmul %19, %20, %cst_14 {dimension_numbers = #tpu.dot_dimension_numbers<[1], [0], [0], [1], [0, 0, 1, 1], [], []>} : vector<16x512xbf16>, vector<512x256xbf16>, vector<16x256xf32> -> vector<16x256xf32>
    %c0_15 = arith.constant 0 : index
    %c0_16 = arith.constant 0 : index
    %22 = vector.load %arg7[%c0_15, %c0_16] : memref<1x256xf32, #tpu.memory_space<vmem>>, vector<1x256xf32>
    %23 = vector.broadcast %22 : vector<1x256xf32> to vector<16x256xf32>
    %24 = arith.addf %21, %23 : vector<16x256xf32>
    %25 = arith.truncf %24 : vector<16x256xf32> to vector<16x256xbf16>
    %cst_17 = arith.constant 2.001950e-01 : bf16
    %26 = vector.broadcast %cst_17 : bf16 to vector<16x256xbf16>
    %27 = arith.mulf %26, %25 : vector<16x256xbf16>
    %28 = arith.maximumf %25, %27 : vector<16x256xbf16>
    %c0_18 = arith.constant 0 : index
    %c0_19 = arith.constant 0 : index
    %29 = vector.load %arg8[%c0_18, %c0_19] : memref<256x128xbf16, #tpu.memory_space<vmem>>, vector<256x128xbf16>
    %cst_20 = arith.constant dense<0.000000e+00> : vector<16x128xf32>
    %30 = tpu.matmul %28, %29, %cst_20 {dimension_numbers = #tpu.dot_dimension_numbers<[1], [0], [0], [1], [0, 0, 1, 1], [], []>} : vector<16x256xbf16>, vector<256x128xbf16>, vector<16x128xf32> -> vector<16x128xf32>
    %c0_21 = arith.constant 0 : index
    %c0_22 = arith.constant 0 : index
    %31 = vector.load %arg9[%c0_21, %c0_22] : memref<1x128xf32, #tpu.memory_space<vmem>>, vector<1x128xf32>
    %32 = vector.broadcast %31 : vector<1x128xf32> to vector<16x128xf32>
    %33 = arith.addf %30, %32 : vector<16x128xf32>
    %34 = math.absf %33 : vector<16x128xf32>
    %cst_23 = arith.constant 0.000000e+00 : f32
    %35 = vector.broadcast %cst_23 : f32 to vector<16x128xf32>
    %36 = arith.subf %35, %34 : vector<16x128xf32>
    %37 = math.exp %36 : vector<16x128xf32>
    %cst_24 = arith.constant 1.000000e+00 : f32
    %38 = vector.broadcast %cst_24 : f32 to vector<16x128xf32>
    %39 = arith.addf %38, %37 : vector<16x128xf32>
    %40 = tpu.reciprocal %39 {approx = true} : vector<16x128xf32> -> vector<16x128xf32>
    %cst_25 = arith.constant 0.000000e+00 : f32
    %41 = vector.broadcast %cst_25 : f32 to vector<16x128xf32>
    %42 = arith.cmpf oge, %33, %41 : vector<16x128xf32>
    %43 = arith.mulf %37, %40 : vector<16x128xf32>
    %44 = arith.select %42, %40, %43 : vector<16x128xi1>, vector<16x128xf32>
    %c0_26 = arith.constant 0 : index
    %c0_27 = arith.constant 0 : index
    %45 = vector.load %arg10[%c0_26, %c0_27] : memref<16x128xf32, #tpu.memory_space<vmem>>, vector<16x128xf32>
    tpu.vector_store %arg10[%c0_26, %c0_27], %44 {strides = array<i32>} : memref<16x128xf32, #tpu.memory_space<vmem>>, vector<16x128xf32>,
    return
  }
  func.func @transform_0(%arg0: i32) -> (i32, i32) {
    %c0_i32 = arith.constant 0 : i32
    %c0_i32_0 = arith.constant 0 : i32
    return %arg0, %c0_i32 : i32, i32
  }
  func.func @transform_1(%arg0: i32) -> (i32, i32) {
    %c0_i32 = arith.constant 0 : i32
    %c0_i32_0 = arith.constant 0 : i32
    %c0_i32_1 = arith.constant 0 : i32
    return %c0_i32, %c0_i32_0 : i32, i32
  }
  func.func @transform_2(%arg0: i32) -> (i32, i32) {
    %c0_i32 = arith.constant 0 : i32
    %c0_i32_0 = arith.constant 0 : i32
    %c0_i32_1 = arith.constant 0 : i32
    return %c0_i32, %c0_i32_0 : i32, i32
  }
  func.func @transform_3(%arg0: i32) -> (i32, i32) {
    %c0_i32 = arith.constant 0 : i32
    %c0_i32_0 = arith.constant 0 : i32
    %c0_i32_1 = arith.constant 0 : i32
    return %c0_i32, %c0_i32_0 : i32, i32
  }
  func.func @transform_4(%arg0: i32) -> (i32, i32) {
    %c0_i32 = arith.constant 0 : i32
    %c0_i32_0 = arith.constant 0 : i32
    %c0_i32_1 = arith.constant 0 : i32
    return %c0_i32, %c0_i32_0 : i32, i32
  }
  func.func @transform_5(%arg0: i32) -> (i32, i32) {
    %c0_i32 = arith.constant 0 : i32
    %c0_i32_0 = arith.constant 0 : i32
    %c0_i32_1 = arith.constant 0 : i32
    return %c0_i32, %c0_i32_0 : i32, i32
  }
  func.func @transform_6(%arg0: i32) -> (i32, i32) {
    %c0_i32 = arith.constant 0 : i32
    %c0_i32_0 = arith.constant 0 : i32
    %c0_i32_1 = arith.constant 0 : i32
    return %c0_i32, %c0_i32_0 : i32, i32
  }
  func.func @transform_7(%arg0: i32) -> (i32, i32) {
    %c0_i32 = arith.constant 0 : i32
    %c0_i32_0 = arith.constant 0 : i32
    %c0_i32_1 = arith.constant 0 : i32
    return %c0_i32, %c0_i32_0 : i32, i32
  }
  func.func @transform_8(%arg0: i32) -> (i32, i32) {
    %c0_i32 = arith.constant 0 : i32
    %c0_i32_0 = arith.constant 0 : i32
    %c0_i32_1 = arith.constant 0 : i32
    return %c0_i32, %c0_i32_0 : i32, i32
  }
  func.func @transform_9(%arg0: i32) -> (i32, i32) {
    %c0_i32 = arith.constant 0 : i32
    %c0_i32_0 = arith.constant 0 : i32
    return %arg0, %c0_i32 : i32, i32
  }
}

</mosaic_0001>

<bundles_post_ra>
// kernel: discriminator_forward.1
= control target key start
LH: loop header
LB: loop body
LE: loop exit
PB: predicated region body
PF: predicated region fallthrough
CT: control target
= control target key end

     0   :  { %14 = vsyncpa [#allocation3], 0  ;;  %s7625_s0 = inlined_call_operand.vmem [shape: f32[16,784], index: 0, kind: input, shape index: {}]   ;;  %s7626_s1 = inlined_call_operand.hbm [shape: bf16[784,1024], index: 1, kind: input, shape index: {}]   ;;  %s7627_s2 = inlined_call_operand.hbm [shape: f32[1,1024], index: 2, kind: input, shape index: {}]   ;;  %s7628_s3 = inlined_call_operand.hbm [shape: bf16[1024,512], index: 3, kind: input, shape index: {}]   ;;  %s7629_s4 = inlined_call_operand.hbm [shape: f32[1,512], index: 4, kind: input, shape index: {}]   ;;  %s7630_s5 = inlined_call_operand.hbm [shape: bf16[512,256], index: 5, kind: input, shape index: {}]   ;;  %s7631_s6 = inlined_call_operand.hbm [shape: f32[1,256], index: 6, kind: input, shape index: {}]   ;;  %s7632_s7 = inlined_call_operand.hbm [shape: bf16[256,128], index: 7, kind: input, shape index: {}]   ;;  %s7633_s8 = inlined_call_operand.hbm [shape: f32[1,128], index: 8, kind: input, shape index: {}]   ;;  %s7634_s9 = inlined_call_operand.vmem [shape: f32[16,128], index: 9, kind: output, shape index: {}]  }
   0x1   :  { %15 = vsyncpa [#allocation5], 0 }
   0x2   :  { %16 = vsyncpa [#allocation8], 0 }
   0x3   :  { %17 = vsyncpa [#allocation11], 0 }
   0x4   :  { %18 = vsyncpa [#allocation14], 0  ;;  %s7320_s30 = smov [#allocation4]   ;;  %s7321_s11 = smov [#allocation7]  }
   0x5   :  { %s39_s10 = sshll.u32 %s7320_s30, 4  ;;  %s61_s12 = sshll.u32 %s7321_s11, 4  ;;  %s40_s10 = int_to_ptr.vmem [resolvable:$true] %s39_s10  ;;  %s62_s12 = int_to_ptr.vmem [resolvable:$true] %s61_s12 }
   0x6   :  { %s7158_s13 = scalar_lea.vmem %s40_s10, 128  ;;  %p7163_p1 = scmp.lt.s32.totalorder %s40_s10, %s40_s10 }
   0x7   :  { %p7159_p0 = scmp.ne.s32.totalorder %s40_s10, %s7158_s13  ;;  %p7164_p2 = scmp.lt.s32.totalorder %s7158_s13, %s7158_s13 }
   0x9   :  { %p7165_p3 = por %p7164_p2, %p7163_p1 }
   0xb   :  { %p7166_p4 = pnand %p7165_p3, %p7159_p0 }
   0xd   :  { %7169 = shalt.err (!%p7166_p4)
}
   0xe   :  { %42 = dma.hbm_to_vmem [thread:$0]  %s7627_s2, 128, %s40_s10, [#allocation5]  }
   0xf   :  { %s7178_s16 = scalar_lea.vmem %s62_s12, 64  ;;  %p7183_p6 = scmp.lt.s32.totalorder %s62_s12, %s62_s12 }
  0x10   :  { %p7179_p5 = scmp.ne.s32.totalorder %s62_s12, %s7178_s16  ;;  %p7184_p7 = scmp.lt.s32.totalorder %s7178_s16, %s7178_s16 }
  0x12   :  { %p7185_p8 = por %p7184_p7, %p7183_p6 }
  0x14   :  { %p7186_p9 = pnand %p7185_p8, %p7179_p5 }
  0x16   :  { %7189 = shalt.err (!%p7186_p9)
}
  0x17   :  { %64 = dma.hbm_to_vmem [thread:$0]  %s7629_s4, 64, %s62_s12, [#allocation8]  }
  0x18   :  { %s7322_s19 = smov [#allocation10]   ;;  %s7323_s21 = smov [#allocation2]  }
  0x19   :  { %s83_s20 = sshll.u32 %s7322_s19, 4  ;;  %s26_s22 = sshll.u32 %s7323_s21, 4  ;;  %s84_s20 = int_to_ptr.vmem [resolvable:$true] %s83_s20  ;;  %s27_s22 = int_to_ptr.vmem [resolvable:$true] %s26_s22 }
  0x1a   :  { %s7198_s23 = scalar_lea.vmem %s84_s20, 32  ;;  %p7203_p11 = scmp.lt.s32.totalorder %s84_s20, %s84_s20 }
  0x1b   :  { %p7199_p10 = scmp.ne.s32.totalorder %s84_s20, %s7198_s23  ;;  %p7204_p12 = scmp.lt.s32.totalorder %s7198_s23, %s7198_s23 }
  0x1d   :  { %p7205_p13 = por %p7204_p12, %p7203_p11 }
  0x1f   :  { %p7206_p0 = pnand %p7205_p13, %p7199_p10 }
  0x21   :  { %7209 = shalt.err (!%p7206_p0)
}
  0x22   :  { %86 = dma.hbm_to_vmem [thread:$0]  %s7631_s6, 32, %s84_s20, [#allocation11]  }
  0x23   :  { %s7218_s25 = scalar_lea.vmem %s27_s22, 50176  ;;  %p7223_p2 = scmp.lt.s32.totalorder %s27_s22, %s27_s22 }
  0x24   :  { %p7219_p1 = scmp.ne.s32.totalorder %s27_s22, %s7218_s25  ;;  %p7224_p3 = scmp.lt.s32.totalorder %s7218_s25, %s7218_s25 }
  0x26   :  { %p7225_p4 = por %p7224_p3, %p7223_p2 }
  0x28   :  { %p7226_p5 = pnand %p7225_p4, %p7219_p1 }
  0x2a   :  { %7229 = shalt.err (!%p7226_p5)
}
  0x2b   :  { %s7324_s4 = smov 512   ;;  %s7325_s26 = smov 32  }
  0x2c   :  { %32 = dma.hbm_to_vmem [thread:$0]  %s7626_s1, 50176, %s27_s22, [#allocation3], %s7324_s4, %s7324_s4, %s7325_s26  }
  0x2d   :  { %s7326_s29 = smov [#allocation6]  }
  0x2e   :  { %s48_s30 = sshll.u32 %s7326_s29, 4  ;;  %s49_s30 = int_to_ptr.vmem [resolvable:$true] %s48_s30 }
  0x2f   :  { %s7238_s10 = scalar_lea.vmem %s49_s30, 32768  ;;  %p7243_p7 = scmp.lt.s32.totalorder %s49_s30, %s49_s30 }
  0x30   :  { %p7239_p6 = scmp.ne.s32.totalorder %s49_s30, %s7238_s10  ;;  %p7244_p8 = scmp.lt.s32.totalorder %s7238_s10, %s7238_s10 }
  0x32   :  { %p7245_p9 = por %p7244_p8, %p7243_p7 }
  0x34   :  { %p7246_p10 = pnand %p7245_p9, %p7239_p6 }
  0x36   :  { %7249 = shalt.err (!%p7246_p10)
}
  0x37   :  { %s7327_s6 = smov 256   ;;  %s7328_s11 = smov 16  }
  0x38   :  { %54 = dma.hbm_to_vmem [thread:$0]  %s7628_s3, 32768, %s49_s30, [#allocation5], %s7327_s6, %s7327_s6, %s7328_s11  }
  0x39   :  { %s7329_s14 = smov [#allocation9]  }
  0x3a   :  { %s70_s15 = sshll.u32 %s7329_s14, 4  ;;  %s71_s15 = int_to_ptr.vmem [resolvable:$true] %s70_s15 }
  0x3b   :  { %s7258_s1 = scalar_lea.vmem %s71_s15, 8192  ;;  %p7263_p12 = scmp.lt.s32.totalorder %s71_s15, %s71_s15 }
  0x3c   :  { %p7259_p11 = scmp.ne.s32.totalorder %s71_s15, %s7258_s1  ;;  %p7264_p13 = scmp.lt.s32.totalorder %s7258_s1, %s7258_s1 }
  0x3e   :  { %p7265_p0 = por %p7264_p13, %p7263_p12 }
  0x40   :  { %p7266_p1 = pnand %p7265_p0, %p7259_p11 }
  0x42   :  { %7269 = shalt.err (!%p7266_p1)
}
  0x43   :  { %s7330_s16 = smov 128   ;;  %s7331_s17 = smov 8  }
  0x44   :  { %76 = dma.hbm_to_vmem [thread:$0]  %s7630_s5, 8192, %s71_s15, [#allocation8], %s7330_s16, %s7330_s16, %s7331_s17  }
  0x45   :  { %s7332_s20 = smov [#allocation12]  }
  0x46   :  { %s92_s21 = sshll.u32 %s7332_s20, 4  ;;  %s93_s21 = int_to_ptr.vmem [resolvable:$true] %s92_s21 }
  0x47   :  { %s7278_s3 = scalar_lea.vmem %s93_s21, 2048  ;;  %p7283_p3 = scmp.lt.s32.totalorder %s93_s21, %s93_s21 }
  0x48   :  { %p7279_p2 = scmp.ne.s32.totalorder %s93_s21, %s7278_s3  ;;  %p7284_p4 = scmp.lt.s32.totalorder %s7278_s3, %s7278_s3 }
  0x4a   :  { %p7285_p5 = por %p7284_p4, %p7283_p3 }
  0x4c   :  { %p7286_p6 = pnand %p7285_p5, %p7279_p2 }
  0x4e   :  { %7289 = shalt.err (!%p7286_p6)
}
  0x4f   :  { %s7333_s22 = smov 64   ;;  %s7334_s23 = smov 4  }
  0x50   :  { %98 = dma.hbm_to_vmem [thread:$0]  %s7632_s7, 2048, %s93_s21, [#allocation11], %s7333_s22, %s7333_s22, %s7334_s23  }
  0x51   :  { %s7335_s25 = smov [#allocation13]  }
  0x52   :  { %s105_s4 = sshll.u32 %s7335_s25, 4  ;;  %s106_s4 = int_to_ptr.vmem [resolvable:$true] %s105_s4 }
  0x53   :  { %s7298_s5 = scalar_lea.vmem %s106_s4, 16  ;;  %s7302_s26 = scalar_lea.vmem %s106_s4, 32 }
  0x54   :  { %p7299_p7 = scmp.ne.s32.totalorder %s106_s4, %s7298_s5  ;;  %p7303_p8 = scmp.lt.s32.totalorder %s106_s4, %s106_s4 }
  0x55   :  { %p7304_p9 = scmp.lt.s32.totalorder %s7302_s26, %s7298_s5 }
  0x57   :  { %p7305_p10 = por %p7304_p9, %p7303_p8 }
  0x59   :  { %p7306_p11 = pnand %p7305_p10, %p7299_p7 }
  0x5b   :  { %7309 = shalt.err (!%p7306_p11)
}
  0x5c   :  { %108 = dma.hbm_to_vmem [thread:$0]  %s7633_s8, 16, %s106_s4, [#allocation14]  }
  0x5d   :  { %7310 = dma.done.wait [#allocation3], 50176  }
  0x5e   :  { %7311 = vsyncadd [#allocation3], 4294917120 }
  0x5f   :  { %7312 = dma.done.wait [#allocation5], 32896  }
  0x60   :  { %7313 = vsyncadd [#allocation5], 4294934400 }
  0x61   :  { %7314 = dma.done.wait [#allocation8], 8256  }
  0x62   :  { %7315 = vsyncadd [#allocation8], 4294959040 }
  0x63   :  { %7316 = dma.done.wait [#allocation11], 2080  }
  0x64   :  { %7317 = vsyncadd [#allocation11], 4294965216 }
  0x65   :  { %7318 = dma.done.wait [#allocation14], 16  }
  0x66   :  { %7319 = vsyncadd [#allocation14], 4294967280  ;;  %v212_v0 = vld [vmem:[#allocation2 + $0x1c0] sm:$0xff]  ;;  %v136_v54 = vld [vmem:[%s7625_s0 + $0x8] sm:$0xff]  ;;  %vm2550_vm0 = vcmask 130048  }
  0x67   :  { %v216_v1 = vld [vmem:[#allocation2 + $0x1e0] sm:$0xff]  ;;  %v138_v59 = vld [vmem:[%s7625_s0 + $0x18] sm:$0xff]  ;;  %v145_v60 = vld [vmem:[%s7625_s0 + $0x50] sm:$0xff] }
  0x68   :  { %v340_v2 = vld [vmem:[#allocation2 + $0x5c0] sm:$0xff]  ;;  %v5930_v3 = vcombine.high %v212_v0, %v216_v1  ;;  %v5929_v5 = vcombine.low %v212_v0, %v216_v1  ;;  %v7425_v63 = vpack.c.bf16 %v145_v60, %v138_v59 }
  0x69   :  { %v344_v4 = vld [vmem:[#allocation2 + $0x5e0] sm:$0xff] }
  0x6a   :  { %v204_v6 = vld [vmem:[#allocation2 + $0x180] sm:$0xff]  ;;  %v6058_v8 = vcombine.high %v340_v2, %v344_v4  ;;  %v6057_v9 = vcombine.low %v340_v2, %v344_v4  ;;  %2554 = vmatprep.subr.bf16.mxu0 %v5930_v3  ;;  %2629 = vmatprep.mubr.bf16.mxu1 %v7425_v63 }
  0x6b   :  { %v208_v7 = vld [vmem:[#allocation2 + $0x1a0] sm:$0xff]  ;;  %2555 = vmatpush1.bf16.msra.mxu0 %v5929_v5 }
  0x6c   :  { %v5922_v10 = vcombine.high %v204_v6, %v208_v7  ;;  %v332_v11 = vld [vmem:[#allocation2 + $0x580] sm:$0xff]  ;;  %2597 = vmatprep.subr.bf16.mxu1 %v6058_v8  ;;  %v5921_v18 = vcombine.low %v204_v6, %v208_v7 }
  0x6d   :  { %v336_v12 = vld [vmem:[#allocation2 + $0x5a0] sm:$0xff]  ;;  %2598 = vmatpush1.bf16.msra.mxu1 %v6057_v9 }
  0x6e   :  { %v196_v13 = vld [vmem:[#allocation2 + $0x140] sm:$0xff]  ;;  %v6050_v14 = vcombine.high %v332_v11, %v336_v12  ;;  %2556 = vmatprep.subr.bf16.mxu0 %v5922_v10  ;;  %v6049_v19 = vcombine.low %v332_v11, %v336_v12 }
  0x6f   :  { %v200_v15 = vld [vmem:[#allocation2 + $0x160] sm:$0xff]  ;;  %2557 = vmatpush1.bf16.msra.mxu0 %v5921_v18 }
  0x70   :  { %v324_v16 = vld [vmem:[#allocation2 + $0x540] sm:$0xff]  ;;  %v5914_v20 = vcombine.high %v196_v13, %v200_v15  ;;  %2599 = vmatprep.subr.bf16.mxu1 %v6050_v14  ;;  %v5913_v26 = vcombine.low %v196_v13, %v200_v15 }
  0x71   :  { %v328_v17 = vld [vmem:[#allocation2 + $0x560] sm:$0xff]  ;;  %2600 = vmatpush1.bf16.msra.mxu1 %v6049_v19 }
  0x72   :  { %v6042_v21 = vcombine.high %v324_v16, %v328_v17  ;;  %v188_v22 = vld [vmem:[#allocation2 + $0x100] sm:$0xff]  ;;  %2558 = vmatprep.subr.bf16.mxu0 %v5914_v20  ;;  %v6041_v27 = vcombine.low %v324_v16, %v328_v17 }
  0x73   :  { %v192_v23 = vld [vmem:[#allocation2 + $0x120] sm:$0xff]  ;;  %2559 = vmatpush1.bf16.msra.mxu0 %v5913_v26 }
  0x74   :  { %v316_v24 = vld [vmem:[#allocation2 + $0x500] sm:$0xff]  ;;  %v5906_v28 = vcombine.high %v188_v22, %v192_v23  ;;  %2601 = vmatprep.subr.bf16.mxu1 %v6042_v21  ;;  %v5905_v34 = vcombine.low %v188_v22, %v192_v23 }
  0x75   :  { %v320_v25 = vld [vmem:[#allocation2 + $0x520] sm:$0xff]  ;;  %2602 = vmatpush1.bf16.msra.mxu1 %v6041_v27 }
  0x76   :  { %v6034_v29 = vcombine.high %v316_v24, %v320_v25  ;;  %v180_v30 = vld [vmem:[#allocation2 + $0xc0] sm:$0xff]  ;;  %2560 = vmatprep.subr.bf16.mxu0 %v5906_v28  ;;  %v6033_v35 = vcombine.low %v316_v24, %v320_v25 }
  0x77   :  { %v184_v31 = vld [vmem:[#allocation2 + $0xe0] sm:$0xff]  ;;  %2561 = vmatpush1.bf16.msra.mxu0 %v5905_v34 }
  0x78   :  { %v308_v32 = vld [vmem:[#allocation2 + $0x4c0] sm:$0xff]  ;;  %v5898_v36 = vcombine.high %v180_v30, %v184_v31  ;;  %2603 = vmatprep.subr.bf16.mxu1 %v6034_v29  ;;  %v5897_v42 = vcombine.low %v180_v30, %v184_v31 }
  0x79   :  { %v312_v33 = vld [vmem:[#allocation2 + $0x4e0] sm:$0xff]  ;;  %2604 = vmatpush1.bf16.msra.mxu1 %v6033_v35 }
  0x7a   :  { %v6026_v37 = vcombine.high %v308_v32, %v312_v33  ;;  %v172_v38 = vld [vmem:[#allocation2 + $0x80] sm:$0xff]  ;;  %2562 = vmatprep.subr.bf16.mxu0 %v5898_v36  ;;  %v6025_v43 = vcombine.low %v308_v32, %v312_v33 }
  0x7b   :  { %v176_v39 = vld [vmem:[#allocation2 + $0xa0] sm:$0xff]  ;;  %2563 = vmatpush1.bf16.msra.mxu0 %v5897_v42 }
  0x7c   :  { %v300_v40 = vld [vmem:[#allocation2 + $0x480] sm:$0xff]  ;;  %v5890_v44 = vcombine.high %v172_v38, %v176_v39  ;;  %2605 = vmatprep.subr.bf16.mxu1 %v6026_v37  ;;  %v5889_v50 = vcombine.low %v172_v38, %v176_v39 }
  0x7d   :  { %v304_v41 = vld [vmem:[#allocation2 + $0x4a0] sm:$0xff]  ;;  %2606 = vmatpush1.bf16.msra.mxu1 %v6025_v43 }
  0x7e   :  { %v6018_v45 = vcombine.high %v300_v40, %v304_v41  ;;  %v164_v46 = vld [vmem:[#allocation2 + $0x40] sm:$0xff]  ;;  %2564 = vmatprep.subr.bf16.mxu0 %v5890_v44  ;;  %v6017_v51 = vcombine.low %v300_v40, %v304_v41 }
  0x7f   :  { %v168_v47 = vld [vmem:[#allocation2 + $0x60] sm:$0xff]  ;;  %2565 = vmatpush1.bf16.msra.mxu0 %v5889_v50 }
  0x80   :  { %v292_v48 = vld [vmem:[#allocation2 + $0x440] sm:$0xff]  ;;  %v5882_v52 = vcombine.high %v164_v46, %v168_v47  ;;  %2607 = vmatprep.subr.bf16.mxu1 %v6018_v45  ;;  %v5881_v0 = vcombine.low %v164_v46, %v168_v47 }
  0x81   :  { %v296_v49 = vld [vmem:[#allocation2 + $0x460] sm:$0xff]  ;;  %2608 = vmatpush1.bf16.msra.mxu1 %v6017_v51 }
  0x82   :  { %v156_v53 = vld [vmem:[#allocation2] sm:$0xff]  ;;  %v6010_v56 = vcombine.high %v292_v48, %v296_v49  ;;  %2566 = vmatprep.subr.bf16.mxu0 %v5882_v52  ;;  %v6009_v1 = vcombine.low %v292_v48, %v296_v49 }
  0x83   :  { %v143_v55 = vld [vmem:[%s7625_s0 + $0x40] sm:$0xff]  ;;  %2567 = vmatpush1.bf16.msra.mxu0 %v5881_v0 }
  0x84   :  { %v160_v57 = vld [vmem:[#allocation2 + $0x20] sm:$0xff]  ;;  %v7417_v58 = vpack.c.bf16 %v143_v55, %v136_v54  ;;  %2609 = vmatprep.subr.bf16.mxu1 %v6010_v56 }
  0x85   :  { %v284_v61 = vld [vmem:[#allocation2 + $0x400] sm:$0xff]  ;;  %v5874_v2 = vcombine.high %v156_v53, %v160_v57  ;;  %v5873_v8 = vcombine.low %v156_v53, %v160_v57  ;;  %2610 = vmatpush1.bf16.msra.mxu1 %v6009_v1 }
  0x86   :  { %v288_v62 = vld [vmem:[#allocation2 + $0x420] sm:$0xff]  ;;  %2586 = vmatprep.mubr.bf16.mxu0 %v7417_v58 }
  0x87   :  { %v6002_v3 = vcombine.high %v284_v61, %v288_v62  ;;  %v276_v4 = vld [vmem:[#allocation2 + $0x3c0] sm:$0xff]  ;;  %2568 = vmatprep.subr.bf16.mxu0 %v5874_v2  ;;  %v6001_v9 = vcombine.low %v284_v61, %v288_v62 }
  0x88   :  { %v280_v5 = vld [vmem:[#allocation2 + $0x3e0] sm:$0xff]  ;;  %2569 = vmatpush1.bf16.msra.mxu0 %v5873_v8 }
  0x89   :  { %v404_v6 = vld [vmem:[#allocation2 + $0x7c0] sm:$0xff]  ;;  %v5994_v10 = vcombine.high %v276_v4, %v280_v5  ;;  %2611 = vmatprep.subr.bf16.mxu1 %v6002_v3  ;;  %v5993_v16 = vcombine.low %v276_v4, %v280_v5 }
  0x8a   :  { %v408_v7 = vld [vmem:[#allocation2 + $0x7e0] sm:$0xff]  ;;  %2612 = vmatpush1.bf16.msra.mxu1 %v6001_v9 }
  0x8b   :  { %v6122_v11 = vcombine.high %v404_v6, %v408_v7  ;;  %v268_v12 = vld [vmem:[#allocation2 + $0x380] sm:$0xff]  ;;  %2570 = vmatprep.subr.bf16.mxu0 %v5994_v10  ;;  %v6121_v17 = vcombine.low %v404_v6, %v408_v7 }
  0x8c   :  { %v272_v13 = vld [vmem:[#allocation2 + $0x3a0] sm:$0xff]  ;;  %2571 = vmatpush2.bf16.msra.mxu0 %v5993_v16 }
  0x8d   :  { %v396_v14 = vld [vmem:[#allocation2 + $0x780] sm:$0xff]  ;;  %v5986_v18 = vcombine.high %v268_v12, %v272_v13  ;;  %2613 = vmatprep.subr.bf16.mxu1 %v6122_v11  ;;  %v5985_v24 = vcombine.low %v268_v12, %v272_v13  ;;  %v142_v12 = vld [vmem:[%s7625_s0 + $0x38] sm:$0xff] }
  0x8e   :  { %v400_v15 = vld [vmem:[#allocation2 + $0x7a0] sm:$0xff]  ;;  %2614 = vmatpush2.bf16.msra.mxu1 %v6121_v17 }
  0x8f   :  { %v6114_v19 = vcombine.high %v396_v14, %v400_v15  ;;  %v260_v20 = vld [vmem:[#allocation2 + $0x340] sm:$0xff]  ;;  %2572 = vmatprep.subr.bf16.mxu0 %v5986_v18  ;;  %v6113_v25 = vcombine.low %v396_v14, %v400_v15  ;;  %v137_v14 = vld [vmem:[%s7625_s0 + $0x10] sm:$0xff]  ;;  %v144_v15 = vld [vmem:[%s7625_s0 + $0x48] sm:$0xff] }
  0x90   :  { %v264_v21 = vld [vmem:[#allocation2 + $0x360] sm:$0xff]  ;;  %2573 = vmatpush2.bf16.msra.mxu0 %v5985_v24 }
  0x91   :  { %v388_v22 = vld [vmem:[#allocation2 + $0x740] sm:$0xff]  ;;  %v5978_v26 = vcombine.high %v260_v20, %v264_v21  ;;  %2615 = vmatprep.subr.bf16.mxu1 %v6114_v19  ;;  %v5977_v32 = vcombine.low %v260_v20, %v264_v21  ;;  %v213_v21 = vld [vmem:[#allocation2 + $0x1c8] sm:$0xff] }
  0x92   :  { %v392_v23 = vld [vmem:[#allocation2 + $0x760] sm:$0xff]  ;;  %2616 = vmatpush2.bf16.msra.mxu1 %v6113_v25  ;;  %v140_v25 = vld [vmem:[%s7625_s0 + $0x28] sm:$0xff] }
  0x93   :  { %v6106_v27 = vcombine.high %v388_v22, %v392_v23  ;;  %v252_v28 = vld [vmem:[#allocation2 + $0x300] sm:$0xff]  ;;  %2574 = vmatprep.subr.bf16.mxu0 %v5978_v26  ;;  %v6105_v33 = vcombine.low %v388_v22, %v392_v23  ;;  %v217_v22 = vld [vmem:[#allocation2 + $0x1e8] sm:$0xff]  ;;  %v7443_v23 = vpack.c.bf16 %v144_v15, %v137_v14 }
  0x94   :  { %v256_v29 = vld [vmem:[#allocation2 + $0x320] sm:$0xff]  ;;  %2575 = vmatpush2.bf16.msra.mxu0 %v5977_v32 }
  0x95   :  { %v380_v30 = vld [vmem:[#allocation2 + $0x700] sm:$0xff]  ;;  %v5970_v34 = vcombine.high %v252_v28, %v256_v29  ;;  %2617 = vmatprep.subr.bf16.mxu1 %v6106_v27  ;;  %v5969_v40 = vcombine.low %v252_v28, %v256_v29  ;;  %v5932_v29 = vcombine.high %v213_v21, %v217_v22 }
  0x96   :  { %v384_v31 = vld [vmem:[#allocation2 + $0x720] sm:$0xff]  ;;  %2618 = vmatpush2.bf16.msra.mxu1 %v6105_v33 }
  0x97   :  { %v6098_v35 = vcombine.high %v380_v30, %v384_v31  ;;  %v244_v36 = vld [vmem:[#allocation2 + $0x2c0] sm:$0xff]  ;;  %2576 = vmatprep.subr.bf16.mxu0 %v5970_v34  ;;  %v6097_v41 = vcombine.low %v380_v30, %v384_v31  ;;  %v141_v34 = vld [vmem:[%s7625_s0 + $0x30] sm:$0xff] }
  0x98   :  { %v248_v37 = vld [vmem:[#allocation2 + $0x2e0] sm:$0xff]  ;;  %2577 = vmatpush2.bf16.msra.mxu0 %v5969_v40 }
  0x99   :  { %v372_v38 = vld [vmem:[#allocation2 + $0x6c0] sm:$0xff]  ;;  %v5962_v42 = vcombine.high %v244_v36, %v248_v37  ;;  %2619 = vmatprep.subr.bf16.mxu1 %v6098_v35  ;;  %v5961_v48 = vcombine.low %v244_v36, %v248_v37  ;;  %v148_v36 = vld [vmem:[%s7625_s0 + $0x68] sm:$0xff] }
  0x9a   :  { %v376_v39 = vld [vmem:[#allocation2 + $0x6e0] sm:$0xff]  ;;  %2620 = vmatpush2.bf16.msra.mxu1 %v6097_v41  ;;  %v205_v37 = vld [vmem:[#allocation2 + $0x188] sm:$0xff] }
  0x9b   :  { %v6090_v43 = vcombine.high %v372_v38, %v376_v39  ;;  %v236_v44 = vld [vmem:[#allocation2 + $0x280] sm:$0xff]  ;;  %2578 = vmatprep.subr.bf16.mxu0 %v5962_v42  ;;  %v6089_v49 = vcombine.low %v372_v38, %v376_v39  ;;  %v209_v38 = vld [vmem:[#allocation2 + $0x1a8] sm:$0xff]  ;;  %v7336_v39 = vmov 0  }
  0x9c   :  { %v240_v45 = vld [vmem:[#allocation2 + $0x2a0] sm:$0xff]  ;;  %2579 = vmatpush2.bf16.msra.mxu0 %v5961_v48  ;;  %v5924_v48 = vcombine.high %v205_v37, %v209_v38 }
  0x9d   :  { %v364_v46 = vld [vmem:[#allocation2 + $0x680] sm:$0xff]  ;;  %v5954_v50 = vcombine.high %v236_v44, %v240_v45  ;;  %2621 = vmatprep.subr.bf16.mxu1 %v6090_v43  ;;  %v5953_v56 = vcombine.low %v236_v44, %v240_v45  ;;  %v7463_v43 = vpack.c.bf16 %v148_v36, %v141_v34  ;;  %v5931_v44 = vcombine.low %v213_v21, %v217_v22  ;;  %v169_v21 = vld [vmem:[#allocation2 + $0x68] sm:$0xff] }
  0x9e   :  { %v368_v47 = vld [vmem:[#allocation2 + $0x6a0] sm:$0xff]  ;;  %2622 = vmatpush2.bf16.msra.mxu1 %v6089_v49 }
  0x9f   :  { %v6082_v51 = vcombine.high %v364_v46, %v368_v47  ;;  %v228_v52 = vld [vmem:[#allocation2 + $0x240] sm:$0xff]  ;;  %2580 = vmatprep.subr.bf16.mxu0 %v5954_v50  ;;  %v6081_v57 = vcombine.low %v364_v46, %v368_v47  ;;  %v197_v46 = vld [vmem:[#allocation2 + $0x148] sm:$0xff] }
  0xa0   :  { %v232_v53 = vld [vmem:[#allocation2 + $0x260] sm:$0xff]  ;;  %2581 = vmatpush2.bf16.msra.mxu0 %v5953_v56  ;;  %v201_v47 = vld [vmem:[#allocation2 + $0x168] sm:$0xff] }
  0xa1   :  { %v356_v54 = vld [vmem:[#allocation2 + $0x640] sm:$0xff]  ;;  %v5946_v59 = vcombine.high %v228_v52, %v232_v53  ;;  %2623 = vmatprep.subr.bf16.mxu1 %v6082_v51  ;;  %v5945_v2 = vcombine.low %v228_v52, %v232_v53  ;;  %v5923_v52 = vcombine.low %v205_v37, %v209_v38  ;;  %v277_v38 = vld [vmem:[#allocation2 + $0x3c8] sm:$0xff] }
  0xa2   :  { %v360_v55 = vld [vmem:[#allocation2 + $0x660] sm:$0xff]  ;;  %2624 = vmatpush2.bf16.msra.mxu1 %v6081_v57 }
  0xa3   :  { %v6074_v60 = vcombine.high %v356_v54, %v360_v55  ;;  %v220_v61 = vld [vmem:[#allocation2 + $0x200] sm:$0xff]  ;;  %2582 = vmatprep.subr.bf16.mxu0 %v5946_v59  ;;  %v6073_v3 = vcombine.low %v356_v54, %v360_v55  ;;  %v189_v54 = vld [vmem:[#allocation2 + $0x108] sm:$0xff]  ;;  %v5916_v59 = vcombine.high %v197_v46, %v201_v47 }
  0xa4   :  { %v224_v62 = vld [vmem:[#allocation2 + $0x220] sm:$0xff]  ;;  %2583 = vmatpush2.bf16.msra.mxu0 %v5945_v2  ;;  %v193_v55 = vld [vmem:[#allocation2 + $0x128] sm:$0xff] }
  0xa5   :  { %v348_v0 = vld [vmem:[#allocation2 + $0x600] sm:$0xff]  ;;  %v5938_v4 = vcombine.high %v220_v61, %v224_v62  ;;  %2625 = vmatprep.subr.bf16.mxu1 %v6074_v60  ;;  %v5937_v10 = vcombine.low %v220_v61, %v224_v62  ;;  %v5908_v2 = vcombine.high %v189_v54, %v193_v55 }
  0xa6   :  { %v352_v1 = vld [vmem:[#allocation2 + $0x620] sm:$0xff]  ;;  %2626 = vmatpush2.bf16.msra.mxu1 %v6073_v3  ;;  %v181_v3 = vld [vmem:[#allocation2 + $0xc8] sm:$0xff] }
  0xa7   :  { %v6066_v5 = vcombine.high %v348_v0, %v352_v1  ;;  %v468_v6 = vld [vmem:[#allocation2 + $0x9c0] sm:$0xff]  ;;  %2584 = vmatprep.subr.bf16.mxu0 %v5938_v4  ;;  %v6065_v13 = vcombine.low %v348_v0, %v352_v1  ;;  %v5915_v0 = vcombine.low %v197_v46, %v201_v47  ;;  %v185_v4 = vld [vmem:[#allocation2 + $0xe8] sm:$0xff] }
  0xa8   :  { %v472_v7 = vld [vmem:[#allocation2 + $0x9e0] sm:$0xff]  ;;  %2585 = vmatpush2.bf16.msra.mxu0 %v5937_v10  ;;  %v5900_v10 = vcombine.high %v181_v3, %v185_v4  ;;  %v5899_v14 = vcombine.low %v181_v3, %v185_v4  ;;  %v257_v3 = vld [vmem:[#allocation2 + $0x328] sm:$0xff] }
  0xa9   :  { %v540_v8 = vld [vmem:[#allocation2 + $0xc00] sm:$0xff]  ;;  %v6186_v16 = vcombine.high %v468_v6, %v472_v7  ;;  %2627 = vmatprep.subr.bf16.mxu1 %v6066_v5  ;;  %v6185_v24 = vcombine.low %v468_v6, %v472_v7  ;;  %v5907_v6 = vcombine.low %v189_v54, %v193_v55 }
  0xaa   :  { %v544_v9 = vld [vmem:[#allocation2 + $0xc20] sm:$0xff]  ;;  %2628 = vmatpush2.bf16.msra.mxu1 %v6065_v13 }
  0xab   :  { %v135_v11 = vld [vmem:[%s7625_s0] sm:$0xff]  ;;  %v6258_v17 = vcombine.high %v540_v8, %v544_v9  ;;  %2640 = vmatprep.subr.bf16.mxu0 %v6186_v16  ;;  %v6257_v27 = vcombine.low %v540_v8, %v544_v9 }
  0xac   :  { %v460_v18 = vld [vmem:[#allocation2 + $0x980] sm:$0xff]  ;;  %v7441_v20 = vpack.c.bf16 %v142_v12, %v135_v11  ;;  %v173_v11 = vld [vmem:[#allocation2 + $0x88] sm:$0xff] }
  0xad   :  { %v464_v19 = vld [vmem:[#allocation2 + $0x9a0] sm:$0xff]  ;;  %2697 = vmatprep.subr.bf16.mxu1 %v6258_v17  ;;  %2630 = vmatmul.mubr.bf16.vlgmr.msra.gmra.mxu1 %v7443_v23  ;;  %v177_v12 = vld [vmem:[#allocation2 + $0xa8] sm:$0xff] }
  0xae   :  { %v147_v26 = vld [vmem:[%s7625_s0 + $0x60] sm:$0xff]  ;;  %v6178_v28 = vcombine.high %v460_v18, %v464_v19  ;;  %2587 = vmatmul.mubr.bf16.vlgmr.msra.gmra.mxu0 %v7441_v20  ;;  %v6177_v33 = vcombine.low %v460_v18, %v464_v19  ;;  %2698 = vmatpush1.bf16.msra.mxu1 %v6257_v27  ;;  %v5892_v18 = vcombine.high %v173_v11, %v177_v12  ;;  %v165_v19 = vld [vmem:[#allocation2 + $0x48] sm:$0xff] }
  0xaf   :  { %v452_v30 = vld [vmem:[#allocation2 + $0x940] sm:$0xff]  ;;  %v7452_v32 = vpack.c.bf16 %v147_v26, %v140_v25  ;;  %2641 = vmatpush1.bf16.msra.mxu0 %v6185_v24  ;;  %2715 = vmatprep.mubr.bf16.mxu1 %v7336_v39  ;;  %v5891_v24 = vcombine.low %v173_v11, %v177_v12  ;;  %v249_v11 = vld [vmem:[#allocation2 + $0x2e8] sm:$0xff] }
  0xb0   :  { %v456_v31 = vld [vmem:[#allocation2 + $0x960] sm:$0xff]  ;;  %2642 = vmatprep.subr.bf16.mxu0 %v6178_v28  ;;  %2726 = vmatprep.subr.bf16.mxu1 %v5932_v29  ;;  %v5884_v28 = vcombine.high %v165_v19, %v169_v21  ;;  %v157_v29 = vld [vmem:[#allocation2 + $0x8] sm:$0xff] }
  0xb1   :  { %v6170_v35 = vcombine.high %v452_v30, %v456_v31  ;;  %v444_v40 = vld [vmem:[#allocation2 + $0x900] sm:$0xff]  ;;  %2672 = vmatprep.mubr.bf16.mxu0 %v7452_v32  ;;  %v6169_v42 = vcombine.low %v452_v30, %v456_v31  ;;  %v161_v30 = vld [vmem:[#allocation2 + $0x28] sm:$0xff] }
  0xb2   :  { %v448_v41 = vld [vmem:[#allocation2 + $0x920] sm:$0xff]  ;;  %v5876_v37 = vcombine.high %v157_v29, %v161_v30 }
  0xb3   :  { %2643 = vmatpush1.bf16.msra.mxu0 %v6177_v33  ;;  %v6162_v45 = vcombine.high %v444_v40, %v448_v41  ;;  %v436_v49 = vld [vmem:[#allocation2 + $0x8c0] sm:$0xff]  ;;  %v6161_v51 = vcombine.low %v444_v40, %v448_v41  ;;  %v5883_v33 = vcombine.low %v165_v19, %v169_v21  ;;  %v281_v40 = vld [vmem:[#allocation2 + $0x3e8] sm:$0xff] }
  0xb4   :  { %2644 = vmatprep.subr.bf16.mxu0 %v6170_v35  ;;  %v440_v50 = vld [vmem:[#allocation2 + $0x8e0] sm:$0xff]  ;;  %v5996_v47 = vcombine.high %v277_v38, %v281_v40  ;;  %v241_v19 = vld [vmem:[#allocation2 + $0x2a8] sm:$0xff] }
  0xb5   :  { %6265 = vmatmul.mubr.msk.bf16.vlgmr.msra.gmra.mxu1 %vm2550_vm0, %v7463_v43  ;;  %v6154_v53 = vcombine.high %v436_v49, %v440_v50  ;;  %v428_v56 = vld [vmem:[#allocation2 + $0x880] sm:$0xff]  ;;  %v6153_v60 = vcombine.low %v436_v49, %v440_v50  ;;  %v273_v49 = vld [vmem:[#allocation2 + $0x3a8] sm:$0xff] }
  0xb6   :  { %2727 = vmatpush1.bf16.msra.mxu1 %v5931_v44  ;;  %v432_v57 = vld [vmem:[#allocation2 + $0x8a0] sm:$0xff]  ;;  %2758 = vmatprep.mubr.bf16.mxu1 %v7417_v58 }
  0xb7   :  { %2645 = vmatpush1.bf16.msra.mxu0 %v6169_v42  ;;  %2728 = vmatprep.subr.bf16.mxu1 %v5924_v48  ;;  %v420_v61 = vld [vmem:[#allocation2 + $0x840] sm:$0xff]  ;;  %v6146_v1 = vcombine.high %v428_v56, %v432_v57  ;;  %v6145_v5 = vcombine.low %v428_v56, %v432_v57  ;;  %v5875_v42 = vcombine.low %v157_v29, %v161_v30  ;;  %v269_v48 = vld [vmem:[#allocation2 + $0x388] sm:$0xff] }
  0xb8   :  { %2646 = vmatprep.subr.bf16.mxu0 %v6162_v45  ;;  %v424_v62 = vld [vmem:[#allocation2 + $0x860] sm:$0xff]  ;;  %v5988_v55 = vcombine.high %v269_v48, %v273_v49  ;;  %v261_v56 = vld [vmem:[#allocation2 + $0x348] sm:$0xff] }
  0xb9   :  { %v6138_v7 = vcombine.high %v420_v61, %v424_v62  ;;  %v412_v8 = vld [vmem:[#allocation2 + $0x800] sm:$0xff]  ;;  %v6137_v13 = vcombine.low %v420_v61, %v424_v62  ;;  %v265_v57 = vld [vmem:[#allocation2 + $0x368] sm:$0xff] }
  0xba   :  { %2729 = vmatpush1.bf16.msra.mxu1 %v5923_v52  ;;  %v416_v9 = vld [vmem:[#allocation2 + $0x820] sm:$0xff] }
  0xbb   :  { %2647 = vmatpush1.bf16.msra.mxu0 %v6161_v51  ;;  %2730 = vmatprep.subr.bf16.mxu1 %v5916_v59  ;;  %v6130_v15 = vcombine.high %v412_v8, %v416_v9  ;;  %v532_v16 = vld [vmem:[#allocation2 + $0xbc0] sm:$0xff]  ;;  %v6129_v22 = vcombine.low %v412_v8, %v416_v9  ;;  %v5995_v51 = vcombine.low %v277_v38, %v281_v40 }
  0xbc   :  { %2648 = vmatprep.subr.bf16.mxu0 %v6154_v53  ;;  %v536_v17 = vld [vmem:[#allocation2 + $0xbe0] sm:$0xff] }
  0xbd   :  { %v6250_v25 = vcombine.high %v532_v16, %v536_v17  ;;  %v524_v26 = vld [vmem:[#allocation2 + $0xb80] sm:$0xff]  ;;  %v6249_v31 = vcombine.low %v532_v16, %v536_v17 }
  0xbe   :  { %2731 = vmatpush1.bf16.msra.mxu1 %v5915_v0  ;;  %v528_v27 = vld [vmem:[#allocation2 + $0xba0] sm:$0xff] }
  0xbf   :  { %2649 = vmatpush1.bf16.msra.mxu0 %v6153_v60  ;;  %2732 = vmatprep.subr.bf16.mxu1 %v5908_v2  ;;  %v6242_v34 = vcombine.high %v524_v26, %v528_v27  ;;  %v516_v35 = vld [vmem:[#allocation2 + $0xb40] sm:$0xff]  ;;  %v6241_v41 = vcombine.low %v524_v26, %v528_v27  ;;  %v5987_v60 = vcombine.low %v269_v48, %v273_v49  ;;  %v253_v2 = vld [vmem:[#allocation2 + $0x308] sm:$0xff] }
  0xc0   :  { %2650 = vmatprep.subr.bf16.mxu0 %v6146_v1  ;;  %v520_v36 = vld [vmem:[#allocation2 + $0xb60] sm:$0xff]  ;;  %v5980_v1 = vcombine.high %v261_v56, %v265_v57  ;;  %v5972_v9 = vcombine.high %v253_v2, %v257_v3  ;;  %v233_v26 = vld [vmem:[#allocation2 + $0x268] sm:$0xff] }
  0xc1   :  { %v6234_v44 = vcombine.high %v516_v35, %v520_v36  ;;  %v508_v45 = vld [vmem:[#allocation2 + $0xb00] sm:$0xff]  ;;  %v6233_v50 = vcombine.low %v516_v35, %v520_v36  ;;  %v341_v27 = vld [vmem:[#allocation2 + $0x5c8] sm:$0xff] }
  0xc2   :  { %2733 = vmatpush1.bf16.msra.mxu1 %v5907_v6  ;;  %v512_v46 = vld [vmem:[#allocation2 + $0xb20] sm:$0xff]  ;;  %v333_v36 = vld [vmem:[#allocation2 + $0x588] sm:$0xff] }
  0xc3   :  { %2651 = vmatpush1.bf16.msra.mxu0 %v6145_v5  ;;  %2734 = vmatprep.subr.bf16.mxu1 %v5900_v10  ;;  %v6226_v52 = vcombine.high %v508_v45, %v512_v46  ;;  %v500_v53 = vld [vmem:[#allocation2 + $0xac0] sm:$0xff]  ;;  %v6225_v59 = vcombine.low %v508_v45, %v512_v46  ;;  %v5979_v5 = vcombine.low %v261_v56, %v265_v57  ;;  %v245_v10 = vld [vmem:[#allocation2 + $0x2c8] sm:$0xff] }
  0xc4   :  { %2652 = vmatprep.subr.bf16.mxu0 %v6138_v7  ;;  %v504_v54 = vld [vmem:[#allocation2 + $0xae0] sm:$0xff]  ;;  %v5964_v17 = vcombine.high %v245_v10, %v249_v11  ;;  %v329_v48 = vld [vmem:[#allocation2 + $0x568] sm:$0xff] }
  0xc5   :  { %v6218_v61 = vcombine.high %v500_v53, %v504_v54  ;;  %v492_v62 = vld [vmem:[#allocation2 + $0xa80] sm:$0xff]  ;;  %v6217_v4 = vcombine.low %v500_v53, %v504_v54  ;;  %v321_v56 = vld [vmem:[#allocation2 + $0x528] sm:$0xff] }
  0xc6   :  { %2735 = vmatpush1.bf16.msra.mxu1 %v5899_v14  ;;  %v496_v0 = vld [vmem:[#allocation2 + $0xaa0] sm:$0xff] }
  0xc7   :  { %2653 = vmatpush1.bf16.msra.mxu0 %v6137_v13  ;;  %2736 = vmatprep.subr.bf16.mxu1 %v5892_v18  ;;  %v6210_v6 = vcombine.high %v492_v62, %v496_v0  ;;  %v484_v7 = vld [vmem:[#allocation2 + $0xa40] sm:$0xff]  ;;  %v6209_v12 = vcombine.low %v492_v62, %v496_v0  ;;  %v5971_v13 = vcombine.low %v253_v2, %v257_v3  ;;  %v237_v18 = vld [vmem:[#allocation2 + $0x288] sm:$0xff] }
  0xc8   :  { %2654 = vmatprep.subr.bf16.mxu0 %v6130_v15  ;;  %v488_v8 = vld [vmem:[#allocation2 + $0xa60] sm:$0xff]  ;;  %v5956_v29 = vcombine.high %v237_v18, %v241_v19  ;;  %v313_v2 = vld [vmem:[#allocation2 + $0x4e8] sm:$0xff] }
  0xc9   :  { %v6202_v14 = vcombine.high %v484_v7, %v488_v8  ;;  %v476_v15 = vld [vmem:[#allocation2 + $0xa00] sm:$0xff]  ;;  %v6201_v21 = vcombine.low %v484_v7, %v488_v8 }
  0xca   :  { %2737 = vmatpush1.bf16.msra.mxu1 %v5891_v24  ;;  %v480_v16 = vld [vmem:[#allocation2 + $0xa20] sm:$0xff] }
  0xcb   :  { %2655 = vmatpush1.bf16.msra.mxu0 %v6129_v22  ;;  %2738 = vmatprep.subr.bf16.mxu1 %v5884_v28  ;;  %v5963_v22 = vcombine.low %v245_v10, %v249_v11  ;;  %v6194_v24 = vcombine.high %v476_v15, %v480_v16  ;;  %v345_v28 = vld [vmem:[#allocation2 + $0x5e8] sm:$0xff]  ;;  %v139_v30 = vld [vmem:[%s7625_s0 + $0x20] sm:$0xff] }
  0xcc   :  { %2656 = vmatprep.subr.bf16.mxu0 %v6250_v25  ;;  %v229_v25 = vld [vmem:[#allocation2 + $0x248] sm:$0xff]  ;;  %v6060_v35 = vcombine.high %v341_v27, %v345_v28 }
  0xcd   :  { %v5948_v38 = vcombine.high %v229_v25, %v233_v26  ;;  %v5947_v45 = vcombine.low %v229_v25, %v233_v26  ;;  %v305_v10 = vld [vmem:[#allocation2 + $0x4a8] sm:$0xff] }
  0xce   :  { %2739 = vmatpush1.bf16.msra.mxu1 %v5883_v33  ;;  %v6193_v33 = vcombine.low %v476_v15, %v480_v16  ;;  %v293_v15 = vld [vmem:[#allocation2 + $0x448] sm:$0xff] }
  0xcf   :  { %2657 = vmatpush2.bf16.msra.mxu0 %v6249_v31  ;;  %2740 = vmatprep.subr.bf16.mxu1 %v5876_v37  ;;  %v146_v31 = vld [vmem:[%s7625_s0 + $0x58] sm:$0xff]  ;;  %v337_v37 = vld [vmem:[#allocation2 + $0x5a8] sm:$0xff] }
  0xd0   :  { %2658 = vmatprep.subr.bf16.mxu0 %v6242_v34  ;;  %v5955_v34 = vcombine.low %v237_v18, %v241_v19  ;;  %v7474_v40 = vpack.c.bf16 %v146_v31, %v139_v30  ;;  %v6052_v46 = vcombine.high %v333_v36, %v337_v37  ;;  %v297_v16 = vld [vmem:[#allocation2 + $0x468] sm:$0xff] }
  0xd1   :  { %v6012_v26 = vcombine.high %v293_v15, %v297_v16  ;;  %v289_v30 = vld [vmem:[#allocation2 + $0x428] sm:$0xff] }
  0xd2   :  { %2741 = vmatpush1.bf16.msra.mxu1 %v5875_v42  ;;  %v225_v42 = vld [vmem:[#allocation2 + $0x228] sm:$0xff] }
  0xd3   :  { %2659 = vmatpush2.bf16.msra.mxu0 %v6241_v41  ;;  %2742 = vmatprep.subr.bf16.mxu1 %v5996_v47  ;;  %v221_v41 = vld [vmem:[#allocation2 + $0x208] sm:$0xff] }
  0xd4   :  { %2660 = vmatprep.subr.bf16.mxu0 %v6234_v44  ;;  %v6059_v44 = vcombine.low %v341_v27, %v345_v28  ;;  %v325_v47 = vld [vmem:[#allocation2 + $0x548] sm:$0xff]  ;;  %v5940_v49 = vcombine.high %v221_v41, %v225_v42  ;;  %v5939_v53 = vcombine.low %v221_v41, %v225_v42 }
  0xd5   :  { %v6044_v54 = vcombine.high %v325_v47, %v329_v48  ;;  %v429_v27 = vld [vmem:[#allocation2 + $0x888] sm:$0xff] }
  0xd6   :  { %2743 = vmatpush2.bf16.msra.mxu1 %v5995_v51  ;;  %v473_v51 = vld [vmem:[#allocation2 + $0x9e8] sm:$0xff] }
  0xd7   :  { %2661 = vmatpush2.bf16.msra.mxu0 %v6233_v50  ;;  %2744 = vmatprep.subr.bf16.mxu1 %v5988_v55  ;;  %v469_v50 = vld [vmem:[#allocation2 + $0x9c8] sm:$0xff] }
  0xd8   :  { %2662 = vmatprep.subr.bf16.mxu0 %v6226_v52  ;;  %v6051_v52 = vcombine.low %v333_v36, %v337_v37  ;;  %v317_v55 = vld [vmem:[#allocation2 + $0x508] sm:$0xff]  ;;  %v6188_v57 = vcombine.high %v469_v50, %v473_v51  ;;  %v6187_v62 = vcombine.low %v469_v50, %v473_v51 }
  0xd9   :  { %v6036_v0 = vcombine.high %v317_v55, %v321_v56  ;;  %v433_v28 = vld [vmem:[#allocation2 + $0x8a8] sm:$0xff] }
  0xda   :  { %2745 = vmatpush2.bf16.msra.mxu1 %v5987_v60  ;;  %v465_v60 = vld [vmem:[#allocation2 + $0x9a8] sm:$0xff]  ;;  %v6148_v42 = vcombine.high %v429_v27, %v433_v28 }
  0xdb   :  { %2663 = vmatpush2.bf16.msra.mxu0 %v6225_v59  ;;  %2746 = vmatprep.subr.bf16.mxu1 %v5980_v1  ;;  %v461_v59 = vld [vmem:[#allocation2 + $0x988] sm:$0xff] }
  0xdc   :  { %2664 = vmatprep.subr.bf16.mxu0 %v6218_v61  ;;  %v6043_v61 = vcombine.low %v325_v47, %v329_v48  ;;  %v309_v1 = vld [vmem:[#allocation2 + $0x4c8] sm:$0xff]  ;;  %v6180_v3 = vcombine.high %v461_v59, %v465_v60  ;;  %v6179_v7 = vcombine.low %v461_v59, %v465_v60 }
  0xdd   :  { %v6028_v8 = vcombine.high %v309_v1, %v313_v2  ;;  %v425_v41 = vld [vmem:[#allocation2 + $0x868] sm:$0xff] }
  0xde   :  { %2747 = vmatpush2.bf16.msra.mxu1 %v5979_v5  ;;  %v457_v5 = vld [vmem:[#allocation2 + $0x968] sm:$0xff] }
  0xdf   :  { %2665 = vmatpush2.bf16.msra.mxu0 %v6217_v4  ;;  %2748 = vmatprep.subr.bf16.mxu1 %v5972_v9  ;;  %v453_v4 = vld [vmem:[#allocation2 + $0x948] sm:$0xff] }
  0xe0   :  { %2666 = vmatprep.subr.bf16.mxu0 %v6210_v6  ;;  %v6035_v6 = vcombine.low %v317_v55, %v321_v56  ;;  %v301_v9 = vld [vmem:[#allocation2 + $0x488] sm:$0xff]  ;;  %v6172_v11 = vcombine.high %v453_v4, %v457_v5 }
  0xe1   :  { %v6020_v18 = vcombine.high %v301_v9, %v305_v10  ;;  %v413_v47 = vld [vmem:[#allocation2 + $0x808] sm:$0xff] }
  0xe2   :  { %2749 = vmatpush2.bf16.msra.mxu1 %v5971_v13  ;;  %v449_v13 = vld [vmem:[#allocation2 + $0x928] sm:$0xff] }
  0xe3   :  { %2667 = vmatpush2.bf16.msra.mxu0 %v6209_v12  ;;  %2750 = vmatprep.subr.bf16.mxu1 %v5964_v17  ;;  %v445_v12 = vld [vmem:[#allocation2 + $0x908] sm:$0xff]  ;;  %v6171_v17 = vcombine.low %v453_v4, %v457_v5 }
  0xe4   :  { %2668 = vmatprep.subr.bf16.mxu0 %v6202_v14  ;;  %v6027_v14 = vcombine.low %v309_v1, %v313_v2  ;;  %v6164_v19 = vcombine.high %v445_v12, %v449_v13  ;;  %v6163_v25 = vcombine.low %v445_v12, %v449_v13  ;;  %v417_v48 = vld [vmem:[#allocation2 + $0x828] sm:$0xff] }
  0xe5   :  { %v401_v50 = vld [vmem:[#allocation2 + $0x7a8] sm:$0xff]  ;;  %v6132_v60 = vcombine.high %v413_v47, %v417_v48 }
  0xe6   :  { %2751 = vmatpush2.bf16.msra.mxu1 %v5963_v22  ;;  %v441_v22 = vld [vmem:[#allocation2 + $0x8e8] sm:$0xff] }
  0xe7   :  { %2669 = vmatpush2.bf16.msra.mxu0 %v6201_v21  ;;  %2752 = vmatprep.subr.bf16.mxu1 %v5956_v29  ;;  %v437_v21 = vld [vmem:[#allocation2 + $0x8c8] sm:$0xff] }
  0xe8   :  { %2670 = vmatprep.subr.bf16.mxu0 %v6194_v24  ;;  %v6019_v24 = vcombine.low %v301_v9, %v305_v10  ;;  %v285_v29 = vld [vmem:[#allocation2 + $0x408] sm:$0xff]  ;;  %v6156_v31 = vcombine.high %v437_v21, %v441_v22  ;;  %v6155_v36 = vcombine.low %v437_v21, %v441_v22 }
  0xe9   :  { %v6004_v37 = vcombine.high %v285_v29, %v289_v30  ;;  %v533_v55 = vld [vmem:[#allocation2 + $0xbc8] sm:$0xff] }
  0xea   :  { %2753 = vmatpush2.bf16.msra.mxu1 %v5955_v34  ;;  %v405_v34 = vld [vmem:[#allocation2 + $0x7c8] sm:$0xff] }
  0xeb   :  { %2671 = vmatpush2.bf16.msra.mxu0 %v6193_v33  ;;  %2754 = vmatprep.subr.bf16.mxu1 %v5948_v38  ;;  %v6011_v33 = vcombine.low %v293_v15, %v297_v16  ;;  %v421_v38 = vld [vmem:[#allocation2 + $0x848] sm:$0xff] }
  0xec   :  { %2769 = vmatprep.subr.bf16.mxu0 %v6060_v35  ;;  %v409_v35 = vld [vmem:[#allocation2 + $0x7e8] sm:$0xff]  ;;  %v6140_v51 = vcombine.high %v421_v38, %v425_v41 }
  0xed   :  { %v537_v56 = vld [vmem:[#allocation2 + $0xbe8] sm:$0xff] }
  0xee   :  { %2673 = vmatmul.mubr.bf16.vlgmr.msra.gmra.mxu0 %v7474_v40  ;;  %2755 = vmatpush2.bf16.msra.mxu1 %v5947_v45  ;;  %v6147_v45 = vcombine.low %v429_v27, %v433_v28  ;;  %v393_v59 = vld [vmem:[#allocation2 + $0x768] sm:$0xff]  ;;  %v6252_v5 = vcombine.high %v533_v55, %v537_v56 }
  0xef   :  { %2770 = vmatpush1.bf16.msra.mxu0 %v6059_v44  ;;  %2801 = vmatprep.mubr.bf16.mxu0 %v7425_v63  ;;  %v6003_v44 = vcombine.low %v285_v29, %v289_v30  ;;  %v525_v1 = vld [vmem:[#allocation2 + $0xb88] sm:$0xff] }
  0xf0   :  { %2771 = vmatprep.subr.bf16.mxu0 %v6052_v46  ;;  %2756 = vmatprep.subr.bf16.mxu1 %v5940_v49  ;;  %v6124_v46 = vcombine.high %v405_v34, %v409_v35  ;;  %v397_v49 = vld [vmem:[#allocation2 + $0x788] sm:$0xff] }
  0xf1   :  { %v529_v2 = vld [vmem:[#allocation2 + $0xba8] sm:$0xff] }
  0xf2   :  { %2757 = vmatpush2.bf16.msra.mxu1 %v5939_v53  ;;  %v6139_v53 = vcombine.low %v421_v38, %v425_v41  ;;  %v385_v4 = vld [vmem:[#allocation2 + $0x728] sm:$0xff]  ;;  %v6244_v13 = vcombine.high %v525_v1, %v529_v2  ;;  %v6243_v15 = vcombine.low %v525_v1, %v529_v2 }
  0xf3   :  { %2772 = vmatpush1.bf16.msra.mxu0 %v6051_v52  ;;  %2812 = vmatprep.subr.bf16.mxu1 %v6188_v57  ;;  %v6123_v52 = vcombine.low %v405_v34, %v409_v35  ;;  %v389_v57 = vld [vmem:[#allocation2 + $0x748] sm:$0xff] }
  0xf4   :  { %2773 = vmatprep.subr.bf16.mxu0 %v6044_v54  ;;  %v6116_v54 = vcombine.high %v397_v49, %v401_v50  ;;  %v517_v9 = vld [vmem:[#allocation2 + $0xb48] sm:$0xff] }
  0xf5   :  { %2759 = vmatmul.mubr.bf16.vlgmr.msra.gmra.mxu1 %v7441_v20  ;;  %v521_v10 = vld [vmem:[#allocation2 + $0xb68] sm:$0xff] }
  0xf6   :  { %2813 = vmatpush1.bf16.msra.mxu1 %v6187_v62  ;;  %2844 = vmatprep.mubr.bf16.mxu1 %v7452_v32  ;;  %v6131_v62 = vcombine.low %v413_v47, %v417_v48  ;;  %v377_v12 = vld [vmem:[#allocation2 + $0x6e8] sm:$0xff]  ;;  %v6236_v22 = vcombine.high %v517_v9, %v521_v10 }
  0xf7   :  { %2774 = vmatpush1.bf16.msra.mxu0 %v6043_v61  ;;  %2814 = vmatprep.subr.bf16.mxu1 %v6180_v3  ;;  %v6115_v61 = vcombine.low %v397_v49, %v401_v50  ;;  %v381_v3 = vld [vmem:[#allocation2 + $0x708] sm:$0xff]  ;;  %v214_v49 = vld [vmem:[#allocation2 + $0x1d0] sm:$0xff] }
  0xf8   :  { %2775 = vmatprep.subr.bf16.mxu0 %v6036_v0  ;;  %v6108_v0 = vcombine.high %v389_v57, %v393_v59  ;;  %v369_v21 = vld [vmem:[#allocation2 + $0x6a8] sm:$0xff]  ;;  %v218_v50 = vld [vmem:[#allocation2 + $0x1f0] sm:$0xff] }
  0xf9   :  { %v501_v27 = vld [vmem:[#allocation2 + $0xac8] sm:$0xff] }
  0xfa   :  { %2815 = vmatpush1.bf16.msra.mxu1 %v6179_v7  ;;  %v6251_v7 = vcombine.low %v533_v55, %v537_v56  ;;  %v505_v28 = vld [vmem:[#allocation2 + $0xae8] sm:$0xff] }
  0xfb   :  { %2776 = vmatpush1.bf16.msra.mxu0 %v6035_v6  ;;  %2816 = vmatprep.subr.bf16.mxu1 %v6172_v11  ;;  %v6107_v6 = vcombine.low %v389_v57, %v393_v59  ;;  %v373_v11 = vld [vmem:[#allocation2 + $0x6c8] sm:$0xff]  ;;  %v206_v57 = vld [vmem:[#allocation2 + $0x190] sm:$0xff] }
  0xfc   :  { %2777 = vmatprep.subr.bf16.mxu0 %v6028_v8  ;;  %v6100_v8 = vcombine.high %v381_v3, %v385_v4  ;;  %v6092_v16 = vcombine.high %v373_v11, %v377_v12  ;;  %v357_v29 = vld [vmem:[#allocation2 + $0x648] sm:$0xff]  ;;  %v210_v59 = vld [vmem:[#allocation2 + $0x1b0] sm:$0xff] }
  0xfd   :  { %v361_v30 = vld [vmem:[#allocation2 + $0x668] sm:$0xff]  ;;  %v5926_v2 = vcombine.high %v206_v57, %v210_v59 }
  0xfe   :  { %2817 = vmatpush1.bf16.msra.mxu1 %v6171_v17  ;;  %v509_v17 = vld [vmem:[#allocation2 + $0xb08] sm:$0xff]  ;;  %v6076_v35 = vcombine.high %v357_v29, %v361_v30 }
  0xff   :  { %2778 = vmatpush1.bf16.msra.mxu0 %v6027_v14  ;;  %2818 = vmatprep.subr.bf16.mxu1 %v6164_v19  ;;  %v6099_v14 = vcombine.low %v381_v3, %v385_v4  ;;  %v365_v19 = vld [vmem:[#allocation2 + $0x688] sm:$0xff] }
 0x100   :  { %2779 = vmatprep.subr.bf16.mxu0 %v6020_v18  ;;  %v513_v18 = vld [vmem:[#allocation2 + $0xb28] sm:$0xff] }
 0x101   :  { %v6227_v34 = vcombine.low %v509_v17, %v513_v18  ;;  %v349_v38 = vld [vmem:[#allocation2 + $0x608] sm:$0xff] }
 0x102   :  { %2819 = vmatpush1.bf16.msra.mxu1 %v6163_v25  ;;  %v6235_v25 = vcombine.low %v517_v9, %v521_v10  ;;  %v353_v41 = vld [vmem:[#allocation2 + $0x628] sm:$0xff] }
 0x103   :  { %2780 = vmatpush1.bf16.msra.mxu0 %v6019_v24  ;;  %2820 = vmatprep.subr.bf16.mxu1 %v6156_v31  ;;  %v6091_v24 = vcombine.low %v373_v11, %v377_v12  ;;  %v6228_v31 = vcombine.high %v509_v17, %v513_v18  ;;  %v485_v47 = vld [vmem:[#allocation2 + $0xa48] sm:$0xff]  ;;  %v342_v11 = vld [vmem:[#allocation2 + $0x5d0] sm:$0xff] }
 0x104   :  { %2781 = vmatprep.subr.bf16.mxu0 %v6012_v26  ;;  %v6084_v26 = vcombine.high %v365_v19, %v369_v21  ;;  %v489_v48 = vld [vmem:[#allocation2 + $0xa68] sm:$0xff]  ;;  %v346_v12 = vld [vmem:[#allocation2 + $0x5f0] sm:$0xff] }
 0x105   :  { %v477_v55 = vld [vmem:[#allocation2 + $0xa08] sm:$0xff]  ;;  %v6203_v1 = vcombine.low %v485_v47, %v489_v48  ;;  %v182_v17 = vld [vmem:[#allocation2 + $0xd0] sm:$0xff] }
 0x106   :  { %2821 = vmatpush1.bf16.msra.mxu1 %v6155_v36  ;;  %v493_v36 = vld [vmem:[#allocation2 + $0xa88] sm:$0xff]  ;;  %v186_v18 = vld [vmem:[#allocation2 + $0xf0] sm:$0xff] }
 0x107   :  { %2782 = vmatpush1.bf16.msra.mxu0 %v6011_v33  ;;  %2822 = vmatprep.subr.bf16.mxu1 %v6148_v42  ;;  %v6083_v33 = vcombine.low %v365_v19, %v369_v21  ;;  %v6220_v42 = vcombine.high %v501_v27, %v505_v28  ;;  %v481_v56 = vld [vmem:[#allocation2 + $0xa28] sm:$0xff]  ;;  %v6062_v19 = vcombine.high %v342_v11, %v346_v12 }
 0x108   :  { %2783 = vmatprep.subr.bf16.mxu0 %v6004_v37  ;;  %v497_v37 = vld [vmem:[#allocation2 + $0xaa8] sm:$0xff]  ;;  %v6195_v9 = vcombine.low %v477_v55, %v481_v56 }
 0x109   :  { %v541_v3 = vld [vmem:[#allocation2 + $0xc08] sm:$0xff] }
 0x10a   :  { %2823 = vmatpush1.bf16.msra.mxu1 %v6147_v45  ;;  %v6219_v45 = vcombine.low %v501_v27, %v505_v28  ;;  %v545_v4 = vld [vmem:[#allocation2 + $0xc28] sm:$0xff]  ;;  %v178_v27 = vld [vmem:[#allocation2 + $0xb0] sm:$0xff]  ;;  %v5901_v28 = vcombine.low %v182_v17, %v186_v18 }
 0x10b   :  { %2784 = vmatpush1.bf16.msra.mxu0 %v6003_v44  ;;  %2824 = vmatprep.subr.bf16.mxu1 %v6140_v51  ;;  %v6075_v44 = vcombine.low %v357_v29, %v361_v30  ;;  %v6212_v51 = vcombine.high %v493_v36, %v497_v37  ;;  %v6061_v29 = vcombine.low %v342_v11, %v346_v12 }
 0x10c   :  { %2785 = vmatprep.subr.bf16.mxu0 %v6124_v46  ;;  %v6068_v46 = vcombine.high %v349_v38, %v353_v41 }
 0x10e   :  { %2825 = vmatpush1.bf16.msra.mxu1 %v6139_v53  ;;  %v6211_v53 = vcombine.low %v493_v36, %v497_v37 }
 0x10f   :  { %2786 = vmatpush2.bf16.msra.mxu0 %v6123_v52  ;;  %2826 = vmatprep.subr.bf16.mxu1 %v6132_v60  ;;  %v6067_v52 = vcombine.low %v349_v38, %v353_v41  ;;  %v6204_v60 = vcombine.high %v485_v47, %v489_v48 }
 0x110   :  { %2787 = vmatprep.subr.bf16.mxu0 %v6116_v54  ;;  %v5934_v54 = vcombine.high %v214_v49, %v218_v50 }
 0x112   :  { %2827 = vmatpush1.bf16.msra.mxu1 %v6131_v62  ;;  %v198_v62 = vld [vmem:[#allocation2 + $0x150] sm:$0xff] }
 0x113   :  { %2788 = vmatpush2.bf16.msra.mxu0 %v6115_v61  ;;  %2828 = vmatprep.subr.bf16.mxu1 %v6252_v5  ;;  %v5933_v61 = vcombine.low %v214_v49, %v218_v50  ;;  %v6196_v5 = vcombine.high %v477_v55, %v481_v56 }
 0x114   :  { %2789 = vmatprep.subr.bf16.mxu0 %v6108_v0  ;;  %v202_v0 = vld [vmem:[#allocation2 + $0x170] sm:$0xff] }
 0x115   :  { %v5918_v10 = vcombine.high %v198_v62, %v202_v0 }
 0x116   :  { %2829 = vmatpush2.bf16.msra.mxu1 %v6251_v7  ;;  %v190_v7 = vld [vmem:[#allocation2 + $0x110] sm:$0xff] }
 0x117   :  { %2790 = vmatpush2.bf16.msra.mxu0 %v6107_v6  ;;  %2830 = vmatprep.subr.bf16.mxu1 %v6244_v13  ;;  %v5925_v6 = vcombine.low %v206_v57, %v210_v59  ;;  %v6260_v13 = vcombine.high %v541_v3, %v545_v4 }
 0x118   :  { %2791 = vmatprep.subr.bf16.mxu0 %v6100_v8  ;;  %v194_v8 = vld [vmem:[#allocation2 + $0x130] sm:$0xff] }
 0x119   :  { %v5909_v21 = vcombine.low %v190_v7, %v194_v8 }
 0x11a   :  { %2831 = vmatpush2.bf16.msra.mxu1 %v6243_v15  ;;  %v6259_v15 = vcombine.low %v541_v3, %v545_v4 }
 0x11b   :  { %2792 = vmatpush2.bf16.msra.mxu0 %v6099_v14  ;;  %2832 = vmatprep.subr.bf16.mxu1 %v6236_v22  ;;  %v5917_v14 = vcombine.low %v198_v62, %v202_v0  ;;  %v5902_v22 = vcombine.high %v182_v17, %v186_v18  ;;  %v270_v62 = vld [vmem:[#allocation2 + $0x390] sm:$0xff] }
 0x11c   :  { %2793 = vmatprep.subr.bf16.mxu0 %v6092_v16  ;;  %v5910_v16 = vcombine.high %v190_v7, %v194_v8  ;;  %v274_v0 = vld [vmem:[#allocation2 + $0x3b0] sm:$0xff] }
 0x11d   :  { %v5990_v4 = vcombine.high %v270_v62, %v274_v0  ;;  %v262_v7 = vld [vmem:[#allocation2 + $0x350] sm:$0xff] }
 0x11e   :  { %2833 = vmatpush2.bf16.msra.mxu1 %v6235_v25  ;;  %v338_v25 = vld [vmem:[#allocation2 + $0x5b0] sm:$0xff] }
 0x11f   :  { %2794 = vmatpush2.bf16.msra.mxu0 %v6091_v24  ;;  %2834 = vmatprep.subr.bf16.mxu1 %v6228_v31  ;;  %v334_v24 = vld [vmem:[#allocation2 + $0x590] sm:$0xff] }
 0x120   :  { %2795 = vmatprep.subr.bf16.mxu0 %v6084_v26  ;;  %v174_v26 = vld [vmem:[#allocation2 + $0x90] sm:$0xff]  ;;  %v6054_v36 = vcombine.high %v334_v24, %v338_v25  ;;  %v6053_v38 = vcombine.low %v334_v24, %v338_v25 }
 0x121   :  { %v5894_v30 = vcombine.high %v174_v26, %v178_v27  ;;  %v326_v31 = vld [vmem:[#allocation2 + $0x550] sm:$0xff]  ;;  %v5893_v37 = vcombine.low %v174_v26, %v178_v27 }
 0x122   :  { %2835 = vmatpush2.bf16.msra.mxu1 %v6227_v34  ;;  %v166_v34 = vld [vmem:[#allocation2 + $0x50] sm:$0xff] }
 0x123   :  { %2796 = vmatpush2.bf16.msra.mxu0 %v6083_v33  ;;  %2836 = vmatprep.subr.bf16.mxu1 %v6220_v42  ;;  %v330_v33 = vld [vmem:[#allocation2 + $0x570] sm:$0xff] }
 0x124   :  { %2797 = vmatprep.subr.bf16.mxu0 %v6076_v35  ;;  %v170_v35 = vld [vmem:[#allocation2 + $0x70] sm:$0xff]  ;;  %v6046_v47 = vcombine.high %v326_v31, %v330_v33  ;;  %v6045_v49 = vcombine.low %v326_v31, %v330_v33 }
 0x125   :  { %v5886_v41 = vcombine.high %v166_v34, %v170_v35  ;;  %v318_v42 = vld [vmem:[#allocation2 + $0x510] sm:$0xff]  ;;  %v5885_v48 = vcombine.low %v166_v34, %v170_v35 }
 0x126   :  { %2837 = vmatpush2.bf16.msra.mxu1 %v6219_v45  ;;  %v158_v45 = vld [vmem:[#allocation2 + $0x10] sm:$0xff] }
 0x127   :  { %2798 = vmatpush2.bf16.msra.mxu0 %v6075_v44  ;;  %2838 = vmatprep.subr.bf16.mxu1 %v6212_v51  ;;  %v322_v44 = vld [vmem:[#allocation2 + $0x530] sm:$0xff] }
 0x128   :  { %2799 = vmatprep.subr.bf16.mxu0 %v6068_v46  ;;  %v162_v46 = vld [vmem:[#allocation2 + $0x30] sm:$0xff]  ;;  %v6038_v55 = vcombine.high %v318_v42, %v322_v44  ;;  %v6037_v57 = vcombine.low %v318_v42, %v322_v44 }
 0x129   :  { %v5878_v50 = vcombine.high %v158_v45, %v162_v46  ;;  %v310_v51 = vld [vmem:[#allocation2 + $0x4d0] sm:$0xff]  ;;  %v5877_v56 = vcombine.low %v158_v45, %v162_v46 }
 0x12a   :  { %2839 = vmatpush2.bf16.msra.mxu1 %v6211_v53  ;;  %v278_v53 = vld [vmem:[#allocation2 + $0x3d0] sm:$0xff] }
 0x12b   :  { %2800 = vmatpush2.bf16.msra.mxu0 %v6067_v52  ;;  %2840 = vmatprep.subr.bf16.mxu1 %v6204_v60  ;;  %v314_v52 = vld [vmem:[#allocation2 + $0x4f0] sm:$0xff] }
 0x12c   :  { %2898 = vmatprep.subr.bf16.mxu0 %v5934_v54  ;;  %v282_v54 = vld [vmem:[#allocation2 + $0x3f0] sm:$0xff]  ;;  %v6029_v3 = vcombine.low %v310_v51, %v314_v52 }
 0x12d   :  { %v5998_v59 = vcombine.high %v278_v53, %v282_v54  ;;  %v302_v60 = vld [vmem:[#allocation2 + $0x490] sm:$0xff] }
 0x12e   :  { %2802 = vmatmul.mubr.bf16.vlgmr.msra.gmra.mxu0 %v7443_v23  ;;  %2841 = vmatpush2.bf16.msra.mxu1 %v6203_v1  ;;  %v6030_v1 = vcombine.high %v310_v51, %v314_v52  ;;  %v266_v8 = vld [vmem:[#allocation2 + $0x370] sm:$0xff] }
 0x12f   :  { %2899 = vmatpush1.bf16.msra.mxu0 %v5933_v61  ;;  %2930 = vmatprep.mubr.bf16.mxu0 %v7417_v58  ;;  %v306_v61 = vld [vmem:[#allocation2 + $0x4b0] sm:$0xff]  ;;  %v5982_v12 = vcombine.high %v262_v7, %v266_v8  ;;  %v5981_v18 = vcombine.low %v262_v7, %v266_v8  ;;  %v7492_v7 = vld [vmem:[#allocation4] sm:$0xff] }
 0x130   :  { %2900 = vmatprep.subr.bf16.mxu0 %v5926_v2  ;;  %2842 = vmatprep.subr.bf16.mxu1 %v6196_v5  ;;  %v5997_v2 = vcombine.low %v278_v53, %v282_v54  ;;  %v294_v5 = vld [vmem:[#allocation2 + $0x450] sm:$0xff]  ;;  %v6021_v11 = vcombine.low %v302_v60, %v306_v61 }
 0x131   :  { %v410_v24 = vld [vmem:[#allocation2 + $0x7f0] sm:$0xff] }
 0x132   :  { %2843 = vmatpush2.bf16.msra.mxu1 %v6195_v9  ;;  %v6022_v9 = vcombine.high %v302_v60, %v306_v61  ;;  %v246_v25 = vld [vmem:[#allocation2 + $0x2d0] sm:$0xff] }
 0x133   :  { %2901 = vmatpush1.bf16.msra.mxu0 %v5925_v6  ;;  %2869 = vmatprep.subr.bf16.mxu1 %v6260_v13  ;;  %v298_v6 = vld [vmem:[#allocation2 + $0x470] sm:$0xff] }
 0x134   :  { %2902 = vmatprep.subr.bf16.mxu0 %v5918_v10  ;;  %v5989_v10 = vcombine.low %v270_v62, %v274_v0  ;;  %v286_v13 = vld [vmem:[#allocation2 + $0x410] sm:$0xff]  ;;  %v6014_v17 = vcombine.high %v294_v5, %v298_v6 }
 0x135   :  { %2845 = vmatmul.mubr.bf16.vlgmr.msra.gmra.mxu1 %v7474_v40  ;;  %v250_v26 = vld [vmem:[#allocation2 + $0x2f0] sm:$0xff] }
 0x136   :  { %2870 = vmatpush1.bf16.msra.mxu1 %v6259_v15  ;;  %2887 = vmatprep.mubr.bf16.mxu1 %v7336_v39  ;;  %v254_v15 = vld [vmem:[#allocation2 + $0x310] sm:$0xff] }
 0x137   :  { %2903 = vmatpush1.bf16.msra.mxu0 %v5917_v14  ;;  %2941 = vmatprep.subr.bf16.mxu1 %v6062_v19  ;;  %v290_v14 = vld [vmem:[#allocation2 + $0x430] sm:$0xff]  ;;  %v6013_v19 = vcombine.low %v294_v5, %v298_v6 }
 0x138   :  { %2904 = vmatprep.subr.bf16.mxu0 %v5910_v16  ;;  %v258_v16 = vld [vmem:[#allocation2 + $0x330] sm:$0xff]  ;;  %v6006_v27 = vcombine.high %v286_v13, %v290_v14 }
 0x139   :  { %v398_v31 = vld [vmem:[#allocation2 + $0x790] sm:$0xff] }
 0x13a   :  { %v402_v33 = vld [vmem:[#allocation2 + $0x7b0] sm:$0xff] }
 0x13b   :  { %2905 = vmatpush1.bf16.msra.mxu0 %v5909_v21  ;;  %v5974_v21 = vcombine.high %v254_v15, %v258_v16  ;;  %v238_v34 = vld [vmem:[#allocation2 + $0x290] sm:$0xff]  ;;  %v6118_v46 = vcombine.high %v398_v31, %v402_v33 }
 0x13c   :  { %2906 = vmatprep.subr.bf16.mxu0 %v5902_v22  ;;  %v406_v22 = vld [vmem:[#allocation2 + $0x7d0] sm:$0xff] }
 0x13d   :  { %6266 = vmatmul.mubr.msk.bf16.vlgmr.msra.gmra.mxu1 %vm2550_vm0, %v7463_v43  ;;  %v242_v35 = vld [vmem:[#allocation2 + $0x2b0] sm:$0xff] }
 0x13e   :  { %2942 = vmatpush1.bf16.msra.mxu1 %v6061_v29  ;;  %2973 = vmatprep.mubr.bf16.mxu1 %v7425_v63  ;;  %v6005_v29 = vcombine.low %v286_v13, %v290_v14  ;;  %v390_v42 = vld [vmem:[#allocation2 + $0x750] sm:$0xff] }
 0x13f   :  { %2907 = vmatpush1.bf16.msra.mxu0 %v5901_v28  ;;  %2943 = vmatprep.subr.bf16.mxu1 %v6054_v36  ;;  %v5973_v28 = vcombine.low %v254_v15, %v258_v16  ;;  %v6126_v36 = vcombine.high %v406_v22, %v410_v24  ;;  %v230_v44 = vld [vmem:[#allocation2 + $0x250] sm:$0xff] }
 0x140   :  { %2908 = vmatprep.subr.bf16.mxu0 %v5894_v30  ;;  %v5966_v30 = vcombine.high %v246_v25, %v250_v26  ;;  %v234_v45 = vld [vmem:[#allocation2 + $0x270] sm:$0xff] }
 0x141   :  { %v5950_v51 = vcombine.high %v230_v44, %v234_v45  ;;  %v222_v53 = vld [vmem:[#allocation2 + $0x210] sm:$0xff] }
 0x142   :  { %2944 = vmatpush1.bf16.msra.mxu1 %v6053_v38  ;;  %v6125_v38 = vcombine.low %v406_v22, %v410_v24  ;;  %v226_v54 = vld [vmem:[#allocation2 + $0x230] sm:$0xff] }
 0x143   :  { %2909 = vmatpush1.bf16.msra.mxu0 %v5893_v37  ;;  %2945 = vmatprep.subr.bf16.mxu1 %v6046_v47  ;;  %v5965_v37 = vcombine.low %v246_v25, %v250_v26  ;;  %v394_v47 = vld [vmem:[#allocation2 + $0x770] sm:$0xff]  ;;  %v5942_v61 = vcombine.high %v222_v53, %v226_v54 }
 0x144   :  { %2910 = vmatprep.subr.bf16.mxu0 %v5886_v41  ;;  %v5958_v41 = vcombine.high %v238_v34, %v242_v35  ;;  %v6110_v52 = vcombine.high %v390_v42, %v394_v47  ;;  %v6109_v60 = vcombine.low %v390_v42, %v394_v47  ;;  %v470_v0 = vld [vmem:[#allocation2 + $0x9d0] sm:$0xff] }
 0x145   :  { %v370_v13 = vld [vmem:[#allocation2 + $0x6b0] sm:$0xff] }
 0x146   :  { %2946 = vmatpush1.bf16.msra.mxu1 %v6045_v49  ;;  %v550_v49 = vlaneseq  ;;  %v358_v24 = vld [vmem:[#allocation2 + $0x650] sm:$0xff] }
 0x147   :  { %2911 = vmatpush1.bf16.msra.mxu0 %v5885_v48  ;;  %2947 = vmatprep.subr.bf16.mxu1 %v6038_v55  ;;  %v5957_v48 = vcombine.low %v238_v34, %v242_v35  ;;  %v382_v55 = vld [vmem:[#allocation2 + $0x710] sm:$0xff] }
 0x148   :  { %2912 = vmatprep.subr.bf16.mxu0 %v5878_v50  ;;  %v6117_v50 = vcombine.low %v398_v31, %v402_v33  ;;  %v362_v25 = vld [vmem:[#allocation2 + $0x670] sm:$0xff] }
 0x149   :  { %v6078_v35 = vcombine.high %v358_v24, %v362_v25  ;;  %v354_v42 = vld [vmem:[#allocation2 + $0x630] sm:$0xff]  ;;  %v6077_v47 = vcombine.low %v358_v24, %v362_v25  ;;  %v199_v24 = vld [vmem:[#allocation2 + $0x158] sm:$0xff] }
 0x14a   :  { %2948 = vmatpush1.bf16.msra.mxu1 %v6037_v57  ;;  %v5949_v57 = vcombine.low %v230_v44, %v234_v45  ;;  %v203_v25 = vld [vmem:[#allocation2 + $0x178] sm:$0xff] }
 0x14b   :  { %2913 = vmatpush1.bf16.msra.mxu0 %v5877_v56  ;;  %2949 = vmatprep.subr.bf16.mxu1 %v6030_v1  ;;  %v386_v56 = vld [vmem:[#allocation2 + $0x730] sm:$0xff] }
 0x14c   :  { %2914 = vmatprep.subr.bf16.mxu0 %v5998_v59  ;;  %v7487_v59 = vshrl.u32 %v550_v49, 7  ;;  %v6102_v62 = vcombine.high %v382_v55, %v386_v56  ;;  %v474_v1 = vld [vmem:[#allocation2 + $0x9f0] sm:$0xff]  ;;  %v6101_v6 = vcombine.low %v382_v55, %v386_v56 }
 0x14d   :  { %v6190_v8 = vcombine.high %v470_v0, %v474_v1  ;;  %v6189_v15 = vcombine.low %v470_v0, %v474_v1  ;;  %v215_v0 = vld [vmem:[#allocation2 + $0x1d8] sm:$0xff] }
 0x14e   :  { %2950 = vmatpush1.bf16.msra.mxu1 %v6029_v3  ;;  %v378_v3 = vld [vmem:[#allocation2 + $0x6f0] sm:$0xff]  ;;  %v7490_v5 = vsub.s32 0, %v7487_v59  ;;  %v219_v1 = vld [vmem:[#allocation2 + $0x1f8] sm:$0xff] }
 0x14f   :  { %2915 = vmatpush2.bf16.msra.mxu0 %v5997_v2  ;;  %2951 = vmatprep.subr.bf16.mxu1 %v6022_v9  ;;  %v374_v2 = vld [vmem:[#allocation2 + $0x6d0] sm:$0xff] }
 0x150   :  { %2916 = vmatprep.subr.bf16.mxu0 %v5990_v4  ;;  %v5941_v4 = vcombine.low %v222_v53, %v226_v54  ;;  %v6094_v9 = vcombine.high %v374_v2, %v378_v3  ;;  %v553_v14 = vrot.slane %v7492_v7, %v7490_v5  ;;  %v6093_v16 = vcombine.low %v374_v2, %v378_v3  ;;  %v542_v53 = vld [vmem:[#allocation2 + $0xc10] sm:$0xff] }
 0x151   :  { %v546_v54 = vld [vmem:[#allocation2 + $0xc30] sm:$0xff] }
 0x152   :  { %2952 = vmatpush1.bf16.msra.mxu1 %v6021_v11  ;;  %v466_v11 = vld [vmem:[#allocation2 + $0x9b0] sm:$0xff]  ;;  %v6261_v3 = vcombine.low %v542_v53, %v546_v54 }
 0x153   :  { %2917 = vmatpush2.bf16.msra.mxu0 %v5989_v10  ;;  %2953 = vmatprep.subr.bf16.mxu1 %v6014_v17  ;;  %v462_v10 = vld [vmem:[#allocation2 + $0x990] sm:$0xff] }
 0x154   :  { %2918 = vmatprep.subr.bf16.mxu0 %v5982_v12  ;;  %v366_v12 = vld [vmem:[#allocation2 + $0x690] sm:$0xff]  ;;  %v6182_v17 = vcombine.high %v462_v10, %v466_v11 }
 0x156   :  { %2954 = vmatpush1.bf16.msra.mxu1 %v6013_v19  ;;  %v454_v19 = vld [vmem:[#allocation2 + $0x950] sm:$0xff] }
 0x157   :  { %2919 = vmatpush2.bf16.msra.mxu0 %v5981_v18  ;;  %2955 = vmatprep.subr.bf16.mxu1 %v6006_v27  ;;  %v6086_v18 = vcombine.high %v366_v12, %v370_v13 }
 0x158   :  { %2920 = vmatprep.subr.bf16.mxu0 %v5974_v21  ;;  %v458_v21 = vld [vmem:[#allocation2 + $0x970] sm:$0xff] }
 0x159   :  { %v6174_v31 = vcombine.high %v454_v19, %v458_v21  ;;  %v6173_v45 = vcombine.low %v454_v19, %v458_v21  ;;  %v534_v21 = vld [vmem:[#allocation2 + $0xbd0] sm:$0xff] }
 0x15a   :  { %2956 = vmatpush1.bf16.msra.mxu1 %v6005_v29 }
 0x15b   :  { %2921 = vmatpush2.bf16.msra.mxu0 %v5973_v28  ;;  %2957 = vmatprep.subr.bf16.mxu1 %v6126_v36  ;;  %v6181_v28 = vcombine.low %v462_v10, %v466_v11  ;;  %v446_v36 = vld [vmem:[#allocation2 + $0x910] sm:$0xff] }
 0x15c   :  { %2922 = vmatprep.subr.bf16.mxu0 %v5966_v30  ;;  %v6085_v30 = vcombine.low %v366_v12, %v370_v13  ;;  %v414_v12 = vld [vmem:[#allocation2 + $0x810] sm:$0xff] }
 0x15d   :  { %v418_v13 = vld [vmem:[#allocation2 + $0x830] sm:$0xff] }
 0x15e   :  { %2958 = vmatpush2.bf16.msra.mxu1 %v6125_v38 }
 0x15f   :  { %2923 = vmatpush2.bf16.msra.mxu0 %v5965_v37  ;;  %2959 = vmatprep.subr.bf16.mxu1 %v6118_v46  ;;  %v450_v37 = vld [vmem:[#allocation2 + $0x930] sm:$0xff] }
 0x160   :  { %2924 = vmatprep.subr.bf16.mxu0 %v5958_v41  ;;  %v350_v41 = vld [vmem:[#allocation2 + $0x610] sm:$0xff]  ;;  %v6165_v55 = vcombine.low %v446_v36, %v450_v37 }
 0x161   :  { %v6069_v56 = vcombine.low %v350_v41, %v354_v42 }
 0x162   :  { %2960 = vmatpush2.bf16.msra.mxu1 %v6117_v50  ;;  %v6070_v50 = vcombine.high %v350_v41, %v354_v42  ;;  %v5919_v41 = vcombine.low %v199_v24, %v203_v25 }
 0x163   :  { %2925 = vmatpush2.bf16.msra.mxu0 %v5957_v48  ;;  %2961 = vmatprep.subr.bf16.mxu1 %v6110_v52  ;;  %v6166_v48 = vcombine.high %v446_v36, %v450_v37  ;;  %v442_v52 = vld [vmem:[#allocation2 + $0x8f0] sm:$0xff]  ;;  %v191_v36 = vld [vmem:[#allocation2 + $0x118] sm:$0xff] }
 0x164   :  { %2926 = vmatprep.subr.bf16.mxu0 %v5950_v51  ;;  %v438_v51 = vld [vmem:[#allocation2 + $0x8d0] sm:$0xff]  ;;  %v195_v37 = vld [vmem:[#allocation2 + $0x138] sm:$0xff] }
 0x165   :  { %v6157_v2 = vcombine.low %v438_v51, %v442_v52 }
 0x166   :  { %2962 = vmatpush2.bf16.msra.mxu1 %v6109_v60  ;;  %v6262_v60 = vcombine.high %v542_v53, %v546_v54  ;;  %v510_v53 = vld [vmem:[#allocation2 + $0xb10] sm:$0xff] }
 0x167   :  { %2927 = vmatpush2.bf16.msra.mxu0 %v5949_v57  ;;  %2963 = vmatprep.subr.bf16.mxu1 %v6102_v62  ;;  %v6158_v57 = vcombine.high %v438_v51, %v442_v52  ;;  %v434_v62 = vld [vmem:[#allocation2 + $0x8b0] sm:$0xff]  ;;  %v5911_v51 = vcombine.low %v191_v36, %v195_v37 }
 0x168   :  { %2928 = vmatprep.subr.bf16.mxu0 %v5942_v61  ;;  %v430_v61 = vld [vmem:[#allocation2 + $0x890] sm:$0xff] }
 0x169   :  { %v6149_v10 = vcombine.low %v430_v61, %v434_v62  ;;  %v514_v54 = vld [vmem:[#allocation2 + $0xb30] sm:$0xff] }
 0x16a   :  { %2964 = vmatpush2.bf16.msra.mxu1 %v6101_v6  ;;  %v5936_v6 = vcombine.high %v215_v0, %v219_v1 }
 0x16b   :  { %2929 = vmatpush2.bf16.msra.mxu0 %v5941_v4  ;;  %2965 = vmatprep.subr.bf16.mxu1 %v6094_v9  ;;  %v6150_v4 = vcombine.high %v430_v61, %v434_v62  ;;  %v426_v9 = vld [vmem:[#allocation2 + $0x870] sm:$0xff]  ;;  %v6230_v61 = vcombine.high %v510_v53, %v514_v54 }
 0x16c   :  { %2984 = vmatprep.subr.bf16.mxu0 %v6190_v8  ;;  %v422_v8 = vld [vmem:[#allocation2 + $0x850] sm:$0xff] }
 0x16d   :  { %v2631_v27 = vpop.f32.mrf.mxu1  ;;  %v6142_v11 = vcombine.high %v422_v8, %v426_v9 }
 0x16e   :  { %v2588_v22 = vpop.f32.mrf.mxu0  ;;  %2931 = vmatmul.mubr.bf16.vlgmr.msra.gmra.mxu0 %v7441_v20  ;;  %2966 = vmatpush2.bf16.msra.mxu1 %v6093_v16  ;;  %v6141_v16 = vcombine.low %v422_v8, %v426_v9 }
 0x16f   :  { %v2589_v26 = vadd.f32 %v2588_v22, %v553_v14  ;;  %2985 = vmatpush1.bf16.msra.mxu0 %v6189_v15  ;;  %3016 = vmatprep.mubr.bf16.mxu0 %v7452_v32  ;;  %v7502_v34 = vpop.f32.mrf.mxu1  ;;  %v211_v15 = vld [vmem:[#allocation2 + $0x1b8] sm:$0xff]  ;;  %v538_v22 = vld [vmem:[#allocation2 + $0xbf0] sm:$0xff] }
 0x170   :  { %v7498_v29 = vpop.f32.mrf.mxu0  ;;  %2986 = vmatprep.subr.bf16.mxu0 %v6182_v17  ;;  %2967 = vmatprep.subr.bf16.mxu1 %v6086_v18  ;;  %v5935_v17 = vcombine.low %v215_v0, %v219_v1  ;;  %v6134_v18 = vcombine.high %v414_v12, %v418_v13  ;;  %v502_v0 = vld [vmem:[#allocation2 + $0xad0] sm:$0xff] }
 0x171   :  { %v7500_v33 = vadd.f32 %v2631_v27, %v2589_v26  ;;  %v2635_v46 = vpop.f32.mrf.mxu1  ;;  %v6133_v26 = vcombine.low %v414_v12, %v418_v13  ;;  %v506_v1 = vld [vmem:[#allocation2 + $0xaf0] sm:$0xff]  ;;  %v159_v12 = vld [vmem:[#allocation2 + $0x18] sm:$0xff] }
 0x172   :  { %v2592_v38 = vpop.f32.mrf.mxu0  ;;  %2968 = vmatpush2.bf16.msra.mxu1 %v6085_v30  ;;  %v5920_v30 = vcombine.high %v199_v24, %v203_v25  ;;  %v6222_v8 = vcombine.high %v502_v0, %v506_v1  ;;  %v163_v13 = vld [vmem:[#allocation2 + $0x38] sm:$0xff] }
 0x173   :  { %v2593_v44 = vadd.f32 %v2592_v38, %v553_v14  ;;  %2987 = vmatpush1.bf16.msra.mxu0 %v6181_v28  ;;  %2969 = vmatprep.subr.bf16.mxu1 %v6078_v35  ;;  %v207_v14 = vld [vmem:[#allocation2 + $0x198] sm:$0xff]  ;;  %v6254_v28 = vcombine.high %v534_v21, %v538_v22  ;;  %v530_v35 = vld [vmem:[#allocation2 + $0xbb0] sm:$0xff]  ;;  %v6253_v38 = vcombine.low %v534_v21, %v538_v22 }
 0x174   :  { %2988 = vmatprep.subr.bf16.mxu0 %v6174_v31  ;;  %v5928_v19 = vcombine.high %v207_v14, %v211_v15  ;;  %v5927_v27 = vcombine.low %v207_v14, %v211_v15  ;;  %v526_v31 = vld [vmem:[#allocation2 + $0xb90] sm:$0xff]  ;;  %v6221_v14 = vcombine.low %v502_v0, %v506_v1  ;;  %v279_v21 = vld [vmem:[#allocation2 + $0x3d8] sm:$0xff]  ;;  %v5879_v25 = vcombine.low %v159_v12, %v163_v13 }
 0x175   :  { %v7504_v49 = vadd.f32 %v2635_v46, %v2593_v44  ;;  %v6246_v42 = vcombine.high %v526_v31, %v530_v35  ;;  %v5912_v44 = vcombine.high %v191_v36, %v195_v37  ;;  %v522_v46 = vld [vmem:[#allocation2 + $0xb70] sm:$0xff]  ;;  %v283_v22 = vld [vmem:[#allocation2 + $0x3f8] sm:$0xff] }
 0x176   :  { %2970 = vmatpush2.bf16.msra.mxu1 %v6077_v47  ;;  %v183_v47 = vld [vmem:[#allocation2 + $0xd8] sm:$0xff]  ;;  %v5999_v37 = vcombine.low %v279_v21, %v283_v22 }
 0x177   :  { %2989 = vmatpush1.bf16.msra.mxu0 %v6173_v45  ;;  %2971 = vmatprep.subr.bf16.mxu1 %v6070_v50  ;;  %v518_v45 = vld [vmem:[#allocation2 + $0xb50] sm:$0xff]  ;;  %v6245_v50 = vcombine.low %v526_v31, %v530_v35  ;;  %v271_v31 = vld [vmem:[#allocation2 + $0x398] sm:$0xff] }
 0x178   :  { %2990 = vmatprep.subr.bf16.mxu0 %v6166_v48  ;;  %v187_v48 = vld [vmem:[#allocation2 + $0xf8] sm:$0xff] }
 0x179   :  { %v5904_v52 = vcombine.high %v183_v47, %v187_v48  ;;  %v275_v35 = vld [vmem:[#allocation2 + $0x3b8] sm:$0xff] }
 0x17a   :  { %2972 = vmatpush2.bf16.msra.mxu1 %v6069_v56  ;;  %v179_v56 = vld [vmem:[#allocation2 + $0xb8] sm:$0xff] }
 0x17b   :  { %2991 = vmatpush1.bf16.msra.mxu0 %v6165_v55  ;;  %3041 = vmatprep.subr.bf16.mxu1 %v6262_v60  ;;  %v175_v55 = vld [vmem:[#allocation2 + $0x98] sm:$0xff]  ;;  %v5903_v60 = vcombine.low %v183_v47, %v187_v48  ;;  %v7511_v48 = vpop.f32.mrf.mxu1 }
 0x17c   :  { %2992 = vmatprep.subr.bf16.mxu0 %v6158_v57  ;;  %v6237_v57 = vcombine.low %v518_v45, %v522_v46  ;;  %v5896_v62 = vcombine.high %v175_v55, %v179_v56  ;;  %v327_v1 = vld [vmem:[#allocation2 + $0x558] sm:$0xff] }
 0x17d   :  { %2974 = vmatmul.mubr.bf16.vlgmr.msra.gmra.mxu1 %v7443_v23 }
 0x17e   :  { %3042 = vmatpush1.bf16.msra.mxu1 %v6261_v3  ;;  %3059 = vmatprep.mubr.bf16.mxu1 %v7336_v39  ;;  %v171_v3 = vld [vmem:[#allocation2 + $0x78] sm:$0xff] }
 0x17f   :  { %2993 = vmatpush1.bf16.msra.mxu0 %v6157_v2  ;;  %3070 = vmatprep.subr.bf16.mxu1 %v5936_v6  ;;  %v167_v2 = vld [vmem:[#allocation2 + $0x58] sm:$0xff]  ;;  %v5895_v6 = vcombine.low %v175_v55, %v179_v56 }
 0x180   :  { %2994 = vmatprep.subr.bf16.mxu0 %v6150_v4  ;;  %v6229_v4 = vcombine.low %v510_v53, %v514_v54  ;;  %v5888_v9 = vcombine.high %v167_v2, %v171_v3  ;;  %v5887_v15 = vcombine.low %v167_v2, %v171_v3  ;;  %v339_v53 = vld [vmem:[#allocation2 + $0x5b8] sm:$0xff] }
 0x181   :  { %v255_v54 = vld [vmem:[#allocation2 + $0x318] sm:$0xff] }
 0x182   :  { %v259_v55 = vld [vmem:[#allocation2 + $0x338] sm:$0xff] }
 0x183   :  { %2995 = vmatpush1.bf16.msra.mxu0 %v6149_v10  ;;  %v494_v10 = vld [vmem:[#allocation2 + $0xa90] sm:$0xff]  ;;  %v5976_v0 = vcombine.high %v255_v54, %v259_v55  ;;  %v331_v2 = vld [vmem:[#allocation2 + $0x578] sm:$0xff] }
 0x184   :  { %2996 = vmatprep.subr.bf16.mxu0 %v6142_v11  ;;  %v498_v11 = vld [vmem:[#allocation2 + $0xab0] sm:$0xff] }
 0x185   :  { %6267 = vmatmul.mubr.msk.bf16.vlgmr.msra.gmra.mxu1 %vm2550_vm0, %v7463_v43  ;;  %v6213_v24 = vcombine.low %v494_v10, %v498_v11 }
 0x186   :  { %3071 = vmatpush1.bf16.msra.mxu1 %v5935_v17  ;;  %3102 = vmatprep.mubr.bf16.mxu1 %v7417_v58  ;;  %v6238_v58 = vcombine.high %v518_v45, %v522_v46  ;;  %v5880_v17 = vcombine.high %v159_v12, %v163_v13  ;;  %v263_v45 = vld [vmem:[#allocation2 + $0x358] sm:$0xff]  ;;  %v6048_v13 = vcombine.high %v327_v1, %v331_v2 }
 0x187   :  { %2997 = vmatpush1.bf16.msra.mxu0 %v6141_v16  ;;  %3072 = vmatprep.subr.bf16.mxu1 %v5928_v19  ;;  %v6214_v16 = vcombine.high %v494_v10, %v498_v11  ;;  %v490_v19 = vld [vmem:[#allocation2 + $0xa70] sm:$0xff]  ;;  %v267_v46 = vld [vmem:[#allocation2 + $0x378] sm:$0xff]  ;;  %v5975_v11 = vcombine.low %v255_v54, %v259_v55 }
 0x188   :  { %2998 = vmatprep.subr.bf16.mxu0 %v6134_v18  ;;  %v486_v18 = vld [vmem:[#allocation2 + $0xa50] sm:$0xff]  ;;  %v471_v54 = vld [vmem:[#allocation2 + $0x9d8] sm:$0xff] }
 0x189   :  { %v6205_v36 = vcombine.low %v486_v18, %v490_v19  ;;  %v475_v55 = vld [vmem:[#allocation2 + $0x9f8] sm:$0xff] }
 0x18a   :  { %3073 = vmatpush1.bf16.msra.mxu1 %v5927_v27  ;;  %v6000_v27 = vcombine.high %v279_v21, %v283_v22 }
 0x18b   :  { %2999 = vmatpush1.bf16.msra.mxu0 %v6133_v26  ;;  %3074 = vmatprep.subr.bf16.mxu1 %v5920_v30  ;;  %v6206_v26 = vcombine.high %v486_v18, %v490_v19  ;;  %v482_v30 = vld [vmem:[#allocation2 + $0xa30] sm:$0xff]  ;;  %v239_v19 = vld [vmem:[#allocation2 + $0x298] sm:$0xff] }
 0x18c   :  { %3000 = vmatprep.subr.bf16.mxu0 %v6254_v28  ;;  %v478_v28 = vld [vmem:[#allocation2 + $0xa10] sm:$0xff] }
 0x18d   :  { %v6197_v47 = vcombine.low %v478_v28, %v482_v30 }
 0x18e   :  { %3075 = vmatpush1.bf16.msra.mxu1 %v5919_v41  ;;  %v5992_v41 = vcombine.high %v271_v31, %v275_v35 }
 0x18f   :  { %3001 = vmatpush2.bf16.msra.mxu0 %v6253_v38  ;;  %3076 = vmatprep.subr.bf16.mxu1 %v5912_v44  ;;  %v6198_v38 = vcombine.high %v478_v28, %v482_v30  ;;  %v347_v44 = vld [vmem:[#allocation2 + $0x5f8] sm:$0xff] }
 0x190   :  { %3002 = vmatprep.subr.bf16.mxu0 %v6246_v42  ;;  %v343_v42 = vld [vmem:[#allocation2 + $0x5d8] sm:$0xff] }
 0x191   :  { %v6063_v56 = vcombine.low %v343_v42, %v347_v44  ;;  %v311_v28 = vld [vmem:[#allocation2 + $0x4d8] sm:$0xff] }
 0x192   :  { %3077 = vmatpush1.bf16.msra.mxu1 %v5911_v51  ;;  %v6064_v51 = vcombine.high %v343_v42, %v347_v44  ;;  %v315_v30 = vld [vmem:[#allocation2 + $0x4f8] sm:$0xff] }
 0x193   :  { %3003 = vmatpush2.bf16.msra.mxu0 %v6245_v50  ;;  %3078 = vmatprep.subr.bf16.mxu1 %v5904_v52  ;;  %v5991_v50 = vcombine.low %v271_v31, %v275_v35  ;;  %v335_v52 = vld [vmem:[#allocation2 + $0x598] sm:$0xff] }
 0x194   :  { %3004 = vmatprep.subr.bf16.mxu0 %v6238_v58  ;;  %v5984_v58 = vcombine.high %v263_v45, %v267_v46  ;;  %v231_v31 = vld [vmem:[#allocation2 + $0x258] sm:$0xff] }
 0x195   :  { %v235_v35 = vld [vmem:[#allocation2 + $0x278] sm:$0xff] }
 0x196   :  { %3079 = vmatpush1.bf16.msra.mxu1 %v5903_v60  ;;  %v2717_v60 = vpop.f32.mrf.mxu1  ;;  %v303_v42 = vld [vmem:[#allocation2 + $0x498] sm:$0xff] }
 0x197   :  { %3005 = vmatpush2.bf16.msra.mxu0 %v6237_v57  ;;  %3080 = vmatprep.subr.bf16.mxu1 %v5896_v62  ;;  %v7513_v57 = vpop.f32.mrf.mxu0  ;;  %v6056_v62 = vcombine.high %v335_v52, %v339_v53  ;;  %v307_v44 = vld [vmem:[#allocation2 + $0x4b8] sm:$0xff] }
 0x198   :  { %3006 = vmatprep.subr.bf16.mxu0 %v6230_v61  ;;  %v5983_v61 = vcombine.low %v263_v45, %v267_v46  ;;  %v7518_v10 = vpop.f32.mrf.mxu1  ;;  %v223_v45 = vld [vmem:[#allocation2 + $0x218] sm:$0xff] }
 0x199   :  { %v227_v46 = vld [vmem:[#allocation2 + $0x238] sm:$0xff] }
 0x19a   :  { %3081 = vmatpush1.bf16.msra.mxu1 %v5895_v6  ;;  %v251_v6 = vld [vmem:[#allocation2 + $0x2f8] sm:$0xff]  ;;  %v2721_v22 = vpop.f32.mrf.mxu1 }
 0x19b   :  { %3007 = vmatpush2.bf16.msra.mxu0 %v6229_v4  ;;  %3082 = vmatprep.subr.bf16.mxu1 %v5888_v9  ;;  %v247_v4 = vld [vmem:[#allocation2 + $0x2d8] sm:$0xff]  ;;  %v6055_v9 = vcombine.low %v335_v52, %v339_v53 }
 0x19c   :  { %3008 = vmatprep.subr.bf16.mxu0 %v6222_v8  ;;  %v295_v52 = vld [vmem:[#allocation2 + $0x458] sm:$0xff] }
 0x19d   :  { %v299_v53 = vld [vmem:[#allocation2 + $0x478] sm:$0xff] }
 0x19e   :  { %3083 = vmatpush1.bf16.msra.mxu1 %v5887_v15  ;;  %v5968_v15 = vcombine.high %v247_v4, %v251_v6 }
 0x19f   :  { %3009 = vmatpush2.bf16.msra.mxu0 %v6221_v14  ;;  %3084 = vmatprep.subr.bf16.mxu1 %v5880_v17  ;;  %v323_v17 = vld [vmem:[#allocation2 + $0x538] sm:$0xff] }
 0x1a0   :  { %3010 = vmatprep.subr.bf16.mxu0 %v6214_v16  ;;  %v319_v16 = vld [vmem:[#allocation2 + $0x518] sm:$0xff] }
 0x1a2   :  { %3085 = vmatpush1.bf16.msra.mxu1 %v5879_v25  ;;  %v6040_v25 = vcombine.high %v319_v16, %v323_v17 }
 0x1a3   :  { %3011 = vmatpush2.bf16.msra.mxu0 %v6213_v24  ;;  %3086 = vmatprep.subr.bf16.mxu1 %v6000_v27  ;;  %v5967_v24 = vcombine.low %v247_v4, %v251_v6  ;;  %v6015_v4 = vcombine.low %v295_v52, %v299_v53  ;;  %v6191_v6 = vcombine.low %v471_v54, %v475_v55 }
 0x1a4   :  { %3012 = vmatprep.subr.bf16.mxu0 %v6206_v26 }
 0x1a6   :  { %3087 = vmatpush2.bf16.msra.mxu1 %v5999_v37  ;;  %v6039_v37 = vcombine.low %v319_v16, %v323_v17 }
 0x1a7   :  { %3013 = vmatpush2.bf16.msra.mxu0 %v6205_v36  ;;  %3088 = vmatprep.subr.bf16.mxu1 %v5992_v41  ;;  %v5952_v41 = vcombine.high %v231_v31, %v235_v35 }
 0x1a8   :  { %3014 = vmatprep.subr.bf16.mxu0 %v6198_v38  ;;  %v6032_v38 = vcombine.high %v311_v28, %v315_v30 }
 0x1aa   :  { %3089 = vmatpush2.bf16.msra.mxu1 %v5991_v50  ;;  %v5951_v50 = vcombine.low %v231_v31, %v235_v35  ;;  %v443_v31 = vld [vmem:[#allocation2 + $0x8f8] sm:$0xff] }
 0x1ab   :  { %3015 = vmatpush2.bf16.msra.mxu0 %v6197_v47  ;;  %3090 = vmatprep.subr.bf16.mxu1 %v5984_v58  ;;  %v6031_v47 = vcombine.low %v311_v28, %v315_v30  ;;  %v5944_v58 = vcombine.high %v223_v45, %v227_v46  ;;  %v395_v28 = vld [vmem:[#allocation2 + $0x778] sm:$0xff] }
 0x1ac   :  { %3113 = vmatprep.subr.bf16.mxu0 %v6064_v51  ;;  %v6024_v51 = vcombine.high %v303_v42, %v307_v44  ;;  %v439_v30 = vld [vmem:[#allocation2 + $0x8d8] sm:$0xff] }
 0x1ae   :  { %v2674_v3 = vpop.f32.mrf.mxu0  ;;  %3017 = vmatmul.mubr.bf16.vlgmr.msra.gmra.mxu0 %v7474_v40  ;;  %3091 = vmatpush2.bf16.msra.mxu1 %v5983_v61  ;;  %v6016_v61 = vcombine.high %v295_v52, %v299_v53  ;;  %v375_v52 = vld [vmem:[#allocation2 + $0x6d8] sm:$0xff] }
 0x1af   :  { %v2675_v8 = vadd.f32 %v2674_v3, %v7500_v33  ;;  %3114 = vmatpush1.bf16.msra.mxu0 %v6063_v56  ;;  %3145 = vmatprep.mubr.bf16.mxu0 %v7425_v63  ;;  %v243_v33 = vld [vmem:[#allocation2 + $0x2b8] sm:$0xff]  ;;  %v6047_v63 = vcombine.low %v327_v1, %v331_v2  ;;  %v6023_v56 = vcombine.low %v303_v42, %v307_v44 }
 0x1b0   :  { %v7520_v12 = vpop.f32.mrf.mxu0  ;;  %3115 = vmatprep.subr.bf16.mxu0 %v6056_v62  ;;  %3092 = vmatprep.subr.bf16.mxu1 %v5976_v0  ;;  %v5960_v27 = vcombine.high %v239_v19, %v243_v33  ;;  %v6192_v62 = vcombine.high %v471_v54, %v475_v55  ;;  %v287_v0 = vld [vmem:[#allocation2 + $0x418] sm:$0xff] }
 0x1b1   :  { %v2718_v14 = vadd.f32 %v2717_v60, %v2675_v8  ;;  %v5943_v60 = vcombine.low %v223_v45, %v227_v46  ;;  %v291_v1 = vld [vmem:[#allocation2 + $0x438] sm:$0xff] }
 0x1b2   :  { %v2678_v18 = vpop.f32.mrf.mxu0  ;;  %3093 = vmatpush2.bf16.msra.mxu1 %v5975_v11  ;;  %v463_v2 = vld [vmem:[#allocation2 + $0x998] sm:$0xff]  ;;  %v6008_v8 = vcombine.high %v287_v0, %v291_v1  ;;  %v6007_v16 = vcombine.low %v287_v0, %v291_v1 }
 0x1b3   :  { %v2679_v21 = vadd.f32 %v2678_v18, %v7504_v49  ;;  %3116 = vmatpush1.bf16.msra.mxu0 %v6055_v9  ;;  %3094 = vmatprep.subr.bf16.mxu1 %v5968_v15  ;;  %v5959_v49 = vcombine.low %v239_v19, %v243_v33  ;;  %v467_v3 = vld [vmem:[#allocation2 + $0x9b8] sm:$0xff] }
 0x1b4   :  { %3117 = vmatprep.subr.bf16.mxu0 %v6048_v13  ;;  %v6184_v9 = vcombine.high %v463_v2, %v467_v3  ;;  %v407_v11 = vld [vmem:[#allocation2 + $0x7d8] sm:$0xff]  ;;  %v6183_v17 = vcombine.low %v463_v2, %v467_v3 }
 0x1b5   :  { %v2722_v26 = vadd.f32 %v2721_v22, %v2679_v21  ;;  %v411_v13 = vld [vmem:[#allocation2 + $0x7f8] sm:$0xff] }
 0x1b6   :  { %3095 = vmatpush2.bf16.msra.mxu1 %v5967_v24  ;;  %v459_v15 = vld [vmem:[#allocation2 + $0x978] sm:$0xff]  ;;  %v6128_v18 = vcombine.high %v407_v11, %v411_v13  ;;  %v6127_v24 = vcombine.low %v407_v11, %v411_v13 }
 0x1b7   :  { %v7523_v36 = vpack.c.bf16 %v2722_v26, %v2718_v14  ;;  %3118 = vmatpush1.bf16.msra.mxu0 %v6047_v63  ;;  %3096 = vmatprep.subr.bf16.mxu1 %v5960_v27  ;;  %v455_v14 = vld [vmem:[#allocation2 + $0x958] sm:$0xff] }
 0x1b8   :  { %3119 = vmatprep.subr.bf16.mxu0 %v6040_v25  ;;  %v6176_v19 = vcombine.high %v455_v14, %v459_v15  ;;  %v399_v33 = vld [vmem:[#allocation2 + $0x798] sm:$0xff]  ;;  %v6175_v25 = vcombine.low %v455_v14, %v459_v15 }
 0x1b9   :  { %v403_v21 = vld [vmem:[#allocation2 + $0x7b8] sm:$0xff] }
 0x1ba   :  { %3097 = vmatpush2.bf16.msra.mxu1 %v5959_v49  ;;  %v447_v63 = vld [vmem:[#allocation2 + $0x918] sm:$0xff]  ;;  %v6119_v35 = vcombine.low %v399_v33, %v403_v21  ;;  %v7528_v49 = vsub.s32 1, %v7487_v59 }
 0x1bb   :  { %3120 = vmatpush1.bf16.msra.mxu0 %v6039_v37  ;;  %3098 = vmatprep.subr.bf16.mxu1 %v5952_v41  ;;  %v451_v22 = vld [vmem:[#allocation2 + $0x938] sm:$0xff] }
 0x1bc   :  { %3121 = vmatprep.subr.bf16.mxu0 %v6032_v38  ;;  %v6168_v26 = vcombine.high %v447_v63, %v451_v22  ;;  %v391_v27 = vld [vmem:[#allocation2 + $0x758] sm:$0xff]  ;;  %v6167_v37 = vcombine.low %v447_v63, %v451_v22  ;;  %v6160_v38 = vcombine.high %v439_v30, %v443_v31 }
 0x1bd   :  { %v383_v41 = vld [vmem:[#allocation2 + $0x718] sm:$0xff]  ;;  %v6111_v46 = vcombine.low %v391_v27, %v395_v28 }
 0x1be   :  { %3099 = vmatpush2.bf16.msra.mxu1 %v5951_v50  ;;  %v387_v42 = vld [vmem:[#allocation2 + $0x738] sm:$0xff] }
 0x1bf   :  { %3122 = vmatpush1.bf16.msra.mxu0 %v6031_v47  ;;  %3100 = vmatprep.subr.bf16.mxu1 %v5944_v58  ;;  %v431_v44 = vld [vmem:[#allocation2 + $0x898] sm:$0xff]  ;;  %v6159_v47 = vcombine.low %v439_v30, %v443_v31  ;;  %v6104_v50 = vcombine.high %v383_v41, %v387_v42 }
 0x1c0   :  { %3123 = vmatprep.subr.bf16.mxu0 %v6024_v51  ;;  %v435_v45 = vld [vmem:[#allocation2 + $0x8b8] sm:$0xff]  ;;  %v557_v51 = vrot.slane %v7492_v7, %v7528_v49 }
 0x1c1   :  { %v6152_v58 = vcombine.high %v431_v44, %v435_v45  ;;  %v379_v53 = vld [vmem:[#allocation2 + $0x6f8] sm:$0xff] }
 0x1c2   :  { %3101 = vmatpush2.bf16.msra.mxu1 %v5943_v60  ;;  %v423_v54 = vld [vmem:[#allocation2 + $0x858] sm:$0xff]  ;;  %v6103_v60 = vcombine.low %v383_v41, %v387_v42  ;;  %v2591_v0 = vadd.f32 %v7498_v29, %v557_v51  ;;  %v6095_v11 = vcombine.low %v375_v52, %v379_v53 }
 0x1c3   :  { %3124 = vmatpush1.bf16.msra.mxu0 %v6023_v56  ;;  %3156 = vmatprep.subr.bf16.mxu1 %v6192_v62  ;;  %v427_v55 = vld [vmem:[#allocation2 + $0x878] sm:$0xff]  ;;  %v2595_v56 = vadd.f32 %v7513_v57, %v557_v51  ;;  %v6096_v62 = vcombine.high %v375_v52, %v379_v53 }
 0x1c4   :  { %3125 = vmatprep.subr.bf16.mxu0 %v6016_v61  ;;  %v6151_v61 = vcombine.low %v431_v44, %v435_v45  ;;  %v6144_v1 = vcombine.high %v423_v54, %v427_v55  ;;  %v367_v2 = vld [vmem:[#allocation2 + $0x698] sm:$0xff]  ;;  %v6143_v57 = vcombine.low %v423_v54, %v427_v55  ;;  %v2634_v14 = vadd.f32 %v7502_v34, %v2591_v0 }
 0x1c5   :  { %3103 = vmatmul.mubr.bf16.vlgmr.msra.gmra.mxu1 %v7441_v20  ;;  %v6120_v20 = vcombine.high %v399_v33, %v403_v21  ;;  %v371_v3 = vld [vmem:[#allocation2 + $0x6b8] sm:$0xff] }
 0x1c6   :  { %3157 = vmatpush1.bf16.msra.mxu1 %v6191_v6  ;;  %3188 = vmatprep.mubr.bf16.mxu1 %v7452_v32  ;;  %v6112_v32 = vcombine.high %v391_v27, %v395_v28  ;;  %v415_v6 = vld [vmem:[#allocation2 + $0x818] sm:$0xff]  ;;  %v6088_v13 = vcombine.high %v367_v2, %v371_v3  ;;  %v2677_v33 = vadd.f32 %v7520_v12, %v2634_v14 }
 0x1c7   :  { %3126 = vmatpush1.bf16.msra.mxu0 %v6015_v4  ;;  %3158 = vmatprep.subr.bf16.mxu1 %v6184_v9  ;;  %v2680_v4 = vpop.f32.mrf.mxu0  ;;  %v2638_v9 = vadd.f32 %v7511_v48, %v2595_v56  ;;  %v6087_v21 = vcombine.low %v367_v2, %v371_v3  ;;  %v2723_v48 = vpop.f32.mrf.mxu1  ;;  %v351_v34 = vld [vmem:[#allocation2 + $0x618] sm:$0xff] }
 0x1c8   :  { %3127 = vmatprep.subr.bf16.mxu0 %v6008_v8  ;;  %v419_v8 = vld [vmem:[#allocation2 + $0x838] sm:$0xff]  ;;  %v2720_v28 = vadd.f32 %v7518_v10, %v2677_v33 }
 0x1c9   :  { %v2681_v15 = vadd.f32 %v2680_v4, %v2638_v9  ;;  %v6136_v29 = vcombine.high %v415_v6, %v419_v8  ;;  %v6135_v63 = vcombine.low %v415_v6, %v419_v8  ;;  %v531_v27 = vld [vmem:[#allocation2 + $0xbb8] sm:$0xff] }
 0x1ca   :  { %3159 = vmatpush1.bf16.msra.mxu1 %v6183_v17  ;;  %v363_v17 = vld [vmem:[#allocation2 + $0x678] sm:$0xff] }
 0x1cb   :  { %3128 = vmatpush1.bf16.msra.mxu0 %v6007_v16  ;;  %3160 = vmatprep.subr.bf16.mxu1 %v6176_v19  ;;  %v359_v16 = vld [vmem:[#allocation2 + $0x658] sm:$0xff] }
 0x1cc   :  { %3129 = vmatprep.subr.bf16.mxu0 %v6128_v18  ;;  %v535_v18 = vld [vmem:[#allocation2 + $0xbd8] sm:$0xff]  ;;  %v6080_v22 = vcombine.high %v359_v16, %v363_v17  ;;  %v6079_v30 = vcombine.low %v359_v16, %v363_v17 }
 0x1cd   :  { %v539_v19 = vld [vmem:[#allocation2 + $0xbf8] sm:$0xff] }
 0x1ce   :  { %3161 = vmatpush1.bf16.msra.mxu1 %v6175_v25  ;;  %v6256_v25 = vcombine.high %v535_v18, %v539_v19  ;;  %v6255_v12 = vcombine.low %v535_v18, %v539_v19  ;;  %v519_v41 = vld [vmem:[#allocation2 + $0xb58] sm:$0xff] }
 0x1cf   :  { %3130 = vmatpush2.bf16.msra.mxu0 %v6127_v24  ;;  %3162 = vmatprep.subr.bf16.mxu1 %v6168_v26  ;;  %v2724_v24 = vadd.f32 %v2723_v48, %v2681_v15  ;;  %v527_v26 = vld [vmem:[#allocation2 + $0xb98] sm:$0xff] }
 0x1d0   :  { %3131 = vmatprep.subr.bf16.mxu0 %v6120_v20  ;;  %v355_v20 = vld [vmem:[#allocation2 + $0x638] sm:$0xff]  ;;  %v6247_v45 = vcombine.low %v527_v26, %v531_v27 }
 0x1d1   :  { %v6072_v31 = vcombine.high %v351_v34, %v355_v20  ;;  %v523_v42 = vld [vmem:[#allocation2 + $0xb78] sm:$0xff]  ;;  %v6071_v44 = vcombine.low %v351_v34, %v355_v20 }
 0x1d2   :  { %3163 = vmatpush1.bf16.msra.mxu1 %v6167_v37  ;;  %v560_v37 = vsub.s32 2, %v7487_v59  ;;  %v6647_v10 = vld [vmem:[#allocation6 + $0xe4] ss:$16 sps:$4 sm:$0xff]   ;;  %v6645_v53 = vld [vmem:[#allocation6 + $0xe0] ss:$16 sps:$4 sm:$0xff]   ;;  %v6239_v54 = vcombine.low %v519_v41, %v523_v42 }
 0x1d3   :  { %3132 = vmatpush2.bf16.msra.mxu0 %v6119_v35  ;;  %3164 = vmatprep.subr.bf16.mxu1 %v6160_v38  ;;  %v3243_v35 = vpack.c.bf16 %v2724_v24, %v2720_v28  ;;  %v2760_v38 = vpop.f32.mrf.mxu1  ;;  %v515_v52 = vld [vmem:[#allocation2 + $0xb38] sm:$0xff] }
 0x1d4   :  { %3133 = vmatprep.subr.bf16.mxu0 %v6112_v32  ;;  %v6248_v32 = vcombine.high %v527_v26, %v531_v27  ;;  %v6650_v55 = vld [vmem:[#allocation6 + $0xc4] ss:$16 sps:$4 sm:$0xff]   ;;  %v6648_v4 = vld [vmem:[#allocation6 + $0xc0] ss:$16 sps:$4 sm:$0xff]  }
 0x1d5   :  { %v7542_v51 = vpop.f32.mrf.mxu1  ;;  %v507_v2 = vld [vmem:[#allocation2 + $0xaf8] sm:$0xff] }
 0x1d6   :  { %3165 = vmatpush1.bf16.msra.mxu1 %v6159_v47  ;;  %v6240_v47 = vcombine.high %v519_v41, %v523_v42  ;;  %v6653_v9 = vld [vmem:[#allocation6 + $0xa4] ss:$16 sps:$4 sm:$0xff]  }
 0x1d7   :  { %3134 = vmatpush2.bf16.msra.mxu0 %v6111_v46  ;;  %3166 = vmatprep.subr.bf16.mxu1 %v6152_v58  ;;  %v561_v46 = vrot.slane %v7492_v7, %v560_v37  ;;  %v511_v58 = vld [vmem:[#allocation2 + $0xb18] sm:$0xff] }
 0x1d8   :  { %3135 = vmatprep.subr.bf16.mxu0 %v6104_v50  ;;  %v3251_v50 = vmul.bf16 1045249613, %v3243_v35  ;;  %v6231_v6 = vcombine.low %v511_v58, %v515_v52  ;;  %v495_v14 = vld [vmem:[#allocation2 + $0xa98] sm:$0xff] }
 0x1d9   :  { %v2761_v56 = vadd.f32 %v2760_v38, %v561_v46  ;;  %v499_v15 = vld [vmem:[#allocation2 + $0xab8] sm:$0xff] }
 0x1da   :  { %3167 = vmatpush1.bf16.msra.mxu1 %v6151_v61  ;;  %v7544_v61 = vmax.bf16 %v3251_v50, %v3243_v35  ;;  %v6656_v17 = vld [vmem:[#allocation6 + $0x84] ss:$16 sps:$4 sm:$0xff]   ;;  %v6216_v19 = vcombine.high %v495_v14, %v499_v15  ;;  %v6660_v50 = vld [vmem:[#allocation6 + $0x40] ss:$16 sps:$4 sm:$0xff]  }
 0x1db   :  { %3136 = vmatpush2.bf16.msra.mxu0 %v6103_v60  ;;  %3168 = vmatprep.subr.bf16.mxu1 %v6144_v1  ;;  %v6232_v60 = vcombine.high %v511_v58, %v515_v52  ;;  %v503_v1 = vld [vmem:[#allocation2 + $0xad8] sm:$0xff] }
 0x1dc   :  { %3137 = vmatprep.subr.bf16.mxu0 %v6096_v62  ;;  %v2764_v62 = vpop.f32.mrf.mxu1  ;;  %v6223_v16 = vcombine.low %v503_v1, %v507_v2  ;;  %v487_v33 = vld [vmem:[#allocation2 + $0xa58] sm:$0xff] }
 0x1dd   :  { %v6659_v34 = vld [vmem:[#allocation6 + $0x64] ss:$16 sps:$4 sm:$0xff]  }
 0x1de   :  { %3169 = vmatpush1.bf16.msra.mxu1 %v6143_v57  ;;  %v6224_v57 = vcombine.high %v503_v1, %v507_v2  ;;  %v2766_v18 = vpop.f32.mrf.mxu1  ;;  %v479_v27 = vld [vmem:[#allocation2 + $0xa18] sm:$0xff] }
 0x1df   :  { %3138 = vmatpush2.bf16.msra.mxu0 %v6095_v11  ;;  %3170 = vmatprep.subr.bf16.mxu1 %v6136_v29  ;;  %v2765_v11 = vadd.f32 %v2764_v62, %v561_v46  ;;  %v6651_v29 = vld [vmem:[#allocation6 + $0xa0] ss:$16 sps:$4 sm:$0xff]   ;;  %v6662_v38 = vld [vmem:[#allocation6 + $0x44] ss:$16 sps:$4 sm:$0xff]  }
 0x1e0   :  { %3139 = vmatprep.subr.bf16.mxu0 %v6088_v13  ;;  %v483_v28 = vld [vmem:[#allocation2 + $0xa38] sm:$0xff] }
 0x1e1   :  { %v6200_v42 = vcombine.high %v479_v27, %v483_v28  ;;  %v6663_v1 = vld [vmem:[#allocation6 + $0x20] ss:$16 sps:$4 sm:$0xff]  }
 0x1e2   :  { %3171 = vmatpush1.bf16.msra.mxu1 %v6135_v63  ;;  %v6654_v63 = vld [vmem:[#allocation6 + $0x80] ss:$16 sps:$4 sm:$0xff]  }
 0x1e3   :  { %3140 = vmatpush2.bf16.msra.mxu0 %v6087_v21  ;;  %3172 = vmatprep.subr.bf16.mxu1 %v6256_v25  ;;  %v491_v21 = vld [vmem:[#allocation2 + $0xa78] sm:$0xff]  ;;  %v6215_v25 = vcombine.low %v495_v14, %v499_v15 }
 0x1e4   :  { %3141 = vmatprep.subr.bf16.mxu0 %v6080_v22  ;;  %v564_v22 = vsub.s32 3, %v7487_v59  ;;  %v6208_v26 = vcombine.high %v487_v33, %v491_v21  ;;  %v6674_v15 = vld [vmem:[#allocation6 + $0x1e4] ss:$16 sps:$4 sm:$0xff]  }
 0x1e6   :  { %3173 = vmatpush2.bf16.msra.mxu1 %v6255_v12  ;;  %v6657_v12 = vld [vmem:[#allocation6 + $0x60] ss:$16 sps:$4 sm:$0xff]  }
 0x1e7   :  { %3142 = vmatpush2.bf16.msra.mxu0 %v6079_v30  ;;  %3174 = vmatprep.subr.bf16.mxu1 %v6248_v32  ;;  %v6207_v32 = vcombine.low %v487_v33, %v491_v21  ;;  %v6686_v33 = vld [vmem:[#allocation6 + $0x1a4] ss:$16 sps:$4 sm:$0xff]  }
 0x1e8   :  { %3143 = vmatprep.subr.bf16.mxu0 %v6072_v31  ;;  %v565_v31 = vrot.slane %v7492_v7, %v564_v22  ;;  %v6683_v21 = vld [vmem:[#allocation6 + $0x2a4] ss:$16 sps:$4 sm:$0xff]  }
 0x1ea   :  { %3175 = vmatpush2.bf16.msra.mxu1 %v6247_v45  ;;  %v547_v45 = vld [vmem:[#allocation2 + $0xc38] sm:$0xff]  ;;  %v2763_v58 = vadd.f32 %v7542_v51, %v565_v31  ;;  %v2767_v52 = vadd.f32 %v2766_v18, %v565_v31 }
 0x1eb   :  { %3144 = vmatpush2.bf16.msra.mxu0 %v6071_v44  ;;  %3176 = vmatprep.subr.bf16.mxu1 %v6240_v47  ;;  %v543_v44 = vld [vmem:[#allocation2 + $0xc18] sm:$0xff]  ;;  %v6199_v47 = vcombine.low %v479_v27, %v483_v28 }
 0x1ec   :  { %4824 = vmatprep.subr.bf16.mxu0 %v6647_v10  ;;  %v6677_v18 = vld [vmem:[#allocation6 + $0x2c4] ss:$16 sps:$4 sm:$0xff]   ;;  %v6696_v27 = vld [vmem:[#allocation6 + $0x160] ss:$16 sps:$4 sm:$0xff]  }
 0x1ed   :  { %v6693_v28 = vld [vmem:[#allocation6 + $0x260] ss:$16 sps:$4 sm:$0xff]  }
 0x1ee   :  { %v2803_v0 = vpop.f32.mrf.mxu0  ;;  %3146 = vmatmul.mubr.bf16.vlgmr.msra.gmra.mxu0 %v7443_v23  ;;  %3177 = vmatpush2.bf16.msra.mxu1 %v6239_v54  ;;  %v6702_v31 = vld [vmem:[#allocation6 + $0x140] ss:$16 sps:$4 sm:$0xff]  }
 0x1ef   :  { %v2804_v3 = vadd.f32 %v2803_v0, %v2761_v56  ;;  %4825 = vmatpush1.bf16.msra.mxu0 %v6645_v53  ;;  %4856 = vmatprep.mubr.bf16.mxu0 %v7544_v61  ;;  %v6665_v53 = vld [vmem:[#allocation6 + $0x24] ss:$16 sps:$4 sm:$0xff]   ;;  %v6263_v0 = vcombine.low %v543_v44, %v547_v45 }
 0x1f0   :  { %v7548_v8 = vpop.f32.mrf.mxu0  ;;  %4826 = vmatprep.subr.bf16.mxu0 %v6650_v55  ;;  %3178 = vmatprep.subr.bf16.mxu1 %v6232_v60  ;;  %v6264_v55 = vcombine.high %v543_v44, %v547_v45  ;;  %v6716_v44 = vld [vmem:[#allocation6 + $0x104] ss:$16 sps:$4 sm:$0xff]  }
 0x1f1   :  { %v2806_v56 = vadd.f32 %v7548_v8, %v2763_v58  ;;  %v6666_v8 = vld [vmem:[#allocation6] ss:$16 sps:$4 sm:$0xff]   ;;  %v6713_v45 = vld [vmem:[#allocation6 + $0x204] ss:$16 sps:$4 sm:$0xff]  }
 0x1f2   :  { %v2807_v13 = vpop.f32.mrf.mxu0  ;;  %3179 = vmatpush2.bf16.msra.mxu1 %v6231_v6  ;;  %v6668_v6 = vld [vmem:[#allocation6 + $0x4] ss:$16 sps:$4 sm:$0xff]  }
 0x1f3   :  { %v2808_v23 = vadd.f32 %v2807_v13, %v2765_v11  ;;  %4827 = vmatpush1.bf16.msra.mxu0 %v6648_v4  ;;  %3180 = vmatprep.subr.bf16.mxu1 %v6224_v57  ;;  %v6719_v58 = vld [vmem:[#allocation6 + $0x3e4] ss:$16 sps:$4 sm:$0xff]  }
 0x1f4   :  { %4828 = vmatprep.subr.bf16.mxu0 %v6653_v9  ;;  %v2809_v10 = vpop.f32.mrf.mxu0  ;;  %v6671_v9 = vld [vmem:[#allocation6 + $0x2e4] ss:$16 sps:$4 sm:$0xff]  }
 0x1f5   :  { %v2846_v48 = vpop.f32.mrf.mxu1  ;;  %v2810_v60 = vadd.f32 %v2809_v10, %v2767_v52  ;;  %v6714_v10 = vld [vmem:[#allocation6 + $0x100] ss:$16 sps:$4 sm:$0xff]  }
 0x1f6   :  { %3181 = vmatpush2.bf16.msra.mxu1 %v6223_v16  ;;  %v2847_v24 = vadd.f32 %v2846_v48, %v2804_v3  ;;  %v6669_v16 = vld [vmem:[#allocation6 + $0x2e0] ss:$16 sps:$4 sm:$0xff]  }
 0x1f7   :  { %4829 = vmatpush1.bf16.msra.mxu0 %v6651_v29  ;;  %v2848_v20 = vpop.f32.mrf.mxu1  ;;  %3182 = vmatprep.subr.bf16.mxu1 %v6216_v19  ;;  %v6672_v29 = vld [vmem:[#allocation6 + $0x1e0] ss:$16 sps:$4 sm:$0xff]   ;;  %v6680_v19 = vld [vmem:[#allocation6 + $0x1c4] ss:$16 sps:$4 sm:$0xff]  }
 0x1f8   :  { %4830 = vmatprep.subr.bf16.mxu0 %v6656_v17  ;;  %v2849_v2 = vadd.f32 %v2848_v20, %v2806_v56  ;;  %v6684_v48 = vld [vmem:[#allocation6 + $0x1a0] ss:$16 sps:$4 sm:$0xff]   ;;  %v6698_v20 = vld [vmem:[#allocation6 + $0x164] ss:$16 sps:$4 sm:$0xff]  }
 0x1f9   :  { %v2850_v30 = vpop.f32.mrf.mxu1  ;;  %v6735_v52 = vld [vmem:[#allocation6 + $0x4e0] ss:$16 sps:$4 sm:$0xff]  }
 0x1fa   :  { %3183 = vmatpush2.bf16.msra.mxu1 %v6215_v25  ;;  %v2851_v35 = vadd.f32 %v2850_v30, %v2808_v23  ;;  %v6689_v25 = vld [vmem:[#allocation6 + $0x284] ss:$16 sps:$4 sm:$0xff]   ;;  %v6741_v56 = vld [vmem:[#allocation6 + $0x4c0] ss:$16 sps:$4 sm:$0xff]  }
 0x1fb   :  { %4831 = vmatpush1.bf16.msra.mxu0 %v6654_v63  ;;  %v2852_v41 = vpop.f32.mrf.mxu1  ;;  %3184 = vmatprep.subr.bf16.mxu1 %v6208_v26  ;;  %v6681_v63 = vld [vmem:[#allocation6 + $0x2a0] ss:$16 sps:$4 sm:$0xff]   ;;  %v6695_v26 = vld [vmem:[#allocation6 + $0x264] ss:$16 sps:$4 sm:$0xff]  }
 0x1fc   :  { %4832 = vmatprep.subr.bf16.mxu0 %v6659_v34  ;;  %v2853_v3 = vadd.f32 %v2852_v41, %v2810_v60  ;;  %v6687_v34 = vld [vmem:[#allocation6 + $0x280] ss:$16 sps:$4 sm:$0xff]   ;;  %v6704_v30 = vld [vmem:[#allocation6 + $0x144] ss:$16 sps:$4 sm:$0xff]  }
 0x1fd   :  { %v2889_v46 = vpop.f32.mrf.mxu1  ;;  %v6708_v41 = vld [vmem:[#allocation6 + $0x120] ss:$16 sps:$4 sm:$0xff]  }
 0x1fe   :  { %3185 = vmatpush2.bf16.msra.mxu1 %v6207_v32  ;;  %v2890_v7 = vadd.f32 %v2889_v46, %v2847_v24  ;;  %v6692_v24 = vld [vmem:[#allocation6 + $0x184] ss:$16 sps:$4 sm:$0xff]   ;;  %v3250_v46 = vmul.bf16 1045249613, %v7523_v36  ;;  %v6720_v60 = vld [vmem:[#allocation6 + $0x3c0] ss:$16 sps:$4 sm:$0xff]  }
 0x1ff   :  { %4833 = vmatpush1.bf16.msra.mxu0 %v6657_v12  ;;  %v2891_v54 = vpop.f32.mrf.mxu1  ;;  %3186 = vmatprep.subr.bf16.mxu1 %v6200_v42  ;;  %v6701_v12 = vld [vmem:[#allocation6 + $0x244] ss:$16 sps:$4 sm:$0xff]   ;;  %v6705_v42 = vld [vmem:[#allocation6 + $0x220] ss:$16 sps:$4 sm:$0xff]  }
 0x200   :  { %4834 = vmatprep.subr.bf16.mxu0 %v6662_v38  ;;  %v2892_v11 = vadd.f32 %v2891_v54, %v2849_v2  ;;  %v6710_v32 = vld [vmem:[#allocation6 + $0x124] ss:$16 sps:$4 sm:$0xff]  }
 0x201   :  { %v2893_v62 = vpop.f32.mrf.mxu1  ;;  %v6707_v38 = vld [vmem:[#allocation6 + $0x224] ss:$16 sps:$4 sm:$0xff]  }
 0x202   :  { %3187 = vmatpush2.bf16.msra.mxu1 %v6199_v47  ;;  %v2894_v4 = vadd.f32 %v2893_v62, %v2851_v35  ;;  %v6699_v35 = vld [vmem:[#allocation6 + $0x240] ss:$16 sps:$4 sm:$0xff]   ;;  %v6743_v54 = vld [vmem:[#allocation6 + $0x4c4] ss:$16 sps:$4 sm:$0xff]  }
 0x203   :  { %4835 = vmatpush1.bf16.msra.mxu0 %v6660_v50  ;;  %v2895_v51 = vpop.f32.mrf.mxu1  ;;  %3213 = vmatprep.subr.bf16.mxu1 %v6264_v55  ;;  %v6711_v47 = vld [vmem:[#allocation6 + $0x200] ss:$16 sps:$4 sm:$0xff]   ;;  %v6737_v50 = vld [vmem:[#allocation6 + $0x4e4] ss:$16 sps:$4 sm:$0xff]  }
 0x204   :  { %4836 = vmatprep.subr.bf16.mxu0 %v6665_v53  ;;  %v7556_v57 = vpack.c.bf16 %v2894_v4, %v2890_v7  ;;  %v2896_v13 = vadd.f32 %v2895_v51, %v2853_v3  ;;  %v7567_v7 = vmax.bf16 %v3250_v46, %v7523_v36  ;;  %v6717_v53 = vld [vmem:[#allocation6 + $0x3e0] ss:$16 sps:$4 sm:$0xff]   ;;  %v6722_v55 = vld [vmem:[#allocation6 + $0x3c4] ss:$16 sps:$4 sm:$0xff]  }
 0x205   :  { %3189 = vmatmul.mubr.bf16.vlgmr.msra.gmra.mxu1 %v7474_v40  ;;  %v6678_v40 = vld [vmem:[#allocation6 + $0x1c0] ss:$16 sps:$4 sm:$0xff]   ;;  %v6749_v62 = vld [vmem:[#allocation6 + $0x4a4] ss:$16 sps:$4 sm:$0xff]  }
 0x206   :  { %v3245_v14 = vpack.c.bf16 %v2896_v13, %v2892_v11  ;;  %3214 = vmatpush1.bf16.msra.mxu1 %v6263_v0  ;;  %3231 = vmatprep.mubr.bf16.mxu1 %v7336_v39  ;;  %v6675_v39 = vld [vmem:[#allocation6 + $0x2c0] ss:$16 sps:$4 sm:$0xff]   ;;  %v6725_v0 = vld [vmem:[#allocation6 + $0x3a4] ss:$16 sps:$4 sm:$0xff]  }
 0x207   :  { %4837 = vmatpush1.bf16.msra.mxu0 %v6663_v1  ;;  %4867 = vmatprep.subr.bf16.mxu1 %v6671_v9  ;;  %v6747_v1 = vld [vmem:[#allocation6 + $0x4a0] ss:$16 sps:$4 sm:$0xff]   ;;  %v6752_v2 = vld [vmem:[#allocation6 + $0x484] ss:$16 sps:$4 sm:$0xff]  }
 0x208   :  { %4838 = vmatprep.subr.bf16.mxu0 %v6668_v6  ;;  %v3253_v23 = vmul.bf16 1045249613, %v3245_v14  ;;  %v6723_v36 = vld [vmem:[#allocation6 + $0x3a0] ss:$16 sps:$4 sm:$0xff]   ;;  %v6728_v3 = vld [vmem:[#allocation6 + $0x384] ss:$16 sps:$4 sm:$0xff]  }
 0x209   :  { %v6750_v4 = vld [vmem:[#allocation6 + $0x480] ss:$16 sps:$4 sm:$0xff]   ;;  %v6755_v6 = vld [vmem:[#allocation6 + $0x464] ss:$16 sps:$4 sm:$0xff]  }
 0x20a   :  { %v7560_v17 = vmax.bf16 %v3253_v23, %v3245_v14  ;;  %v6726_v51 = vld [vmem:[#allocation6 + $0x380] ss:$16 sps:$4 sm:$0xff]   ;;  %v6731_v9 = vld [vmem:[#allocation6 + $0x364] ss:$16 sps:$4 sm:$0xff]  }
 0x20b   :  { %4839 = vmatpush1.bf16.msra.mxu0 %v6666_v8  ;;  %v6753_v11 = vld [vmem:[#allocation6 + $0x460] ss:$16 sps:$4 sm:$0xff]   ;;  %v6758_v8 = vld [vmem:[#allocation6 + $0x444] ss:$16 sps:$4 sm:$0xff]  }
 0x20c   :  { %4840 = vmatprep.subr.bf16.mxu0 %v6674_v15  ;;  %v6729_v13 = vld [vmem:[#allocation6 + $0x360] ss:$16 sps:$4 sm:$0xff]   ;;  %v6734_v14 = vld [vmem:[#allocation6 + $0x344] ss:$16 sps:$4 sm:$0xff]  }
 0x20d   :  { %6268 = vmatmul.mubr.msk.bf16.vlgmr.msra.gmra.mxu1 %vm2550_vm0, %v7463_v43  ;;  %v6690_v43 = vld [vmem:[#allocation6 + $0x180] ss:$16 sps:$4 sm:$0xff]   ;;  %v6782_v46 = vld [vmem:[#allocation6 + $0x544] ss:$16 sps:$4 sm:$0xff]  }
 0x20e   :  { %4868 = vmatpush1.bf16.msra.mxu1 %v6669_v16  ;;  %4899 = vmatprep.mubr.bf16.mxu1 %v7560_v17  ;;  %v6756_v15 = vld [vmem:[#allocation6 + $0x440] ss:$16 sps:$4 sm:$0xff]   ;;  %v6740_v16 = vld [vmem:[#allocation6 + $0x324] ss:$16 sps:$4 sm:$0xff]  }
 0x20f   :  { %4841 = vmatpush2.bf16.msra.mxu0 %v6672_v29  ;;  %4869 = vmatprep.subr.bf16.mxu1 %v6677_v18  ;;  %v6732_v23 = vld [vmem:[#allocation6 + $0x340] ss:$16 sps:$4 sm:$0xff]   ;;  %v6761_v29 = vld [vmem:[#allocation6 + $0x424] ss:$16 sps:$4 sm:$0xff]  }
 0x210   :  { %4842 = vmatprep.subr.bf16.mxu0 %v6680_v19  ;;  %v6759_v18 = vld [vmem:[#allocation6 + $0x420] ss:$16 sps:$4 sm:$0xff]  }
 0x211   :  { %v6738_v19 = vld [vmem:[#allocation6 + $0x320] ss:$16 sps:$4 sm:$0xff]  }
 0x212   :  { %4870 = vmatpush1.bf16.msra.mxu1 %v6675_v39  ;;  %v6746_v39 = vld [vmem:[#allocation6 + $0x304] ss:$16 sps:$4 sm:$0xff]  }
 0x213   :  { %4843 = vmatpush2.bf16.msra.mxu0 %v6678_v40  ;;  %4871 = vmatprep.subr.bf16.mxu1 %v6683_v21  ;;  %v6764_v40 = vld [vmem:[#allocation6 + $0x404] ss:$16 sps:$4 sm:$0xff]   ;;  %v6744_v21 = vld [vmem:[#allocation6 + $0x300] ss:$16 sps:$4 sm:$0xff]  }
 0x214   :  { %4844 = vmatprep.subr.bf16.mxu0 %v6686_v33  ;;  %v6762_v33 = vld [vmem:[#allocation6 + $0x400] ss:$16 sps:$4 sm:$0xff]  }
 0x216   :  { %4872 = vmatpush1.bf16.msra.mxu1 %v6681_v63  ;;  %v3252_v63 = vmul.bf16 1045249613, %v7556_v57 }
 0x217   :  { %4845 = vmatpush2.bf16.msra.mxu0 %v6684_v48  ;;  %4873 = vmatprep.subr.bf16.mxu1 %v6689_v25  ;;  %v6767_v48 = vld [vmem:[#allocation6 + $0x5e4] ss:$16 sps:$4 sm:$0xff]   ;;  %v6765_v25 = vld [vmem:[#allocation6 + $0x5e0] ss:$16 sps:$4 sm:$0xff]  }
 0x218   :  { %4846 = vmatprep.subr.bf16.mxu0 %v6692_v24  ;;  %v6812_v24 = vld [vmem:[#allocation6 + $0x6e4] ss:$16 sps:$4 sm:$0xff]  }
 0x21a   :  { %4874 = vmatpush1.bf16.msra.mxu1 %v6687_v34  ;;  %v6810_v34 = vld [vmem:[#allocation6 + $0x6e0] ss:$16 sps:$4 sm:$0xff]  }
 0x21b   :  { %4847 = vmatpush2.bf16.msra.mxu0 %v6690_v43  ;;  %4875 = vmatprep.subr.bf16.mxu1 %v6695_v26  ;;  %v6770_v43 = vld [vmem:[#allocation6 + $0x5c4] ss:$16 sps:$4 sm:$0xff]  }
 0x21c   :  { %4848 = vmatprep.subr.bf16.mxu0 %v6698_v20  ;;  %v7572_v20 = vmax.bf16 %v3252_v63, %v7556_v57  ;;  %v6818_v26 = vld [vmem:[#allocation6 + $0x6c4] ss:$16 sps:$4 sm:$0xff]  }
 0x21d   :  { %v6830_v57 = vld [vmem:[#allocation6 + $0x684] ss:$16 sps:$4 sm:$0xff]  }
 0x21e   :  { %4876 = vmatpush1.bf16.msra.mxu1 %v6693_v28  ;;  %v6773_v28 = vld [vmem:[#allocation6 + $0x5a4] ss:$16 sps:$4 sm:$0xff]  }
 0x21f   :  { %4849 = vmatpush2.bf16.msra.mxu0 %v6696_v27  ;;  %4877 = vmatprep.subr.bf16.mxu1 %v6701_v12  ;;  %v6768_v27 = vld [vmem:[#allocation6 + $0x5c0] ss:$16 sps:$4 sm:$0xff]   ;;  %v6824_v12 = vld [vmem:[#allocation6 + $0x6a4] ss:$16 sps:$4 sm:$0xff]  }
 0x220   :  { %4850 = vmatprep.subr.bf16.mxu0 %v6704_v30  ;;  %v6816_v30 = vld [vmem:[#allocation6 + $0x6c0] ss:$16 sps:$4 sm:$0xff]  }
 0x222   :  { %4878 = vmatpush1.bf16.msra.mxu1 %v6699_v35  ;;  %v6776_v35 = vld [vmem:[#allocation6 + $0x584] ss:$16 sps:$4 sm:$0xff]  }
 0x223   :  { %4851 = vmatpush2.bf16.msra.mxu0 %v6702_v31  ;;  %4879 = vmatprep.subr.bf16.mxu1 %v6707_v38  ;;  %v6771_v31 = vld [vmem:[#allocation6 + $0x5a0] ss:$16 sps:$4 sm:$0xff]  }
 0x224   :  { %4852 = vmatprep.subr.bf16.mxu0 %v6710_v32  ;;  %v6822_v32 = vld [vmem:[#allocation6 + $0x6a0] ss:$16 sps:$4 sm:$0xff]  }
 0x225   :  { %v6774_v38 = vld [vmem:[#allocation6 + $0x580] ss:$16 sps:$4 sm:$0xff]  }
 0x226   :  { %4880 = vmatpush1.bf16.msra.mxu1 %v6705_v42  ;;  %v6828_v42 = vld [vmem:[#allocation6 + $0x680] ss:$16 sps:$4 sm:$0xff]  }
 0x227   :  { %4853 = vmatpush2.bf16.msra.mxu0 %v6708_v41  ;;  %4881 = vmatprep.subr.bf16.mxu1 %v6713_v45  ;;  %v6779_v41 = vld [vmem:[#allocation6 + $0x564] ss:$16 sps:$4 sm:$0xff]  }
 0x228   :  { %4854 = vmatprep.subr.bf16.mxu0 %v6716_v44  ;;  %v6836_v44 = vld [vmem:[#allocation6 + $0x664] ss:$16 sps:$4 sm:$0xff]  }
 0x22a   :  { %4882 = vmatpush1.bf16.msra.mxu1 %v6711_v47  ;;  %v6834_v47 = vld [vmem:[#allocation6 + $0x660] ss:$16 sps:$4 sm:$0xff]  }
 0x22b   :  { %4855 = vmatpush2.bf16.msra.mxu0 %v6714_v10  ;;  %4883 = vmatprep.subr.bf16.mxu1 %v6719_v58  ;;  %v6777_v10 = vld [vmem:[#allocation6 + $0x560] ss:$16 sps:$4 sm:$0xff]  }
 0x22c   :  { %4910 = vmatprep.subr.bf16.mxu0 %v6737_v50  ;;  %v6842_v50 = vld [vmem:[#allocation6 + $0x644] ss:$16 sps:$4 sm:$0xff]  }
 0x22e   :  { %4857 = vmatmul.mubr.bf16.vlgmr.msra.gmra.mxu0 %v7567_v7  ;;  %4884 = vmatpush2.bf16.msra.mxu1 %v6717_v53  ;;  %v2932_v53 = vpop.f32.mrf.mxu0 }
 0x22f   :  { %4911 = vmatpush1.bf16.msra.mxu0 %v6735_v52  ;;  %4885 = vmatprep.subr.bf16.mxu1 %v6722_v55  ;;  %v6780_v52 = vld [vmem:[#allocation6 + $0x540] ss:$16 sps:$4 sm:$0xff]  }
 0x230   :  { %4912 = vmatprep.subr.bf16.mxu0 %v6743_v54  ;;  %v6785_v54 = vld [vmem:[#allocation6 + $0x524] ss:$16 sps:$4 sm:$0xff]   ;;  %v6840_v55 = vld [vmem:[#allocation6 + $0x640] ss:$16 sps:$4 sm:$0xff]  }
 0x232   :  { %4886 = vmatpush2.bf16.msra.mxu1 %v6720_v60 }
 0x233   :  { %4913 = vmatpush1.bf16.msra.mxu0 %v6741_v56  ;;  %4887 = vmatprep.subr.bf16.mxu1 %v6725_v0  ;;  %v6848_v56 = vld [vmem:[#allocation6 + $0x624] ss:$16 sps:$4 sm:$0xff]   ;;  %v6783_v0 = vld [vmem:[#allocation6 + $0x520] ss:$16 sps:$4 sm:$0xff]  }
 0x234   :  { %4914 = vmatprep.subr.bf16.mxu0 %v6749_v62  ;;  %v568_v62 = vsub.s32 4, %v7487_v59 }
 0x236   :  { %4888 = vmatpush2.bf16.msra.mxu1 %v6723_v36  ;;  %v6788_v36 = vld [vmem:[#allocation6 + $0x504] ss:$16 sps:$4 sm:$0xff]  }
 0x237   :  { %4915 = vmatpush1.bf16.msra.mxu0 %v6747_v1  ;;  %4889 = vmatprep.subr.bf16.mxu1 %v6728_v3  ;;  %v2934_v1 = vpop.f32.mrf.mxu0  ;;  %v572_v3 = vsub.s32 5, %v7487_v59 }
 0x238   :  { %4916 = vmatprep.subr.bf16.mxu0 %v6752_v2  ;;  %v6846_v2 = vld [vmem:[#allocation6 + $0x620] ss:$16 sps:$4 sm:$0xff]  }
 0x23a   :  { %4890 = vmatpush2.bf16.msra.mxu1 %v6726_v51 }
 0x23b   :  { %4917 = vmatpush1.bf16.msra.mxu0 %v6750_v4  ;;  %4891 = vmatprep.subr.bf16.mxu1 %v6731_v9  ;;  %v6854_v4 = vld [vmem:[#allocation6 + $0x604] ss:$16 sps:$4 sm:$0xff]  }
 0x23c   :  { %4918 = vmatprep.subr.bf16.mxu0 %v6755_v6  ;;  %v7577_v6 = vld [vmem:[#allocation4] sm:$0xff] }
 0x23d   :  { %v2975_v45 = vpop.f32.mrf.mxu1  ;;  %v569_v9 = vrot.slane %v7577_v6, %v568_v62  ;;  %v6789_v62 = vld [vmem:[#allocation6 + $0xe8] ss:$16 sps:$4 sm:$0xff]  }
 0x23e   :  { %4892 = vmatpush2.bf16.msra.mxu1 %v6729_v13  ;;  %v2936_v13 = vpop.f32.mrf.mxu0 }
 0x23f   :  { %4919 = vmatpush1.bf16.msra.mxu0 %v6753_v11  ;;  %4893 = vmatprep.subr.bf16.mxu1 %v6734_v14  ;;  %v2977_v58 = vpop.f32.mrf.mxu1  ;;  %v6786_v11 = vld [vmem:[#allocation6 + $0x500] ss:$16 sps:$4 sm:$0xff]  }
 0x240   :  { %4920 = vmatprep.subr.bf16.mxu0 %v6758_v8  ;;  %v6791_v8 = vld [vmem:[#allocation6 + $0xec] ss:$16 sps:$4 sm:$0xff]   ;;  %v6852_v14 = vld [vmem:[#allocation6 + $0x600] ss:$16 sps:$4 sm:$0xff]  }
 0x241   :  { %v2979_v60 = vpop.f32.mrf.mxu1 }
 0x242   :  { %4894 = vmatpush2.bf16.msra.mxu1 %v6732_v23  ;;  %v6860_v23 = vld [vmem:[#allocation6 + $0x7e4] ss:$16 sps:$4 sm:$0xff]  }
 0x243   :  { %4921 = vmatpush1.bf16.msra.mxu0 %v6756_v15  ;;  %4895 = vmatprep.subr.bf16.mxu1 %v6740_v16  ;;  %v2981_v51 = vpop.f32.mrf.mxu1  ;;  %v573_v15 = vrot.slane %v7577_v6, %v572_v3  ;;  %v2933_v16 = vadd.f32 %v2932_v53, %v569_v9  ;;  %v6884_v53 = vld [vmem:[#allocation6 + $0x764] ss:$16 sps:$4 sm:$0xff]   ;;  %v6792_v3 = vld [vmem:[#allocation6 + $0xc8] ss:$16 sps:$4 sm:$0xff]  }
 0x244   :  { %4922 = vmatprep.subr.bf16.mxu0 %v6761_v29 }
 0x245   :  { %v3061_v29 = vpop.f32.mrf.mxu1  ;;  %v2976_v63 = vadd.f32 %v2975_v45, %v2933_v16  ;;  %v6878_v45 = vld [vmem:[#allocation6 + $0x784] ss:$16 sps:$4 sm:$0xff]   ;;  %v6806_v16 = vld [vmem:[#allocation6 + $0x4c] ss:$16 sps:$4 sm:$0xff]  }
 0x246   :  { %4896 = vmatpush2.bf16.msra.mxu1 %v6738_v19  ;;  %v6858_v19 = vld [vmem:[#allocation6 + $0x7e0] ss:$16 sps:$4 sm:$0xff]  }
 0x247   :  { %4923 = vmatpush1.bf16.msra.mxu0 %v6759_v18  ;;  %4897 = vmatprep.subr.bf16.mxu1 %v6746_v39  ;;  %v2938_v18 = vpop.f32.mrf.mxu0  ;;  %v2937_v39 = vadd.f32 %v2936_v13, %v569_v9  ;;  %v6894_v9 = vld [vmem:[#allocation6 + $0x720] ss:$16 sps:$4 sm:$0xff]   ;;  %v6902_v13 = vld [vmem:[#allocation6 + $0x704] ss:$16 sps:$4 sm:$0xff]  }
 0x248   :  { %4924 = vmatprep.subr.bf16.mxu0 %v6764_v40  ;;  %v2935_v40 = vadd.f32 %v2934_v1, %v573_v15  ;;  %v6794_v1 = vld [vmem:[#allocation6 + $0xcc] ss:$16 sps:$4 sm:$0xff]  }
 0x24a   :  { %4898 = vmatpush2.bf16.msra.mxu1 %v6744_v21  ;;  %v3063_v21 = vpop.f32.mrf.mxu1 }
 0x24b   :  { %4925 = vmatpush1.bf16.msra.mxu0 %v6762_v33  ;;  %4953 = vmatprep.subr.bf16.mxu1 %v6812_v24  ;;  %v6866_v33 = vld [vmem:[#allocation6 + $0x7c4] ss:$16 sps:$4 sm:$0xff]   ;;  %v2939_v24 = vadd.f32 %v2938_v18, %v573_v15  ;;  %v6798_v15 = vld [vmem:[#allocation6 + $0x88] ss:$16 sps:$4 sm:$0xff]  }
 0x24c   :  { %4926 = vmatprep.subr.bf16.mxu0 %v6767_v48  ;;  %v6804_v18 = vld [vmem:[#allocation6 + $0x48] ss:$16 sps:$4 sm:$0xff]  }
 0x24d   :  { %4900 = vmatmul.mubr.bf16.vlgmr.msra.gmra.mxu1 %v7572_v20 }
 0x24e   :  { %4954 = vmatpush1.bf16.msra.mxu1 %v6810_v34  ;;  %v2978_v34 = vadd.f32 %v2977_v58, %v2935_v40  ;;  %v6876_v58 = vld [vmem:[#allocation6 + $0x780] ss:$16 sps:$4 sm:$0xff]   ;;  %v6807_v40 = vld [vmem:[#allocation6 + $0x28] ss:$16 sps:$4 sm:$0xff]  }
 0x24f   :  { %4927 = vmatpush2.bf16.msra.mxu0 %v6765_v25  ;;  %4955 = vmatprep.subr.bf16.mxu1 %v6818_v26  ;;  %v2980_v26 = vadd.f32 %v2979_v60, %v2937_v39  ;;  %v6815_v39 = vld [vmem:[#allocation6 + $0xc] ss:$16 sps:$4 sm:$0xff]  }
 0x250   :  { %4928 = vmatprep.subr.bf16.mxu0 %v6770_v43  ;;  %v6864_v43 = vld [vmem:[#allocation6 + $0x7c0] ss:$16 sps:$4 sm:$0xff]  }
 0x252   :  { %4956 = vmatpush1.bf16.msra.mxu1 %v6816_v30  ;;  %v3065_v30 = vpop.f32.mrf.mxu1 }
 0x253   :  { %4929 = vmatpush2.bf16.msra.mxu0 %v6768_v27  ;;  %4957 = vmatprep.subr.bf16.mxu1 %v6824_v12 }
 0x254   :  { %4930 = vmatprep.subr.bf16.mxu0 %v6773_v28  ;;  %v6872_v28 = vld [vmem:[#allocation6 + $0x7a4] ss:$16 sps:$4 sm:$0xff]  }
 0x256   :  { %4958 = vmatpush1.bf16.msra.mxu1 %v6822_v32 }
 0x257   :  { %4931 = vmatpush2.bf16.msra.mxu0 %v6771_v31  ;;  %4959 = vmatprep.subr.bf16.mxu1 %v6830_v57  ;;  %v2982_v31 = vadd.f32 %v2981_v51, %v2939_v24  ;;  %v6797_v51 = vld [vmem:[#allocation6 + $0xac] ss:$16 sps:$4 sm:$0xff]   ;;  %v6825_v24 = vld [vmem:[#allocation6 + $0x1c8] ss:$16 sps:$4 sm:$0xff]  }
 0x258   :  { %4932 = vmatprep.subr.bf16.mxu0 %v6776_v35 }
 0x25a   :  { %4960 = vmatpush1.bf16.msra.mxu1 %v6828_v42 }
 0x25b   :  { %4933 = vmatpush2.bf16.msra.mxu0 %v6774_v38  ;;  %4961 = vmatprep.subr.bf16.mxu1 %v6836_v44  ;;  %v6870_v38 = vld [vmem:[#allocation6 + $0x7a0] ss:$16 sps:$4 sm:$0xff]  }
 0x25c   :  { %4934 = vmatprep.subr.bf16.mxu0 %v6779_v41 }
 0x25e   :  { %4962 = vmatpush1.bf16.msra.mxu1 %v6834_v47 }
 0x25f   :  { %4935 = vmatpush2.bf16.msra.mxu0 %v6777_v10  ;;  %4963 = vmatprep.subr.bf16.mxu1 %v6842_v50  ;;  %v3067_v10 = vpop.f32.mrf.mxu1 }
 0x260   :  { %4936 = vmatprep.subr.bf16.mxu0 %v6782_v46 }
 0x262   :  { %4964 = vmatpush1.bf16.msra.mxu1 %v6840_v55 }
 0x263   :  { %4937 = vmatpush2.bf16.msra.mxu0 %v6780_v52  ;;  %4965 = vmatprep.subr.bf16.mxu1 %v6848_v56  ;;  %v6882_v56 = vld [vmem:[#allocation6 + $0x760] ss:$16 sps:$4 sm:$0xff]  }
 0x264   :  { %4938 = vmatprep.subr.bf16.mxu0 %v6785_v54 }
 0x266   :  { %4966 = vmatpush1.bf16.msra.mxu1 %v6846_v2  ;;  %v6888_v2 = vld [vmem:[#allocation6 + $0x740] ss:$16 sps:$4 sm:$0xff]  }
 0x267   :  { %4939 = vmatpush2.bf16.msra.mxu0 %v6783_v0  ;;  %4967 = vmatprep.subr.bf16.mxu1 %v6854_v4  ;;  %v6896_v4 = vld [vmem:[#allocation6 + $0x724] ss:$16 sps:$4 sm:$0xff]  }
 0x268   :  { %4940 = vmatprep.subr.bf16.mxu0 %v6788_v36  ;;  %v6890_v36 = vld [vmem:[#allocation6 + $0x744] ss:$16 sps:$4 sm:$0xff]  }
 0x26a   :  { %4968 = vmatpush1.bf16.msra.mxu1 %v6852_v14  ;;  %v6900_v14 = vld [vmem:[#allocation6 + $0x700] ss:$16 sps:$4 sm:$0xff]  }
 0x26b   :  { %4941 = vmatpush2.bf16.msra.mxu0 %v6786_v11  ;;  %4969 = vmatprep.subr.bf16.mxu1 %v6860_v23  ;;  %v6795_v11 = vld [vmem:[#allocation6 + $0xa8] ss:$16 sps:$4 sm:$0xff]   ;;  %v6908_v23 = vld [vmem:[#allocation6 + $0x2ec] ss:$16 sps:$4 sm:$0xff]  }
 0x26c   :  { %4996 = vmatprep.subr.bf16.mxu0 %v6791_v8  ;;  %v6800_v8 = vld [vmem:[#allocation6 + $0x8c] ss:$16 sps:$4 sm:$0xff]  }
 0x26e   :  { %v3018_v48 = vpop.f32.mrf.mxu0  ;;  %4970 = vmatpush2.bf16.msra.mxu1 %v6858_v19  ;;  %v6809_v19 = vld [vmem:[#allocation6 + $0x2c] ss:$16 sps:$4 sm:$0xff]  }
 0x26f   :  { %v3019_v27 = vadd.f32 %v3018_v48, %v2976_v63  ;;  %4971 = vmatprep.subr.bf16.mxu1 %v6866_v33  ;;  %v6813_v33 = vld [vmem:[#allocation6 + $0x8] ss:$16 sps:$4 sm:$0xff]   ;;  %v6827_v63 = vld [vmem:[#allocation6 + $0x1cc] ss:$16 sps:$4 sm:$0xff]  }
 0x270   :  { %v3020_v25 = vpop.f32.mrf.mxu0  ;;  %v6819_v48 = vld [vmem:[#allocation6 + $0x1e8] ss:$16 sps:$4 sm:$0xff]  }
 0x271   :  { %v3021_v35 = vadd.f32 %v3020_v25, %v2978_v34  ;;  %v3062_v41 = vadd.f32 %v3061_v29, %v3019_v27  ;;  %v6801_v29 = vld [vmem:[#allocation6 + $0x68] ss:$16 sps:$4 sm:$0xff]   ;;  %v6833_v25 = vld [vmem:[#allocation6 + $0x1ac] ss:$16 sps:$4 sm:$0xff]  }
 0x272   :  { %v3022_v12 = vpop.f32.mrf.mxu0  ;;  %4972 = vmatpush2.bf16.msra.mxu1 %v6864_v43  ;;  %v6831_v43 = vld [vmem:[#allocation6 + $0x1a8] ss:$16 sps:$4 sm:$0xff]   ;;  %v6839_v34 = vld [vmem:[#allocation6 + $0x18c] ss:$16 sps:$4 sm:$0xff]  }
 0x273   :  { %v3023_v32 = vadd.f32 %v3022_v12, %v2980_v26  ;;  %4973 = vmatprep.subr.bf16.mxu1 %v6872_v28  ;;  %v3064_v46 = vadd.f32 %v3063_v21, %v3021_v35  ;;  %v6821_v21 = vld [vmem:[#allocation6 + $0x1ec] ss:$16 sps:$4 sm:$0xff]   ;;  %v6837_v26 = vld [vmem:[#allocation6 + $0x188] ss:$16 sps:$4 sm:$0xff]  }
 0x274   :  { %v3024_v57 = vpop.f32.mrf.mxu0  ;;  %v6845_v27 = vld [vmem:[#allocation6 + $0x16c] ss:$16 sps:$4 sm:$0xff]   ;;  %v6843_v28 = vld [vmem:[#allocation6 + $0x168] ss:$16 sps:$4 sm:$0xff]  }
 0x275   :  { %v3066_v42 = vadd.f32 %v3065_v30, %v3023_v32  ;;  %v3025_v44 = vadd.f32 %v3024_v57, %v2982_v31  ;;  %v6851_v30 = vld [vmem:[#allocation6 + $0x14c] ss:$16 sps:$4 sm:$0xff]   ;;  %v6849_v12 = vld [vmem:[#allocation6 + $0x148] ss:$16 sps:$4 sm:$0xff]  }
 0x276   :  { %4974 = vmatpush2.bf16.msra.mxu1 %v6870_v38  ;;  %v6857_v31 = vld [vmem:[#allocation6 + $0x12c] ss:$16 sps:$4 sm:$0xff]   ;;  %v6855_v35 = vld [vmem:[#allocation6 + $0x128] ss:$16 sps:$4 sm:$0xff]  }
 0x277   :  { %v3246_v47 = vpack.c.bf16 %v3066_v42, %v3062_v41  ;;  %v3068_v50 = vadd.f32 %v3067_v10, %v3025_v44  ;;  %4975 = vmatprep.subr.bf16.mxu1 %v6878_v45  ;;  %v6863_v32 = vld [vmem:[#allocation6 + $0x10c] ss:$16 sps:$4 sm:$0xff]   ;;  %v6861_v38 = vld [vmem:[#allocation6 + $0x108] ss:$16 sps:$4 sm:$0xff]  }
 0x278   :  { %v6869_v41 = vld [vmem:[#allocation6 + $0x4ec] ss:$16 sps:$4 sm:$0xff]   ;;  %v6867_v44 = vld [vmem:[#allocation6 + $0x4e8] ss:$16 sps:$4 sm:$0xff]  }
 0x279   :  { %v3247_v52 = vpack.c.bf16 %v3068_v50, %v3064_v46  ;;  %v3254_v54 = vmul.bf16 1045249613, %v3246_v47  ;;  %v6875_v45 = vld [vmem:[#allocation6 + $0x4cc] ss:$16 sps:$4 sm:$0xff]   ;;  %v6873_v46 = vld [vmem:[#allocation6 + $0x4c8] ss:$16 sps:$4 sm:$0xff]  }
 0x27a   :  { %4976 = vmatpush2.bf16.msra.mxu1 %v6876_v58 }
 0x27b   :  { %v3255_v55 = vmul.bf16 1045249613, %v3247_v52  ;;  %4977 = vmatprep.subr.bf16.mxu1 %v6884_v53  ;;  %v7583_v0 = vmax.bf16 %v3254_v54, %v3246_v47  ;;  %v6881_v47 = vld [vmem:[#allocation6 + $0x4ac] ss:$16 sps:$4 sm:$0xff]   ;;  %v576_v53 = vsub.s32 6, %v7487_v59 }
 0x27c   :  { %v6887_v54 = vld [vmem:[#allocation6 + $0x48c] ss:$16 sps:$4 sm:$0xff]  }
 0x27d   :  { %v7581_v60 = vmax.bf16 %v3255_v55, %v3247_v52  ;;  %v6879_v52 = vld [vmem:[#allocation6 + $0x4a8] ss:$16 sps:$4 sm:$0xff]  }
 0x27e   :  { %4978 = vmatpush2.bf16.msra.mxu1 %v6882_v56 }
 0x27f   :  { %4942 = vmatprep.mubr.bf16.mxu0 %v7581_v60  ;;  %4979 = vmatprep.subr.bf16.mxu1 %v6890_v36  ;;  %v6893_v36 = vld [vmem:[#allocation6 + $0x46c] ss:$16 sps:$4 sm:$0xff]  }
 0x280   :  { %4943 = vmatmul.mubr.bf16.vlgmr.msra.gmra.mxu0 %v7583_v0 }
 0x281   :  { %4997 = vmatpush1.bf16.msra.mxu0 %v6789_v62  ;;  %5028 = vmatprep.mubr.bf16.mxu0 %v7544_v61  ;;  %v6803_v61 = vld [vmem:[#allocation6 + $0x6c] ss:$16 sps:$4 sm:$0xff]   ;;  %v580_v62 = vsub.s32 7, %v7487_v59 }
 0x282   :  { %4998 = vmatprep.subr.bf16.mxu0 %v6794_v1  ;;  %4980 = vmatpush2.bf16.msra.mxu1 %v6888_v2  ;;  %v6885_v1 = vld [vmem:[#allocation6 + $0x488] ss:$16 sps:$4 sm:$0xff]  }
 0x283   :  { %4981 = vmatprep.subr.bf16.mxu1 %v6896_v4  ;;  %v581_v4 = vrot.slane %v7577_v6, %v580_v62  ;;  %v6924_v62 = vld [vmem:[#allocation6 + $0x288] ss:$16 sps:$4 sm:$0xff]  }
 0x285   :  { %4999 = vmatpush1.bf16.msra.mxu0 %v6792_v3  ;;  %v3104_v57 = vpop.f32.mrf.mxu1 }
 0x286   :  { %5000 = vmatprep.subr.bf16.mxu0 %v6797_v51  ;;  %4982 = vmatpush2.bf16.msra.mxu1 %v6894_v9  ;;  %v6891_v9 = vld [vmem:[#allocation6 + $0x468] ss:$16 sps:$4 sm:$0xff]  }
 0x287   :  { %4983 = vmatprep.subr.bf16.mxu1 %v6902_v13  ;;  %v3106_v42 = vpop.f32.mrf.mxu1 }
 0x289   :  { %5001 = vmatpush1.bf16.msra.mxu0 %v6795_v11  ;;  %v3108_v10 = vpop.f32.mrf.mxu1 }
 0x28a   :  { %5002 = vmatprep.subr.bf16.mxu0 %v6800_v8  ;;  %4984 = vmatpush2.bf16.msra.mxu1 %v6900_v14  ;;  %v6899_v8 = vld [vmem:[#allocation6 + $0x44c] ss:$16 sps:$4 sm:$0xff]  }
 0x28b   :  { %5039 = vmatprep.subr.bf16.mxu1 %v6908_v23  ;;  %v3110_v58 = vpop.f32.mrf.mxu1  ;;  %v3107_v23 = vadd.f32 %v3106_v42, %v581_v4  ;;  %v6906_v42 = vld [vmem:[#allocation6 + $0x2e8] ss:$16 sps:$4 sm:$0xff]  }
 0x28d   :  { %5003 = vmatpush1.bf16.msra.mxu0 %v6798_v15 }
 0x28e   :  { %5004 = vmatprep.subr.bf16.mxu0 %v6803_v61  ;;  %v3111_v61 = vadd.f32 %v3110_v58, %v581_v4  ;;  %v6921_v58 = vld [vmem:[#allocation6 + $0x5c8] ss:$16 sps:$4 sm:$0xff]  }
 0x28f   :  { %v6936_v4 = vld [vmem:[#allocation6 + $0x248] ss:$16 sps:$4 sm:$0xff]  }
 0x291   :  { %5005 = vmatpush1.bf16.msra.mxu0 %v6801_v29 }
 0x292   :  { %5006 = vmatprep.subr.bf16.mxu0 %v6806_v16 }
 0x295   :  { %5007 = vmatpush1.bf16.msra.mxu0 %v6804_v18 }
 0x296   :  { %5008 = vmatprep.subr.bf16.mxu0 %v6809_v19  ;;  %v6897_v19 = vld [vmem:[#allocation6 + $0x448] ss:$16 sps:$4 sm:$0xff]  }
 0x299   :  { %5009 = vmatpush1.bf16.msra.mxu0 %v6807_v40 }
 0x29a   :  { %5010 = vmatprep.subr.bf16.mxu0 %v6815_v39 }
 0x29d   :  { %5011 = vmatpush1.bf16.msra.mxu0 %v6813_v33 }
 0x29e   :  { %5012 = vmatprep.subr.bf16.mxu0 %v6821_v21  ;;  %v6905_v21 = vld [vmem:[#allocation6 + $0x42c] ss:$16 sps:$4 sm:$0xff]  }
 0x2a1   :  { %5013 = vmatpush2.bf16.msra.mxu0 %v6819_v48 }
 0x2a2   :  { %5014 = vmatprep.subr.bf16.mxu0 %v6827_v63 }
 0x2a5   :  { %5015 = vmatpush2.bf16.msra.mxu0 %v6825_v24 }
 0x2a6   :  { %5016 = vmatprep.subr.bf16.mxu0 %v6833_v25 }
 0x2a9   :  { %5017 = vmatpush2.bf16.msra.mxu0 %v6831_v43 }
 0x2aa   :  { %5018 = vmatprep.subr.bf16.mxu0 %v6839_v34 }
 0x2ad   :  { %5019 = vmatpush2.bf16.msra.mxu0 %v6837_v26  ;;  %v6903_v26 = vld [vmem:[#allocation6 + $0x428] ss:$16 sps:$4 sm:$0xff]  }
 0x2ae   :  { %5020 = vmatprep.subr.bf16.mxu0 %v6845_v27  ;;  %v3147_v50 = vpop.f32.mrf.mxu0 }
 0x2b0   :  { %v3149_v55 = vpop.f32.mrf.mxu0 }
 0x2b1   :  { %5021 = vmatpush2.bf16.msra.mxu0 %v6843_v28  ;;  %v3150_v40 = vadd.f32 %v3149_v55, %v3107_v23  ;;  %v6927_v55 = vld [vmem:[#allocation6 + $0x5a8] ss:$16 sps:$4 sm:$0xff]  }
 0x2b2   :  { %5022 = vmatprep.subr.bf16.mxu0 %v6851_v30  ;;  %v3151_v2 = vpop.f32.mrf.mxu0  ;;  %v6948_v23 = vld [vmem:[#allocation6 + $0x208] ss:$16 sps:$4 sm:$0xff]  }
 0x2b4   :  { %v3153_v14 = vpop.f32.mrf.mxu0 }
 0x2b5   :  { %5023 = vmatpush2.bf16.msra.mxu0 %v6849_v12  ;;  %v3154_v39 = vadd.f32 %v3153_v14, %v3111_v61  ;;  %v6911_v12 = vld [vmem:[#allocation6 + $0x40c] ss:$16 sps:$4 sm:$0xff]   ;;  %v6951_v14 = vld [vmem:[#allocation6 + $0x528] ss:$16 sps:$4 sm:$0xff]  }
 0x2b6   :  { %5024 = vmatprep.subr.bf16.mxu0 %v6857_v31  ;;  %v6956_v61 = vld [vmem:[#allocation6 + $0x3ec] ss:$16 sps:$4 sm:$0xff]  }
 0x2b9   :  { %5025 = vmatpush2.bf16.msra.mxu0 %v6855_v35 }
 0x2ba   :  { %5026 = vmatprep.subr.bf16.mxu0 %v6863_v32  ;;  %v6909_v32 = vld [vmem:[#allocation6 + $0x408] ss:$16 sps:$4 sm:$0xff]  }
 0x2bd   :  { %5027 = vmatpush2.bf16.msra.mxu0 %v6861_v38  ;;  %v6917_v38 = vld [vmem:[#allocation6 + $0x5ec] ss:$16 sps:$4 sm:$0xff]  }
 0x2be   :  { %5082 = vmatprep.subr.bf16.mxu0 %v6869_v41 }
 0x2c0   :  { %5029 = vmatmul.mubr.bf16.vlgmr.msra.gmra.mxu0 %v7567_v7 }
 0x2c1   :  { %5083 = vmatpush1.bf16.msra.mxu0 %v6867_v44  ;;  %5114 = vmatprep.mubr.bf16.mxu0 %v7581_v60  ;;  %v577_v60 = vrot.slane %v7577_v6, %v576_v53  ;;  %v6918_v53 = vld [vmem:[#allocation6 + $0x2a8] ss:$16 sps:$4 sm:$0xff]  }
 0x2c2   :  { %5084 = vmatprep.subr.bf16.mxu0 %v6875_v45  ;;  %v6914_v45 = vld [vmem:[#allocation6 + $0x2cc] ss:$16 sps:$4 sm:$0xff]  }
 0x2c3   :  { %v3105_v11 = vadd.f32 %v3104_v57, %v577_v60  ;;  %v3109_v13 = vadd.f32 %v3108_v10, %v577_v60  ;;  %v6915_v10 = vld [vmem:[#allocation6 + $0x5e8] ss:$16 sps:$4 sm:$0xff]  }
 0x2c4   :  { %v6930_v60 = vld [vmem:[#allocation6 + $0x268] ss:$16 sps:$4 sm:$0xff]  }
 0x2c5   :  { %5085 = vmatpush1.bf16.msra.mxu0 %v6873_v46  ;;  %v3190_v56 = vpop.f32.mrf.mxu1  ;;  %v3148_v29 = vadd.f32 %v3147_v50, %v3105_v11  ;;  %v3152_v16 = vadd.f32 %v3151_v2, %v3109_v13  ;;  %v6923_v46 = vld [vmem:[#allocation6 + $0x5cc] ss:$16 sps:$4 sm:$0xff]   ;;  %v6939_v2 = vld [vmem:[#allocation6 + $0x568] ss:$16 sps:$4 sm:$0xff]  }
 0x2c6   :  { %5086 = vmatprep.subr.bf16.mxu0 %v6881_v47  ;;  %v6912_v47 = vld [vmem:[#allocation6 + $0x2c8] ss:$16 sps:$4 sm:$0xff]   ;;  %v6920_v50 = vld [vmem:[#allocation6 + $0x2ac] ss:$16 sps:$4 sm:$0xff]  }
 0x2c7   :  { %v3192_v7 = vpop.f32.mrf.mxu1  ;;  %v3191_v33 = vadd.f32 %v3190_v56, %v3148_v29  ;;  %v6935_v56 = vld [vmem:[#allocation6 + $0x58c] ss:$16 sps:$4 sm:$0xff]   ;;  %v6942_v13 = vld [vmem:[#allocation6 + $0x228] ss:$16 sps:$4 sm:$0xff]  }
 0x2c8   :  { %v3193_v63 = vadd.f32 %v3192_v7, %v3150_v40  ;;  %v6933_v7 = vld [vmem:[#allocation6 + $0x588] ss:$16 sps:$4 sm:$0xff]   ;;  %v6953_v11 = vld [vmem:[#allocation6 + $0x52c] ss:$16 sps:$4 sm:$0xff]  }
 0x2c9   :  { %5087 = vmatpush1.bf16.msra.mxu0 %v6879_v52  ;;  %v3194_v3 = vpop.f32.mrf.mxu1  ;;  %v6929_v52 = vld [vmem:[#allocation6 + $0x5ac] ss:$16 sps:$4 sm:$0xff]   ;;  %v6957_v29 = vld [vmem:[#allocation6 + $0x508] ss:$16 sps:$4 sm:$0xff]  }
 0x2ca   :  { %5088 = vmatprep.subr.bf16.mxu0 %v6887_v54  ;;  %v3195_v6 = vadd.f32 %v3194_v3, %v3152_v16  ;;  %v6926_v54 = vld [vmem:[#allocation6 + $0x28c] ss:$16 sps:$4 sm:$0xff]   ;;  %v7031_v16 = vld [vmem:[#allocation9 + $0x74] ss:$8 sps:$4 sm:$0xff]  }
 0x2cb   :  { %v3196_v51 = vpop.f32.mrf.mxu1  ;;  %v6947_v3 = vld [vmem:[#allocation6 + $0x54c] ss:$16 sps:$4 sm:$0xff]  }
 0x2cc   :  { %v3197_v24 = vadd.f32 %v3196_v51, %v3154_v39  ;;  %v6944_v51 = vld [vmem:[#allocation6 + $0x22c] ss:$16 sps:$4 sm:$0xff]   ;;  %v7034_v39 = vld [vmem:[#allocation9 + $0x64] ss:$8 sps:$4 sm:$0xff]  }
 0x2cd   :  { %5089 = vmatpush1.bf16.msra.mxu0 %v6885_v1  ;;  %v3233_v15 = vpop.f32.mrf.mxu1  ;;  %v6941_v1 = vld [vmem:[#allocation6 + $0x56c] ss:$16 sps:$4 sm:$0xff]  }
 0x2ce   :  { %5090 = vmatprep.subr.bf16.mxu0 %v6893_v36  ;;  %v3234_v25 = vadd.f32 %v3233_v15, %v3191_v33  ;;  %v6938_v36 = vld [vmem:[#allocation6 + $0x24c] ss:$16 sps:$4 sm:$0xff]   ;;  %v6960_v33 = vld [vmem:[#allocation6 + $0x3c8] ss:$16 sps:$4 sm:$0xff]  }
 0x2cf   :  { %v3235_v18 = vpop.f32.mrf.mxu1  ;;  %v6959_v15 = vld [vmem:[#allocation6 + $0x50c] ss:$16 sps:$4 sm:$0xff]  }
 0x2d0   :  { %v3236_v27 = vadd.f32 %v3235_v18, %v3193_v63  ;;  %v6954_v18 = vld [vmem:[#allocation6 + $0x3e8] ss:$16 sps:$4 sm:$0xff]   ;;  %v7029_v40 = vld [vmem:[#allocation9 + $0x70] ss:$8 sps:$4 sm:$0xff]  }
 0x2d1   :  { %5091 = vmatpush1.bf16.msra.mxu0 %v6891_v9  ;;  %v3237_v48 = vpop.f32.mrf.mxu1  ;;  %v6945_v9 = vld [vmem:[#allocation6 + $0x548] ss:$16 sps:$4 sm:$0xff]  }
 0x2d2   :  { %5092 = vmatprep.subr.bf16.mxu0 %v6899_v8  ;;  %v3238_v43 = vadd.f32 %v3237_v48, %v3195_v6  ;;  %v6950_v8 = vld [vmem:[#allocation6 + $0x20c] ss:$16 sps:$4 sm:$0xff]   ;;  %v7037_v48 = vld [vmem:[#allocation9 + $0x54] ss:$8 sps:$4 sm:$0xff]  }
 0x2d3   :  { %v3239_v34 = vpop.f32.mrf.mxu1  ;;  %v6965_v6 = vld [vmem:[#allocation6 + $0x3ac] ss:$16 sps:$4 sm:$0xff]   ;;  %v6963_v63 = vld [vmem:[#allocation6 + $0x3a8] ss:$16 sps:$4 sm:$0xff]  }
 0x2d4   :  { %v3248_v28 = vpack.c.bf16 %v3238_v43, %v3234_v25  ;;  %v3240_v30 = vadd.f32 %v3239_v34, %v3197_v24  ;;  %v6968_v24 = vld [vmem:[#allocation6 + $0x38c] ss:$16 sps:$4 sm:$0xff]   ;;  %v7040_v43 = vld [vmem:[#allocation9 + $0x44] ss:$8 sps:$4 sm:$0xff]  }
 0x2d5   :  { %5093 = vmatpush1.bf16.msra.mxu0 %v6897_v19  ;;  %v6962_v19 = vld [vmem:[#allocation6 + $0x3cc] ss:$16 sps:$4 sm:$0xff]   ;;  %v6966_v34 = vld [vmem:[#allocation6 + $0x388] ss:$16 sps:$4 sm:$0xff]  }
 0x2d6   :  { %5094 = vmatprep.subr.bf16.mxu0 %v6905_v21  ;;  %v3249_v31 = vpack.c.bf16 %v3240_v30, %v3236_v27  ;;  %v3256_v35 = vmul.bf16 1045249613, %v3248_v28  ;;  %v7032_v21 = vld [vmem:[#allocation9 + $0x60] ss:$8 sps:$4 sm:$0xff]   ;;  %v7035_v25 = vld [vmem:[#allocation9 + $0x50] ss:$8 sps:$4 sm:$0xff]  }
 0x2d7   :  { %v7043_v27 = vld [vmem:[#allocation9 + $0x34] ss:$8 sps:$4 sm:$0xff]   ;;  %v6974_v30 = vld [vmem:[#allocation6 + $0x34c] ss:$16 sps:$4 sm:$0xff]  }
 0x2d8   :  { %v3257_v57 = vmul.bf16 1045249613, %v3249_v31  ;;  %v7596_v44 = vmax.bf16 %v3256_v35, %v3248_v28  ;;  %v6969_v28 = vld [vmem:[#allocation6 + $0x368] ss:$16 sps:$4 sm:$0xff]  }
 0x2d9   :  { %5095 = vmatpush1.bf16.msra.mxu0 %v6903_v26  ;;  %v6971_v26 = vld [vmem:[#allocation6 + $0x36c] ss:$16 sps:$4 sm:$0xff]   ;;  %v6972_v35 = vld [vmem:[#allocation6 + $0x348] ss:$16 sps:$4 sm:$0xff]  }
 0x2da   :  { %5096 = vmatprep.subr.bf16.mxu0 %v6911_v12  ;;  %v7594_v41 = vmax.bf16 %v3257_v57, %v3249_v31  ;;  %v7041_v12 = vld [vmem:[#allocation9 + $0x30] ss:$8 sps:$4 sm:$0xff]   ;;  %v7046_v31 = vld [vmem:[#allocation9 + $0x24] ss:$8 sps:$4 sm:$0xff]   ;;  %v7044_v57 = vld [vmem:[#allocation9 + $0x20] ss:$8 sps:$4 sm:$0xff]  }
 0x2dc   :  { %4985 = vmatprep.mubr.bf16.mxu1 %v7594_v41 }
 0x2dd   :  { %5097 = vmatpush1.bf16.msra.mxu0 %v6909_v32  ;;  %4986 = vmatmul.mubr.bf16.vlgmr.msra.gmra.mxu1 %v7596_v44  ;;  %v6977_v32 = vld [vmem:[#allocation6 + $0x32c] ss:$16 sps:$4 sm:$0xff]  }
 0x2de   :  { %5098 = vmatprep.subr.bf16.mxu0 %v6917_v38  ;;  %5040 = vmatpush1.bf16.msra.mxu1 %v6906_v42  ;;  %v7049_v38 = vld [vmem:[#allocation9 + $0x14] ss:$8 sps:$4 sm:$0xff]  }
 0x2df   :  { %5071 = vmatprep.mubr.bf16.mxu1 %v7560_v17  ;;  %5041 = vmatprep.subr.bf16.mxu1 %v6914_v45  ;;  %v6932_v17 = vld [vmem:[#allocation6 + $0x26c] ss:$16 sps:$4 sm:$0xff]   ;;  %v6975_v42 = vld [vmem:[#allocation6 + $0x328] ss:$16 sps:$4 sm:$0xff]  }
 0x2e0   :  { %v6980_v45 = vld [vmem:[#allocation6 + $0x30c] ss:$16 sps:$4 sm:$0xff]  }
 0x2e1   :  { %5099 = vmatpush2.bf16.msra.mxu0 %v6915_v10  ;;  %v7047_v10 = vld [vmem:[#allocation9 + $0x10] ss:$8 sps:$4 sm:$0xff]  }
 0x2e2   :  { %5100 = vmatprep.subr.bf16.mxu0 %v6923_v46  ;;  %5042 = vmatpush1.bf16.msra.mxu1 %v6912_v47  ;;  %v7052_v46 = vld [vmem:[#allocation9 + $0x4] ss:$8 sps:$4 sm:$0xff]  }
 0x2e3   :  { %5043 = vmatprep.subr.bf16.mxu1 %v6920_v50  ;;  %v6978_v47 = vld [vmem:[#allocation6 + $0x308] ss:$16 sps:$4 sm:$0xff]   ;;  %v6983_v50 = vld [vmem:[#allocation6 + $0x6ec] ss:$16 sps:$4 sm:$0xff]  }
 0x2e5   :  { %5101 = vmatpush2.bf16.msra.mxu0 %v6921_v58  ;;  %v7050_v58 = vld [vmem:[#allocation9] ss:$8 sps:$4 sm:$0xff]  }
 0x2e6   :  { %5102 = vmatprep.subr.bf16.mxu0 %v6929_v52  ;;  %5044 = vmatpush1.bf16.msra.mxu1 %v6918_v53  ;;  %v7055_v52 = vld [vmem:[#allocation9 + $0xf4] ss:$8 sps:$4 sm:$0xff]  }
 0x2e7   :  { %5045 = vmatprep.subr.bf16.mxu1 %v6926_v54  ;;  %v6981_v53 = vld [vmem:[#allocation6 + $0x6e8] ss:$16 sps:$4 sm:$0xff]   ;;  %v6986_v54 = vld [vmem:[#allocation6 + $0x6cc] ss:$16 sps:$4 sm:$0xff]  }
 0x2e9   :  { %5103 = vmatpush2.bf16.msra.mxu0 %v6927_v55  ;;  %v7053_v55 = vld [vmem:[#allocation9 + $0xf0] ss:$8 sps:$4 sm:$0xff]  }
 0x2ea   :  { %5104 = vmatprep.subr.bf16.mxu0 %v6935_v56  ;;  %5046 = vmatpush1.bf16.msra.mxu1 %v6924_v62  ;;  %v7058_v56 = vld [vmem:[#allocation9 + $0xe4] ss:$8 sps:$4 sm:$0xff]  }
 0x2eb   :  { %5047 = vmatprep.subr.bf16.mxu1 %v6932_v17  ;;  %v6984_v62 = vld [vmem:[#allocation6 + $0x6c8] ss:$16 sps:$4 sm:$0xff]   ;;  %v6989_v17 = vld [vmem:[#allocation6 + $0x6ac] ss:$16 sps:$4 sm:$0xff]  }
 0x2ed   :  { %5105 = vmatpush2.bf16.msra.mxu0 %v6933_v7  ;;  %v7056_v7 = vld [vmem:[#allocation9 + $0xe0] ss:$8 sps:$4 sm:$0xff]  }
 0x2ee   :  { %5106 = vmatprep.subr.bf16.mxu0 %v6941_v1  ;;  %5048 = vmatpush1.bf16.msra.mxu1 %v6930_v60  ;;  %v7061_v1 = vld [vmem:[#allocation9 + $0xd4] ss:$8 sps:$4 sm:$0xff]  }
 0x2ef   :  { %5049 = vmatprep.subr.bf16.mxu1 %v6938_v36  ;;  %v6987_v60 = vld [vmem:[#allocation6 + $0x6a8] ss:$16 sps:$4 sm:$0xff]   ;;  %v6992_v36 = vld [vmem:[#allocation6 + $0x68c] ss:$16 sps:$4 sm:$0xff]  }
 0x2f1   :  { %5107 = vmatpush2.bf16.msra.mxu0 %v6939_v2  ;;  %v7059_v2 = vld [vmem:[#allocation9 + $0xd0] ss:$8 sps:$4 sm:$0xff]  }
 0x2f2   :  { %5108 = vmatprep.subr.bf16.mxu0 %v6947_v3  ;;  %5050 = vmatpush1.bf16.msra.mxu1 %v6936_v4  ;;  %v7064_v3 = vld [vmem:[#allocation9 + $0xc4] ss:$8 sps:$4 sm:$0xff]   ;;  %v6995_v4 = vld [vmem:[#allocation6 + $0x66c] ss:$16 sps:$4 sm:$0xff]  }
 0x2f3   :  { %5051 = vmatprep.subr.bf16.mxu1 %v6944_v51  ;;  %v7067_v51 = vld [vmem:[#allocation9 + $0xb4] ss:$8 sps:$4 sm:$0xff]  }
 0x2f5   :  { %5109 = vmatpush2.bf16.msra.mxu0 %v6945_v9  ;;  %v6993_v9 = vld [vmem:[#allocation6 + $0x668] ss:$16 sps:$4 sm:$0xff]  }
 0x2f6   :  { %5110 = vmatprep.subr.bf16.mxu0 %v6953_v11  ;;  %5052 = vmatpush1.bf16.msra.mxu1 %v6942_v13  ;;  %v6998_v11 = vld [vmem:[#allocation6 + $0x64c] ss:$16 sps:$4 sm:$0xff]  }
 0x2f7   :  { %5053 = vmatprep.subr.bf16.mxu1 %v6950_v8  ;;  %v7065_v13 = vld [vmem:[#allocation9 + $0xb0] ss:$8 sps:$4 sm:$0xff]   ;;  %v7070_v8 = vld [vmem:[#allocation9 + $0xa4] ss:$8 sps:$4 sm:$0xff]  }
 0x2f9   :  { %5111 = vmatpush2.bf16.msra.mxu0 %v6951_v14  ;;  %v6996_v14 = vld [vmem:[#allocation6 + $0x648] ss:$16 sps:$4 sm:$0xff]  }
 0x2fa   :  { %5112 = vmatprep.subr.bf16.mxu0 %v6959_v15  ;;  %5054 = vmatpush1.bf16.msra.mxu1 %v6948_v23  ;;  %v7001_v15 = vld [vmem:[#allocation6 + $0x62c] ss:$16 sps:$4 sm:$0xff]  }
 0x2fb   :  { %5055 = vmatprep.subr.bf16.mxu1 %v6956_v61  ;;  %v7068_v23 = vld [vmem:[#allocation9 + $0xa0] ss:$8 sps:$4 sm:$0xff]   ;;  %v7073_v61 = vld [vmem:[#allocation9 + $0x94] ss:$8 sps:$4 sm:$0xff]  }
 0x2fd   :  { %5113 = vmatpush2.bf16.msra.mxu0 %v6957_v29  ;;  %v6999_v29 = vld [vmem:[#allocation6 + $0x628] ss:$16 sps:$4 sm:$0xff]  }
 0x2fe   :  { %5576 = vmatprep.subr.bf16.mxu0 %v7031_v16  ;;  %5056 = vmatpush2.bf16.msra.mxu1 %v6954_v18  ;;  %v7004_v16 = vld [vmem:[#allocation6 + $0x60c] ss:$16 sps:$4 sm:$0xff]  }
 0x2ff   :  { %5057 = vmatprep.subr.bf16.mxu1 %v6962_v19  ;;  %v7071_v18 = vld [vmem:[#allocation9 + $0x90] ss:$8 sps:$4 sm:$0xff]   ;;  %v7076_v19 = vld [vmem:[#allocation9 + $0x84] ss:$8 sps:$4 sm:$0xff]  }
 0x300   :  { %5115 = vmatmul.mubr.bf16.vlgmr.msra.gmra.mxu0 %v7583_v0  ;;  %v7038_v0 = vld [vmem:[#allocation9 + $0x40] ss:$8 sps:$4 sm:$0xff]  }
 0x301   :  { %5577 = vmatpush1.bf16.msra.mxu0 %v7029_v40  ;;  %v7002_v40 = vld [vmem:[#allocation6 + $0x608] ss:$16 sps:$4 sm:$0xff]  }
 0x302   :  { %5578 = vmatprep.subr.bf16.mxu0 %v7034_v39  ;;  %5058 = vmatpush2.bf16.msra.mxu1 %v6960_v33  ;;  %v7007_v39 = vld [vmem:[#allocation6 + $0x7ec] ss:$16 sps:$4 sm:$0xff]  }
 0x303   :  { %5059 = vmatprep.subr.bf16.mxu1 %v6965_v6  ;;  %v7074_v33 = vld [vmem:[#allocation9 + $0x80] ss:$8 sps:$4 sm:$0xff]   ;;  %v7005_v6 = vld [vmem:[#allocation6 + $0x7e8] ss:$16 sps:$4 sm:$0xff]  }
 0x305   :  { %5579 = vmatpush1.bf16.msra.mxu0 %v7032_v21  ;;  %v7010_v21 = vld [vmem:[#allocation6 + $0x7cc] ss:$16 sps:$4 sm:$0xff]  }
 0x306   :  { %5580 = vmatprep.subr.bf16.mxu0 %v7037_v48  ;;  %5060 = vmatpush2.bf16.msra.mxu1 %v6963_v63  ;;  %v7008_v48 = vld [vmem:[#allocation6 + $0x7c8] ss:$16 sps:$4 sm:$0xff]   ;;  %v7013_v63 = vld [vmem:[#allocation6 + $0x7ac] ss:$16 sps:$4 sm:$0xff]  }
 0x307   :  { %5061 = vmatprep.subr.bf16.mxu1 %v6968_v24  ;;  %v7011_v24 = vld [vmem:[#allocation6 + $0x7a8] ss:$16 sps:$4 sm:$0xff]  }
 0x309   :  { %5581 = vmatpush1.bf16.msra.mxu0 %v7035_v25  ;;  %v7016_v25 = vld [vmem:[#allocation6 + $0x78c] ss:$16 sps:$4 sm:$0xff]  }
 0x30a   :  { %5582 = vmatprep.subr.bf16.mxu0 %v7040_v43  ;;  %5062 = vmatpush2.bf16.msra.mxu1 %v6966_v34  ;;  %v7014_v43 = vld [vmem:[#allocation6 + $0x788] ss:$16 sps:$4 sm:$0xff]   ;;  %v7019_v34 = vld [vmem:[#allocation6 + $0x76c] ss:$16 sps:$4 sm:$0xff]  }
 0x30b   :  { %5063 = vmatprep.subr.bf16.mxu1 %v6971_v26  ;;  %v7017_v26 = vld [vmem:[#allocation6 + $0x768] ss:$16 sps:$4 sm:$0xff]  }
 0x30d   :  { %5583 = vmatpush1.bf16.msra.mxu0 %v7038_v0  ;;  %v7022_v0 = vld [vmem:[#allocation6 + $0x74c] ss:$16 sps:$4 sm:$0xff]  }
 0x30e   :  { %5584 = vmatprep.subr.bf16.mxu0 %v7043_v27  ;;  %5064 = vmatpush2.bf16.msra.mxu1 %v6969_v28  ;;  %v7020_v27 = vld [vmem:[#allocation6 + $0x748] ss:$16 sps:$4 sm:$0xff]   ;;  %v7025_v28 = vld [vmem:[#allocation6 + $0x72c] ss:$16 sps:$4 sm:$0xff]  }
 0x30f   :  { %5065 = vmatprep.subr.bf16.mxu1 %v6974_v30  ;;  %v7023_v30 = vld [vmem:[#allocation6 + $0x728] ss:$16 sps:$4 sm:$0xff]  }
 0x311   :  { %5585 = vmatpush1.bf16.msra.mxu0 %v7041_v12  ;;  %v7028_v12 = vld [vmem:[#allocation6 + $0x70c] ss:$16 sps:$4 sm:$0xff]  }
 0x312   :  { %5586 = vmatprep.subr.bf16.mxu0 %v7046_v31  ;;  %5066 = vmatpush2.bf16.msra.mxu1 %v6972_v35  ;;  %v7026_v31 = vld [vmem:[#allocation6 + $0x708] ss:$16 sps:$4 sm:$0xff]   ;;  %v7077_v35 = vld [vmem:[#allocation9 + $0x170] ss:$8 sps:$4 sm:$0xff]  }
 0x313   :  { %5067 = vmatprep.subr.bf16.mxu1 %v6977_v32  ;;  %v7079_v32 = vld [vmem:[#allocation9 + $0x174] ss:$8 sps:$4 sm:$0xff]  }
 0x315   :  { %5587 = vmatpush1.bf16.msra.mxu0 %v7044_v57  ;;  %v7082_v57 = vld [vmem:[#allocation9 + $0x164] ss:$8 sps:$4 sm:$0xff]  }
 0x316   :  { %5588 = vmatprep.subr.bf16.mxu0 %v7049_v38  ;;  %5068 = vmatpush2.bf16.msra.mxu1 %v6975_v42  ;;  %v7080_v38 = vld [vmem:[#allocation9 + $0x160] ss:$8 sps:$4 sm:$0xff]   ;;  %v7085_v42 = vld [vmem:[#allocation9 + $0x154] ss:$8 sps:$4 sm:$0xff]  }
 0x317   :  { %5069 = vmatprep.subr.bf16.mxu1 %v6980_v45  ;;  %v7083_v45 = vld [vmem:[#allocation9 + $0x150] ss:$8 sps:$4 sm:$0xff]  }
 0x319   :  { %5589 = vmatpush1.bf16.msra.mxu0 %v7047_v10  ;;  %v7088_v10 = vld [vmem:[#allocation9 + $0x144] ss:$8 sps:$4 sm:$0xff]  }
 0x31a   :  { %5590 = vmatprep.subr.bf16.mxu0 %v7052_v46  ;;  %5070 = vmatpush2.bf16.msra.mxu1 %v6978_v47  ;;  %v7086_v46 = vld [vmem:[#allocation9 + $0x140] ss:$8 sps:$4 sm:$0xff]   ;;  %v7091_v47 = vld [vmem:[#allocation9 + $0x134] ss:$8 sps:$4 sm:$0xff]  }
 0x31b   :  { %5125 = vmatprep.subr.bf16.mxu1 %v6983_v50  ;;  %v7089_v50 = vld [vmem:[#allocation9 + $0x130] ss:$8 sps:$4 sm:$0xff]  }
 0x31d   :  { %5591 = vmatpush1.bf16.msra.mxu0 %v7050_v58  ;;  %5072 = vmatmul.mubr.bf16.vlgmr.msra.gmra.mxu1 %v7572_v20  ;;  %v6990_v20 = vld [vmem:[#allocation6 + $0x688] ss:$16 sps:$4 sm:$0xff]   ;;  %v7092_v58 = vld [vmem:[#allocation9 + $0x120] ss:$8 sps:$4 sm:$0xff]  }
 0x31e   :  { %5592 = vmatprep.subr.bf16.mxu0 %v7055_v52  ;;  %5126 = vmatpush1.bf16.msra.mxu1 %v6981_v53  ;;  %v7097_v52 = vld [vmem:[#allocation9 + $0x114] ss:$8 sps:$4 sm:$0xff]   ;;  %v7095_v53 = vld [vmem:[#allocation9 + $0x110] ss:$8 sps:$4 sm:$0xff]  }
 0x31f   :  { %5157 = vmatprep.mubr.bf16.mxu1 %v7594_v41  ;;  %5127 = vmatprep.subr.bf16.mxu1 %v6986_v54  ;;  %v7062_v41 = vld [vmem:[#allocation9 + $0xc0] ss:$8 sps:$4 sm:$0xff]   ;;  %v7100_v54 = vld [vmem:[#allocation9 + $0x104] ss:$8 sps:$4 sm:$0xff]  }
 0x321   :  { %5593 = vmatpush2.bf16.msra.mxu0 %v7053_v55  ;;  %v7098_v55 = vld [vmem:[#allocation9 + $0x100] ss:$8 sps:$4 sm:$0xff]  }
 0x322   :  { %5594 = vmatprep.subr.bf16.mxu0 %v7058_v56  ;;  %5128 = vmatpush1.bf16.msra.mxu1 %v6984_v62  ;;  %v7103_v56 = vld [vmem:[#allocation9 + $0x1f4] ss:$8 sps:$4 sm:$0xff]   ;;  %v7101_v62 = vld [vmem:[#allocation9 + $0x1f0] ss:$8 sps:$4 sm:$0xff]  }
 0x323   :  { %5129 = vmatprep.subr.bf16.mxu1 %v6989_v17  ;;  %v7106_v17 = vld [vmem:[#allocation9 + $0x1e4] ss:$8 sps:$4 sm:$0xff]  }
 0x325   :  { %5595 = vmatpush2.bf16.msra.mxu0 %v7056_v7  ;;  %v4858_v7 = vpop.f32.mrf.mxu0 }
 0x326   :  { %5596 = vmatprep.subr.bf16.mxu0 %v7061_v1  ;;  %5130 = vmatpush1.bf16.msra.mxu1 %v6987_v60  ;;  %v7104_v1 = vld [vmem:[#allocation9 + $0x1e0] ss:$8 sps:$4 sm:$0xff]   ;;  %v7109_v60 = vld [vmem:[#allocation9 + $0x1d4] ss:$8 sps:$4 sm:$0xff]  }
 0x327   :  { %5131 = vmatprep.subr.bf16.mxu1 %v6992_v36  ;;  %v4860_v36 = vpop.f32.mrf.mxu0 }
 0x329   :  { %5597 = vmatpush2.bf16.msra.mxu0 %v7059_v2  ;;  %v7107_v2 = vld [vmem:[#allocation9 + $0x1d0] ss:$8 sps:$4 sm:$0xff]  }
 0x32a   :  { %5598 = vmatprep.subr.bf16.mxu0 %v7064_v3  ;;  %5132 = vmatpush1.bf16.msra.mxu1 %v6990_v20  ;;  %v7112_v3 = vld [vmem:[#allocation9 + $0x1c4] ss:$8 sps:$4 sm:$0xff]   ;;  %v4862_v20 = vpop.f32.mrf.mxu0 }
 0x32b   :  { %5133 = vmatprep.subr.bf16.mxu1 %v6995_v4  ;;  %v4901_v4 = vpop.f32.mrf.mxu1 }
 0x32d   :  { %5599 = vmatpush2.bf16.msra.mxu0 %v7062_v41  ;;  %v7110_v41 = vld [vmem:[#allocation9 + $0x1c0] ss:$8 sps:$4 sm:$0xff]  }
 0x32e   :  { %5600 = vmatprep.subr.bf16.mxu0 %v7067_v51  ;;  %5134 = vmatpush1.bf16.msra.mxu1 %v6993_v9  ;;  %v4864_v51 = vpop.f32.mrf.mxu0  ;;  %v4903_v9 = vpop.f32.mrf.mxu1 }
 0x32f   :  { %5135 = vmatprep.subr.bf16.mxu1 %v6998_v11 }
 0x331   :  { %5601 = vmatpush2.bf16.msra.mxu0 %v7065_v13  ;;  %v7605_v13 = vld [vmem:[#allocation7] sm:$0xf] }
 0x332   :  { %5602 = vmatprep.subr.bf16.mxu0 %v7070_v8  ;;  %5136 = vmatpush1.bf16.msra.mxu1 %v6996_v14  ;;  %v4905_v8 = vpop.f32.mrf.mxu1 }
 0x333   :  { %5137 = vmatprep.subr.bf16.mxu1 %v7001_v15  ;;  %v3527_v15 = vrot.slane %v7605_v13, %v7490_v5 }
 0x335   :  { %5603 = vmatpush2.bf16.msra.mxu0 %v7068_v23  ;;  %v3531_v23 = vrot.slane %v7605_v13, %v7528_v49 }
 0x336   :  { %5604 = vmatprep.subr.bf16.mxu0 %v7073_v61  ;;  %5138 = vmatpush1.bf16.msra.mxu1 %v6999_v29  ;;  %v4907_v61 = vpop.f32.mrf.mxu1 }
 0x337   :  { %5139 = vmatprep.subr.bf16.mxu1 %v7004_v16  ;;  %v7115_v16 = vld [vmem:[#allocation9 + $0x1b4] ss:$8 sps:$4 sm:$0xff]  }
 0x339   :  { %5605 = vmatpush2.bf16.msra.mxu0 %v7071_v18  ;;  %v4859_v18 = vadd.f32 %v4858_v7, %v3527_v15  ;;  %v7130_v7 = vld [vmem:[#allocation12 + $0x28] sm:$0xff]  }
 0x33a   :  { %5606 = vmatprep.subr.bf16.mxu0 %v7076_v19  ;;  %5140 = vmatpush1.bf16.msra.mxu1 %v7002_v40  ;;  %v4863_v19 = vadd.f32 %v4862_v20, %v3527_v15  ;;  %v7113_v40 = vld [vmem:[#allocation9 + $0x1b0] ss:$8 sps:$4 sm:$0xff]  }
 0x33b   :  { %5141 = vmatprep.subr.bf16.mxu1 %v7007_v39 }
 0x33d   :  { %5607 = vmatpush2.bf16.msra.mxu0 %v7074_v33  ;;  %v4861_v33 = vadd.f32 %v4860_v36, %v3531_v23 }
 0x33e   :  { %5142 = vmatpush2.bf16.msra.mxu1 %v7005_v6  ;;  %v4865_v6 = vadd.f32 %v4864_v51, %v3531_v23 }
 0x33f   :  { %5143 = vmatprep.subr.bf16.mxu1 %v7010_v21  ;;  %v4902_v21 = vadd.f32 %v4901_v4, %v4859_v18 }
 0x340   :  { %v4944_v11 = vpop.f32.mrf.mxu0 }
 0x342   :  { %5144 = vmatpush2.bf16.msra.mxu1 %v7008_v48  ;;  %v4946_v14 = vpop.f32.mrf.mxu0  ;;  %v4906_v48 = vadd.f32 %v4905_v8, %v4863_v19  ;;  %v3539_v8 = vrot.slane %v7605_v13, %v564_v22 }
 0x343   :  { %5145 = vmatprep.subr.bf16.mxu1 %v7013_v63 }
 0x344   :  { %v4948_v29 = vpop.f32.mrf.mxu0 }
 0x346   :  { %5146 = vmatpush2.bf16.msra.mxu1 %v7011_v24  ;;  %v4950_v63 = vpop.f32.mrf.mxu0 }
 0x347   :  { %5147 = vmatprep.subr.bf16.mxu1 %v7016_v25  ;;  %v7118_v25 = vld [vmem:[#allocation9 + $0x1a4] ss:$8 sps:$4 sm:$0xff]  }
 0x34a   :  { %5148 = vmatpush2.bf16.msra.mxu1 %v7014_v43  ;;  %v4904_v43 = vadd.f32 %v4903_v9, %v4861_v33  ;;  %v3535_v9 = vrot.slane %v7605_v13, %v560_v37 }
 0x34b   :  { %5149 = vmatprep.subr.bf16.mxu1 %v7019_v34  ;;  %v4908_v34 = vadd.f32 %v4907_v61, %v4865_v6 }
 0x34e   :  { %5150 = vmatpush2.bf16.msra.mxu1 %v7017_v26  ;;  %v4945_v26 = vadd.f32 %v4944_v11, %v4902_v21 }
 0x34f   :  { %5151 = vmatprep.subr.bf16.mxu1 %v7022_v0  ;;  %v4949_v0 = vadd.f32 %v4948_v29, %v4906_v48 }
 0x352   :  { %5152 = vmatpush2.bf16.msra.mxu1 %v7020_v27  ;;  %v7116_v27 = vld [vmem:[#allocation9 + $0x1a0] ss:$8 sps:$4 sm:$0xff]  }
 0x353   :  { %5153 = vmatprep.subr.bf16.mxu1 %v7025_v28 }
 0x356   :  { %5154 = vmatpush2.bf16.msra.mxu1 %v7023_v30  ;;  %v4947_v30 = vadd.f32 %v4946_v14, %v4904_v43 }
 0x357   :  { %5155 = vmatprep.subr.bf16.mxu1 %v7028_v12  ;;  %v4951_v12 = vadd.f32 %v4950_v63, %v4908_v34 }
 0x35a   :  { %5156 = vmatpush2.bf16.msra.mxu1 %v7026_v31 }
 0x35b   :  { %5619 = vmatprep.subr.bf16.mxu1 %v7079_v32 }
 0x35d   :  { %5158 = vmatmul.mubr.bf16.vlgmr.msra.gmra.mxu1 %v7596_v44  ;;  %v7094_v44 = vld [vmem:[#allocation9 + $0x124] ss:$8 sps:$4 sm:$0xff]  }
 0x35e   :  { %5620 = vmatpush1.bf16.msra.mxu1 %v7077_v35 }
 0x35f   :  { %5621 = vmatprep.subr.bf16.mxu1 %v7082_v57  ;;  %v7121_v57 = vld [vmem:[#allocation9 + $0x194] ss:$8 sps:$4 sm:$0xff]  }
 0x362   :  { %5622 = vmatpush1.bf16.msra.mxu1 %v7080_v38 }
 0x363   :  { %5623 = vmatprep.subr.bf16.mxu1 %v7085_v42 }
 0x366   :  { %5624 = vmatpush1.bf16.msra.mxu1 %v7083_v45 }
 0x367   :  { %5625 = vmatprep.subr.bf16.mxu1 %v7088_v10  ;;  %v7119_v10 = vld [vmem:[#allocation9 + $0x190] ss:$8 sps:$4 sm:$0xff]  }
 0x36a   :  { %5626 = vmatpush1.bf16.msra.mxu1 %v7086_v46 }
 0x36b   :  { %5627 = vmatprep.subr.bf16.mxu1 %v7091_v47 }
 0x36e   :  { %5628 = vmatpush1.bf16.msra.mxu1 %v7089_v50  ;;  %v7124_v50 = vld [vmem:[#allocation9 + $0x184] ss:$8 sps:$4 sm:$0xff]  }
 0x36f   :  { %5629 = vmatprep.subr.bf16.mxu1 %v7094_v44 }
 0x372   :  { %5630 = vmatpush1.bf16.msra.mxu1 %v7092_v58  ;;  %v7122_v58 = vld [vmem:[#allocation9 + $0x180] ss:$8 sps:$4 sm:$0xff]  }
 0x373   :  { %5631 = vmatprep.subr.bf16.mxu1 %v7097_v52 }
 0x376   :  { %5632 = vmatpush1.bf16.msra.mxu1 %v7095_v53 }
 0x377   :  { %5633 = vmatprep.subr.bf16.mxu1 %v7100_v54  ;;  %v7125_v54 = vld [vmem:[#allocation12 + $0x78] sm:$0xff]  }
 0x378   :  { %6606 = vmatprep.subr.bf16.mxu0 %v7125_v54 }
 0x37a   :  { %5634 = vmatpush1.bf16.msra.mxu1 %v7098_v55  ;;  %v7126_v55 = vld [vmem:[#allocation12 + $0x38] sm:$0xff]  }
 0x37b   :  { %5635 = vmatprep.subr.bf16.mxu1 %v7103_v56  ;;  %v7127_v56 = vld [vmem:[#allocation12 + $0x70] sm:$0xff]  }
 0x37e   :  { %5636 = vmatpush2.bf16.msra.mxu1 %v7101_v62  ;;  %v7128_v62 = vld [vmem:[#allocation12 + $0x30] sm:$0xff]  }
 0x37f   :  { %5637 = vmatprep.subr.bf16.mxu1 %v7106_v17  ;;  %v7129_v17 = vld [vmem:[#allocation12 + $0x68] sm:$0xff]  }
 0x380   :  { %v5030_v36 = vpop.f32.mrf.mxu0 }
 0x381   :  { %v5031_v15 = vadd.f32 %v5030_v36, %v3535_v9 }
 0x382   :  { %5638 = vmatpush2.bf16.msra.mxu1 %v7104_v1  ;;  %v7131_v1 = vld [vmem:[#allocation12 + $0x60] sm:$0xff]  }
 0x383   :  { %5639 = vmatprep.subr.bf16.mxu1 %v7109_v60  ;;  %v7132_v60 = vld [vmem:[#allocation12 + $0x20] sm:$0xff]  }
 0x386   :  { %5640 = vmatpush2.bf16.msra.mxu1 %v7107_v2  ;;  %v5032_v2 = vpop.f32.mrf.mxu0 }
 0x387   :  { %5641 = vmatprep.subr.bf16.mxu1 %v7112_v3  ;;  %v5033_v29 = vadd.f32 %v5032_v2, %v3539_v8 }
 0x388   :  { %v5034_v3 = vpop.f32.mrf.mxu0 }
 0x389   :  { %v5035_v23 = vadd.f32 %v5034_v3, %v3535_v9 }
 0x38a   :  { %5642 = vmatpush2.bf16.msra.mxu1 %v7110_v41  ;;  %v5036_v4 = vpop.f32.mrf.mxu0 }
 0x38b   :  { %5643 = vmatprep.subr.bf16.mxu1 %v7115_v16  ;;  %v5037_v16 = vadd.f32 %v5036_v4, %v3539_v8 }
 0x38e   :  { %5644 = vmatpush2.bf16.msra.mxu1 %v7113_v40 }
 0x38f   :  { %5645 = vmatprep.subr.bf16.mxu1 %v7118_v25 }
 0x392   :  { %5646 = vmatpush2.bf16.msra.mxu1 %v7116_v27 }
 0x393   :  { %5647 = vmatprep.subr.bf16.mxu1 %v7121_v57  ;;  %v7135_v57 = vld [vmem:[#allocation12 + $0x50] sm:$0xff]  }
 0x396   :  { %5648 = vmatpush2.bf16.msra.mxu1 %v7119_v10  ;;  %v7139_v10 = vld [vmem:[#allocation12 + $0x40] sm:$0xff]  }
 0x397   :  { %5649 = vmatprep.subr.bf16.mxu1 %v7124_v50 }
 0x39a   :  { %5650 = vmatpush2.bf16.msra.mxu1 %v7122_v58 }
 0x39d   :  { %v4987_v39 = vpop.f32.mrf.mxu1 }
 0x39e   :  { %v4988_v31 = vadd.f32 %v4987_v39, %v4945_v26 }
 0x39f   :  { %v4989_v24 = vpop.f32.mrf.mxu1 }
 0x3a0   :  { %v4990_v38 = vadd.f32 %v4989_v24, %v4947_v30 }
 0x3a1   :  { %v4991_v28 = vpop.f32.mrf.mxu1 }
 0x3a2   :  { %v4992_v35 = vadd.f32 %v4991_v28, %v4949_v0 }
 0x3a3   :  { %v4993_v32 = vpop.f32.mrf.mxu1 }
 0x3a4   :  { %v5168_v42 = vpack.c.bf16 %v4992_v35, %v4988_v31  ;;  %v4994_v45 = vadd.f32 %v4993_v32, %v4951_v12  ;;  %v7133_v35 = vld [vmem:[#allocation12 + $0x58] sm:$0xff]  }
 0x3a5   :  { %v7134_v32 = vld [vmem:[#allocation12 + $0x18] sm:$0xff]  }
 0x3a6   :  { %v5169_v46 = vpack.c.bf16 %v4994_v45, %v4990_v38  ;;  %v5172_v47 = vmul.bf16 1045249613, %v5168_v42  ;;  %v7136_v38 = vld [vmem:[#allocation12 + $0x10] sm:$0xff]   ;;  %v7138_v45 = vld [vmem:[#allocation12 + $0x8] sm:$0xff]  }
 0x3a8   :  { %v5173_v44 = vmul.bf16 1045249613, %v5169_v46  ;;  %v5176_v53 = vmax.bf16 %v5172_v47, %v5168_v42  ;;  %v7137_v42 = vld [vmem:[#allocation12 + $0x48] sm:$0xff]  }
 0x3aa   :  { %v5177_v52 = vmax.bf16 %v5173_v44, %v5169_v46  ;;  %v7140_v46 = vld [vmem:[#allocation12] sm:$0xff]   ;;  %v5244_v44 = vld [vmem:[#allocation10] sm:$0x3] }
 0x3ab   :  { %v5253_v54 = vrot.slane %v5244_v44, %v7528_v49 }
 0x3ac   :  { %5608 = vmatprep.mubr.bf16.mxu0 %v5177_v52  ;;  %v5249_v52 = vrot.slane %v5244_v44, %v7490_v5 }
 0x3ad   :  { %5609 = vmatmul.mubr.bf16.vlgmr.msra.gmra.mxu0 %v5176_v53 }
 0x3ae   :  { %6607 = vmatpush3.bf16.msra.mxu0 %v7126_v55 }
 0x3af   :  { %6608 = vmatprep.subr.bf16.mxu0 %v7127_v56 }
 0x3b2   :  { %6609 = vmatpush3.bf16.msra.mxu0 %v7128_v62 }
 0x3b3   :  { %6610 = vmatprep.subr.bf16.mxu0 %v7129_v17 }
 0x3b6   :  { %6611 = vmatpush3.bf16.msra.mxu0 %v7130_v7 }
 0x3b7   :  { %6612 = vmatprep.subr.bf16.mxu0 %v7131_v1 }
 0x3ba   :  { %6613 = vmatpush3.bf16.msra.mxu0 %v7132_v60 }
 0x3bb   :  { %6614 = vmatprep.subr.bf16.mxu0 %v7133_v35 }
 0x3be   :  { %6615 = vmatpush3.bf16.msra.mxu0 %v7134_v32 }
 0x3bf   :  { %6616 = vmatprep.subr.bf16.mxu0 %v7135_v57 }
 0x3c0   :  { %v5116_v51 = vpop.f32.mrf.mxu0 }
 0x3c2   :  { %v5118_v14 = vpop.f32.mrf.mxu0  ;;  %6617 = vmatpush3.bf16.msra.mxu0 %v7136_v38 }
 0x3c3   :  { %6618 = vmatprep.subr.bf16.mxu0 %v7137_v42 }
 0x3c4   :  { %v5120_v40 = vpop.f32.mrf.mxu0 }
 0x3c6   :  { %v5122_v63 = vpop.f32.mrf.mxu0  ;;  %6619 = vmatpush3.bf16.msra.mxu0 %v7138_v45 }
 0x3c7   :  { %6620 = vmatprep.subr.bf16.mxu0 %v7139_v10 }
 0x3ca   :  { %6621 = vmatpush3.bf16.msra.mxu0 %v7140_v46 }
 0x3dd   :  { %v5073_v20 = vpop.f32.mrf.mxu1 }
 0x3de   :  { %v5074_v18 = vadd.f32 %v5073_v20, %v5031_v15 }
 0x3df   :  { %v5075_v41 = vpop.f32.mrf.mxu1 }
 0x3e0   :  { %v5076_v33 = vadd.f32 %v5075_v41, %v5033_v29  ;;  %v5117_v48 = vadd.f32 %v5116_v51, %v5074_v18 }
 0x3e1   :  { %v5077_v11 = vpop.f32.mrf.mxu1 }
 0x3e2   :  { %v5078_v19 = vadd.f32 %v5077_v11, %v5035_v23  ;;  %v5119_v25 = vadd.f32 %v5118_v14, %v5076_v33  ;;  %v6589_v14 = vld [vmem:[#allocation13] ss:$0 sm:$0xff] }
 0x3e3   :  { %v5079_v61 = vpop.f32.mrf.mxu1 }
 0x3e4   :  { %v5080_v6 = vadd.f32 %v5079_v61, %v5037_v16  ;;  %v5121_v37 = vadd.f32 %v5120_v40, %v5078_v19 }
 0x3e6   :  { %v5123_v13 = vadd.f32 %v5122_v63, %v5080_v6 }
 0x41d   :  { %v5159_v39 = vpop.f32.mrf.mxu1 }
 0x41e   :  { %v5160_v59 = vadd.f32 %v5159_v39, %v5117_v48 }
 0x41f   :  { %v5161_v21 = vpop.f32.mrf.mxu1 }
 0x420   :  { %v5162_v34 = vadd.f32 %v5161_v21, %v5119_v25 }
 0x421   :  { %v5163_v24 = vpop.f32.mrf.mxu1 }
 0x422   :  { %v5164_v22 = vadd.f32 %v5163_v24, %v5121_v37 }
 0x423   :  { %v5165_v43 = vpop.f32.mrf.mxu1 }
 0x424   :  { %v5170_v26 = vpack.c.bf16 %v5164_v22, %v5160_v59  ;;  %v5166_v0 = vadd.f32 %v5165_v43, %v5123_v13 }
 0x426   :  { %v5171_v27 = vpack.c.bf16 %v5166_v0, %v5162_v34  ;;  %v5174_v28 = vmul.bf16 1045249613, %v5170_v26 }
 0x428   :  { %v5175_v30 = vmul.bf16 1045249613, %v5171_v27  ;;  %v5178_v31 = vmax.bf16 %v5174_v28, %v5170_v26 }
 0x42a   :  { %v5179_v12 = vmax.bf16 %v5175_v30, %v5171_v27 }
 0x42c   :  { %5651 = vmatprep.mubr.bf16.mxu1 %v5179_v12 }
 0x42d   :  { %5652 = vmatmul.mubr.bf16.vlgmr.msra.gmra.mxu1 %v5178_v31 }
 0x46d   :  { %v5610_v47 = vpop.f32.mrf.mxu0 }
 0x46e   :  { %v5611_v62 = vadd.f32 %v5610_v47, %v5249_v52 }
 0x46f   :  { %v5612_v50 = vpop.f32.mrf.mxu0 }
 0x470   :  { %v5613_v1 = vadd.f32 %v5612_v50, %v5253_v54 }
 0x471   :  { %v5614_v58 = vpop.f32.mrf.mxu0 }
 0x472   :  { %v5615_v17 = vadd.f32 %v5614_v58, %v5249_v52 }
 0x473   :  { %v5616_v55 = vpop.f32.mrf.mxu0 }
 0x474   :  { %v5617_v60 = vadd.f32 %v5616_v55, %v5253_v54 }
 0x4ed   :  { %v5653_v53 = vpop.f32.mrf.mxu1 }
 0x4ee   :  { %v5654_v36 = vadd.f32 %v5653_v53, %v5611_v62 }
 0x4ef   :  { %v5655_v56 = vpop.f32.mrf.mxu1 }
 0x4f0   :  { %v5656_v20 = vadd.f32 %v5655_v56, %v5613_v1 }
 0x4f1   :  { %v5657_v7 = vpop.f32.mrf.mxu1 }
 0x4f2   :  { %v5658_v2 = vadd.f32 %v5657_v7, %v5615_v17 }
 0x4f3   :  { %v5659_v3 = vpop.f32.mrf.mxu1 }
 0x4f4   :  { %v5662_v4 = vpack.c.bf16 %v5658_v2, %v5654_v36  ;;  %v5660_v41 = vadd.f32 %v5659_v3, %v5617_v60 }
 0x4f6   :  { %v5663_v51 = vpack.c.bf16 %v5660_v41, %v5656_v20  ;;  %v5664_v9 = vmul.bf16 1045249613, %v5662_v4 }
 0x4f8   :  { %v5665_v11 = vmul.bf16 1045249613, %v5663_v51  ;;  %v5666_v8 = vmax.bf16 %v5664_v9, %v5662_v4 }
 0x4fa   :  { %v5667_v5 = vmax.bf16 %v5665_v11, %v5663_v51 }
 0x4fc   :  { %5835 = vmatprep.mubr.bf16.mxu0 %v5667_v5 }
 0x4fd   :  { %5836 = vmatmul.mubr.bf16.vlgmr.msra.gmra.mxu0 %v5666_v8 }
 0x5bd   :  { %v6622_v49 = vpop.f32.mrf.mxu0 }
 0x5bf   :  { %v6623_v15 = vpop.f32.mrf.mxu0 }
 0x5c0   :  { %v6624_v23 = vadd.f32 %v6623_v15, %v6622_v49 }
 0x5c1   :  { %v6625_v61 = vpop.f32.mrf.mxu0 }
 0x5c2   :  { %v5838_v29 = vadd.f32 %v6624_v23, %v6589_v14 }
 0x5c3   :  { %v6626_v16 = vpop.f32.mrf.mxu0 }
 0x5c4   :  { %v5844_v18 = vand.u32 2147483647, %v5838_v29  ;;  %v6627_v19 = vadd.f32 %v6626_v16, %v6625_v61  ;;  %vm5856_vm1 = vcmp.ge.f32.partialorder %v5838_v29, 0.0 }
 0x5c6   :  { %v5846_v40 = vsub.f32 0.0, %v5844_v18  ;;  %v5841_v39 = vadd.f32 %v6627_v19, %v6589_v14 }
 0x5c8   :  { %v5848_v33 = vmul.f32 1.442695, %v5846_v40  ;;  %v5845_v6 = vand.u32 2147483647, %v5841_v39  ;;  %vm5857_vm2 = vcmp.ge.f32.partialorder %v5841_v39, 0.0 }
 0x5ca   :  { %7141 = vpow2.f32 %v5848_v33  ;;  %v5847_v21 = vsub.f32 0.0, %v5845_v6 }
 0x5cc   :  { %v5850_v48 = vmul.f32 1.442695, %v5847_v21 }
 0x5ce   :  { %7143 = vpow2.f32 %v5850_v48 }
 0x5d7   :  { %v7142_v37 = vpop.eup %7141 }
 0x5d8   :  { %v5852_v63 = vadd.f32 1.0, %v7142_v37 }
 0x5da   :  { %7145 = vrcp.f32 %v5852_v63 }
 0x5db   :  { %v7144_v24 = vpop.eup %7143 }
 0x5dc   :  { %v5853_v59 = vadd.f32 1.0, %v7144_v24 }
 0x5de   :  { %7147 = vrcp.f32 %v5853_v59 }
 0x5e7   :  { %v7146_v25 = vpop.eup %7145 }
 0x5e8   :  { %v5858_v22 = vmul.f32 %v7146_v25, %v7142_v37 }
 0x5ea   :  { %v5860_v13 = vsel %vm5856_vm1, %v7146_v25, %v5858_v22 }
 0x5eb   :  { %v7148_v43 = vpop.eup %7147  ;;  %5862 = vst [vmem:[%s7634_s9] sm:$0xff] %v5860_v13 }
 0x5ec   :  { %v5859_v34 = vmul.f32 %v7148_v43, %v7144_v24 }
 0x5ee   :  { %v5861_v26 = vsel %vm5857_vm2, %v7148_v43, %v5859_v34 }
 0x5ef   :  { %5863 = vst [vmem:[%s7634_s9 + $0x8] sm:$0xff] %v5861_v26 }
 0x5f0   :  { %5868 = vsyncpa [#allocation3], 1 }
 0x5f1   :  { %5869 = vsyncpa [#allocation5], 1 }
 0x5f2   :  { %5870 = vsyncpa [#allocation8], 1 }
 0x5f3   :  { %5871 = vsyncpa [#allocation11], 1 }
 0x5f4   :  { %5872 = vsyncpa [#allocation14], 1 }

</bundles_post_ra>
